<compile_context>
chip_gen: v7x
topology: tpu7x:2x2x1
jax: 0.10.0
libtpu: 0.0.40
codegen_flags: <defaults>
</compile_context>

<pallas_src>
import functools
import math

import jax
import jax.numpy as jnp
import numpy as np
from jax import lax
from jax.experimental import pallas as pl
from jax.experimental.pallas import tpu as pltpu

# ----------------------------- block config --------------------------------------------------
BATCH = 2
IN_PLANES = 64          # in_planes
PLANES = 32             # planes
EXPANSION = 4
OUT_PLANES = EXPANSION * PLANES   # 128 -> lane-dense output
IMAGE = 16              # H = W
STRIDE = 1              # kernel implements the stride=1 bottleneck
BN_EPS = 1e-5
PAD = 2 * IMAGE         # flat-scratch border rows (>= W+1, multiple of 16 for bf16 alignment)


# ----------------------------- fused Pallas kernel -------------------------------------------
def _bottleneck_kernel(x_ref, w1s_ref, w2_ref, w3_ref,
                       s1s_ref, b1s_ref, s2_ref, b2_ref, s3_ref, b3_ref,
                       out_ref, pre_ref, hs_ref):
    H = W = IMAGE
    P = PLANES
    HW = H * W

    # zero only the scratch borders (interior is fully rewritten below); done every step so it
    # is correct when the "parallel" grid is split across TensorCores.
    hs_ref[pl.ds(0, PAD), :] = jnp.zeros((PAD, P), jnp.bfloat16)
    hs_ref[pl.ds(HW + PAD, PAD), :] = jnp.zeros((PAD, P), jnp.bfloat16)

    # input tile: one image, already flattened + bf16 in the wrapper -> (H*W, Cin)
    x = x_ref[0]

    # --- conv1 (1x1) + bn1 + relu  AND  shortcut (1x1 conv + bn), fused in one matmul --------
    # weight layout: [ ws (Cin,128) | w1 (Cin,32) ]  ->  both slices are 128-lane aligned.
    y = jnp.dot(x, w1s_ref[...], preferred_element_type=jnp.float32)
    y = y * s1s_ref[...] + b1s_ref[...]                                   # (H*W, 160) f32
    sc = y[:, :OUT_PLANES]                                                # shortcut branch
    h1 = jnp.maximum(y[:, OUT_PLANES:], 0.0)                              # (H*W, P) f32

    # --- conv2 (3x3, stride 1, pad 1) + bn2 + relu --------------------------------------------
    # stage h1 once as bf16 into the flat row-padded scratch (aligned store at offset PAD)
    hs_ref[pl.ds(PAD, HW), :] = h1.astype(jnp.bfloat16)

    # column-wrap masks (computed once, full (H*W, P) so no per-tap broadcasts)
    col_idx = lax.broadcasted_iota(jnp.int32, (HW, P), 0) % W
    mask_l = col_idx >= 1            # reading left neighbour  (dj = -1) is valid
    mask_r = col_idx < (W - 1)       # reading right neighbour (dj = +1) is valid

    # nine shifted taps -> nine accumulating (H*W,P)@(P,P) bf16 matmuls, f32 accumulation.
    # Row out-of-bounds reads land in the zeroed border rows; column wraps are masked.
    h2 = None
    t = 0
    for di in (-1, 0, 1):
        for dj in (-1, 0, 1):
            off = di * W + dj
            tap = hs_ref[pl.ds(PAD + off, HW), :]                          # (H*W, P) bf16
            if dj == -1:
                tap = jnp.where(mask_l, tap, jnp.zeros_like(tap))
            elif dj == 1:
                tap = jnp.where(mask_r, tap, jnp.zeros_like(tap))
            contrib = jnp.dot(tap, w2_ref[t], preferred_element_type=jnp.float32)
            h2 = contrib if h2 is None else h2 + contrib
            t += 1
    h2 = jnp.maximum(h2 * s2_ref[...] + b2_ref[...], 0.0)                  # (H*W, P) f32

    # --- conv3 (1x1) + bn3 + residual add + relu ----------------------------------------------
    h3 = jnp.dot(h2.astype(jnp.bfloat16), w3_ref[...],
                 preferred_element_type=jnp.float32)
    h3 = h3 * s3_ref[...] + b3_ref[...]                                    # (H*W, 4P) f32

    pre = h3 + sc                                                          # preact
    pre_ref[0] = pre.astype(pre_ref.dtype)
    out_ref[0] = jnp.maximum(pre, 0.0).astype(out_ref.dtype)               # relu(out)


# ----------------------------- wrapper --------------------------------------------------------
def _fold_params(params):
    """Fold eval-mode BN to per-channel scale/shift; lay conv weights out as MXU matrices."""
    def bn_fold(bn):
        s = bn["gamma"] / jnp.sqrt(bn["var"] + BN_EPS)
        return s.reshape(1, -1), (bn["beta"] - bn["mean"] * s).reshape(1, -1)

    def conv1x1_mat(w):                        # (Cout, Cin, 1, 1) -> (Cin, Cout)
        return jnp.transpose(w[:, :, 0, 0], (1, 0))

    s1, b1 = bn_fold(params["bn1"])
    s2, b2 = bn_fold(params["bn2"])
    s3, b3 = bn_fold(params["bn3"])
    ss, bs = bn_fold(params["bns"])

    # fused conv1 + shortcut operand: [ shortcut (Cin,128) | conv1 (Cin,32) ]
    w1s = jnp.concatenate([conv1x1_mat(params["ws"]), conv1x1_mat(params["w1"])],
                          axis=1).astype(jnp.bfloat16)
    s1s = jnp.concatenate([ss, s1], axis=1)
    b1s = jnp.concatenate([bs, b1], axis=1)

    # conv2 as 9 per-tap (Cin, Cout) matrices, tap index = kh*3 + kw
    w2 = jnp.transpose(params["w2"], (2, 3, 1, 0)).reshape(9, PLANES, PLANES).astype(jnp.bfloat16)
    w3 = conv1x1_mat(params["w3"]).astype(jnp.bfloat16)

    return dict(w1s=w1s, s1s=s1s, b1s=b1s, w2=w2, w3=w3,
                s2=s2, b2=b2, s3=s3, b3=b3)


def _pallas_bottleneck(x_flat, kp):
    B, HW, Cin = x_flat.shape

    def full(shape):
        return pl.BlockSpec(shape, lambda b: (0,) * len(shape))

    out_shape = (jax.ShapeDtypeStruct((B, HW, OUT_PLANES), jnp.float32),   # out (post-relu)
                 jax.ShapeDtypeStruct((B, HW, OUT_PLANES), jnp.float32))   # preact

    in_specs = [
        pl.BlockSpec((1, HW, Cin), lambda b: (b, 0, 0)),
        full(kp["w1s"].shape), full(kp["w2"].shape), full(kp["w3"].shape),
        full(kp["s1s"].shape), full(kp["b1s"].shape),
        full(kp["s2"].shape), full(kp["b2"].shape),
        full(kp["s3"].shape), full(kp["b3"].shape),
    ]
    out_specs = (pl.BlockSpec((1, HW, OUT_PLANES), lambda b: (b, 0, 0)),
                 pl.BlockSpec((1, HW, OUT_PLANES), lambda b: (b, 0, 0)))

    return pl.pallas_call(
        _bottleneck_kernel,
        out_shape=out_shape,
        grid=(B,),
        in_specs=in_specs,
        out_specs=out_specs,
        scratch_shapes=[pltpu.VMEM((HW + 2 * PAD, PLANES), jnp.bfloat16)],
        compiler_params=pltpu.CompilerParams(dimension_semantics=("parallel",)),
    )(x_flat, kp["w1s"], kp["w2"], kp["w3"],
      kp["s1s"], kp["b1s"], kp["s2"], kp["b2"], kp["s3"], kp["b3"])


def bottleneck_forward(params, x_nchw, *, is_last=True):
    """Matches Bottleneck.forward: returns (out, preact) if is_last else out (NCHW)."""
    assert STRIDE == 1, "Pallas kernel implements the stride=1 bottleneck only"
    B, C, H, W = x_nchw.shape

    # layout glue only (module spec is NCHW); kernel consumes flattened bf16 (B, H*W, C)
    x_flat = jnp.transpose(x_nchw, (0, 2, 3, 1)).reshape(B, H * W, C).astype(jnp.bfloat16)
    kp = _fold_params(params)
    out, pre = _pallas_bottleneck(x_flat, kp)

    def to_nchw(t):
        return jnp.transpose(t.reshape(B, H, W, OUT_PLANES), (0, 3, 1, 2))

    if is_last:
        return to_nchw(out), to_nchw(pre)
    return to_nchw(out)


# ----------------------------- parameter init (deterministic, PyTorch-like) ------------------
def init_params(key):
    keys = jax.random.split(key, 8)

    def conv_w(k, cout, cin, ksize):
        bound = 1.0 / math.sqrt(cin * ksize * ksize)
        return jax.random.uniform(k, (cout, cin, ksize, ksize), jnp.float32, -bound, bound)

    def bn_params(k, c):
        k1, k2, k3, k4 = jax.random.split(k, 4)
        return dict(gamma=jax.random.uniform(k1, (c,), jnp.float32, 0.5, 1.5),
                    beta=jax.random.uniform(k2, (c,), jnp.float32, -0.5, 0.5),
                    mean=jax.random.uniform(k3, (c,), jnp.float32, -0.5, 0.5),
                    var=jax.random.uniform(k4, (c,), jnp.float32, 0.5, 1.5))

    return dict(
        w1=conv_w(keys[0], PLANES, IN_PLANES, 1),      bn1=bn_params(keys[1], PLANES),
        w2=conv_w(keys[2], PLANES, PLANES, 3),         bn2=bn_params(keys[3], PLANES),
        w3=conv_w(keys[4], OUT_PLANES, PLANES, 1),     bn3=bn_params(keys[5], OUT_PLANES),
        ws=conv_w(keys[6], OUT_PLANES, IN_PLANES, 1),  bns=bn_params(keys[7], OUT_PLANES),
    )


# ----------------------------- pure-JAX reference (f32, eval-mode BN) -------------------------
def bottleneck_reference(params, x):
    def bn(y, p):
        s = p["gamma"] / jnp.sqrt(p["var"] + BN_EPS)
        b = p["beta"] - p["mean"] * s
        return y * s[None, :, None, None] + b[None, :, None, None]

    def conv(y, w, pad=0):
        return lax.conv_general_dilated(y, w, (1, 1), [(pad, pad), (pad, pad)],
                                        dimension_numbers=("NCHW", "OIHW", "NCHW"))

    out = jax.nn.relu(bn(conv(x, params["w1"]), params["bn1"]))
    out = jax.nn.relu(bn(conv(out, params["w2"], pad=1), params["bn2"]))
    out = bn(conv(out, params["w3"]), params["bn3"])
    out = out + bn(conv(x, params["ws"]), params["bns"])
    pre = out
    return jax.nn.relu(out), pre


# ----------------------------- main -----------------------------------------------------------
if __name__ == "__main__":
    key = jax.random.PRNGKey(0)
    k_img, k_par = jax.random.split(key)
    x = jax.random.normal(k_img, (BATCH, IN_PLANES, IMAGE, IMAGE), jnp.float32)
    params = init_params(k_par)

    fwd = jax.jit(functools.partial(bottleneck_forward, is_last=True))
    out, pre = jax.block_until_ready(fwd(params, x))

    assert out.shape == (BATCH, OUT_PLANES, IMAGE, IMAGE)
    assert pre.shape == (BATCH, OUT_PLANES, IMAGE, IMAGE)
    assert bool(jnp.all(jnp.isfinite(out))) and bool(jnp.all(jnp.isfinite(pre)))

    ref_out, ref_pre = bottleneck_reference(params, x)
    np.testing.assert_allclose(np.asarray(pre), np.asarray(ref_pre), rtol=2e-2, atol=2e-2)
    np.testing.assert_allclose(np.asarray(out), np.asarray(ref_out), rtol=2e-2, atol=2e-2)

    print("KERNEL_OK")
</pallas_src>

<mosaic_0001>
module attributes {stable_mosaic.version = 11 : i64} {
  func.func @_bottleneck_kernel(%arg0: i32, %arg1: memref<1x256x64xbf16, #tpu.memory_space<vmem>>, %arg2: memref<64x160xbf16, #tpu.memory_space<vmem>>, %arg3: memref<9x32x32xbf16, #tpu.memory_space<vmem>>, %arg4: memref<32x128xbf16, #tpu.memory_space<vmem>>, %arg5: memref<1x160xf32, #tpu.memory_space<vmem>>, %arg6: memref<1x160xf32, #tpu.memory_space<vmem>>, %arg7: memref<1x32xf32, #tpu.memory_space<vmem>>, %arg8: memref<1x32xf32, #tpu.memory_space<vmem>>, %arg9: memref<1x128xf32, #tpu.memory_space<vmem>>, %arg10: memref<1x128xf32, #tpu.memory_space<vmem>>, %arg11: memref<1x256x128xf32, #tpu.memory_space<vmem>>, %arg12: memref<1x256x128xf32, #tpu.memory_space<vmem>>, %arg13: memref<320x32xbf16, #tpu.memory_space<vmem>>) attributes {dimension_semantics = [#tpu.dimension_semantics<parallel>], iteration_bounds = array<i64: 2>, scalar_prefetch = 0 : i64, scratch_operands = 1 : i64, tpu.core_type = #tpu.core_type<tc>, window_params = [{transform_indices = @transform_0, window_bounds = array<i64: 1, 256, 64>}, {pipeline_mode = #tpu.pipeline_mode<synchronous>, transform_indices = @transform_1, window_bounds = array<i64: 64, 160>}, {pipeline_mode = #tpu.pipeline_mode<synchronous>, transform_indices = @transform_2, window_bounds = array<i64: 9, 32, 32>}, {pipeline_mode = #tpu.pipeline_mode<synchronous>, transform_indices = @transform_3, window_bounds = array<i64: 32, 128>}, {pipeline_mode = #tpu.pipeline_mode<synchronous>, transform_indices = @transform_4, window_bounds = array<i64: 1, 160>}, {pipeline_mode = #tpu.pipeline_mode<synchronous>, transform_indices = @transform_5, window_bounds = array<i64: 1, 160>}, {pipeline_mode = #tpu.pipeline_mode<synchronous>, transform_indices = @transform_6, window_bounds = array<i64: 1, 32>}, {pipeline_mode = #tpu.pipeline_mode<synchronous>, transform_indices = @transform_7, window_bounds = array<i64: 1, 32>}, {pipeline_mode = #tpu.pipeline_mode<synchronous>, transform_indices = @transform_8, window_bounds = array<i64: 1, 128>}, {pipeline_mode = #tpu.pipeline_mode<synchronous>, transform_indices = @transform_9, window_bounds = array<i64: 1, 128>}, {transform_indices = @transform_10, window_bounds = array<i64: 1, 256, 128>}, {transform_indices = @transform_11, window_bounds = array<i64: 1, 256, 128>}]} {
    %cst = arith.constant 0.000000e+00 : bf16
    %0 = vector.broadcast %cst : bf16 to vector<32x32xbf16>
    %c0 = arith.constant 0 : index
    %c0_0 = arith.constant 0 : index
    %1 = vector.load %arg13[%c0, %c0_0] : memref<320x32xbf16, #tpu.memory_space<vmem>>, vector<32x32xbf16>
    tpu.vector_store %arg13[%c0, %c0_0], %0 {strides = array<i32>} : memref<320x32xbf16, #tpu.memory_space<vmem>>, vector<32x32xbf16>,
    %cst_1 = arith.constant 0.000000e+00 : bf16
    %2 = vector.broadcast %cst_1 : bf16 to vector<32x32xbf16>
    %c288 = arith.constant 288 : index
    %c0_2 = arith.constant 0 : index
    %3 = vector.load %arg13[%c288, %c0_2] : memref<320x32xbf16, #tpu.memory_space<vmem>>, vector<32x32xbf16>
    tpu.vector_store %arg13[%c288, %c0_2], %2 {strides = array<i32>} : memref<320x32xbf16, #tpu.memory_space<vmem>>, vector<32x32xbf16>,
    %c0_3 = arith.constant 0 : index
    %c0_4 = arith.constant 0 : index
    %c0_5 = arith.constant 0 : index
    %4 = vector.load %arg1[%c0_3, %c0_4, %c0_5] : memref<1x256x64xbf16, #tpu.memory_space<vmem>>, vector<1x256x64xbf16>
    %5 = vector.shape_cast %4 : vector<1x256x64xbf16> to vector<256x64xbf16>
    %c0_6 = arith.constant 0 : index
    %c0_7 = arith.constant 0 : index
    %6 = vector.load %arg2[%c0_6, %c0_7] : memref<64x160xbf16, #tpu.memory_space<vmem>>, vector<64x160xbf16>
    %cst_8 = arith.constant dense<0.000000e+00> : vector<256x160xf32>
    %7 = tpu.matmul %5, %6, %cst_8 {dimension_numbers = #tpu.dot_dimension_numbers<[1], [0], [0], [1], [0, 0, 1, 1], [], []>} : vector<256x64xbf16>, vector<64x160xbf16>, vector<256x160xf32> -> vector<256x160xf32>
    %c0_9 = arith.constant 0 : index
    %c0_10 = arith.constant 0 : index
    %8 = vector.load %arg5[%c0_9, %c0_10] : memref<1x160xf32, #tpu.memory_space<vmem>>, vector<1x160xf32>
    %9 = vector.broadcast %8 : vector<1x160xf32> to vector<256x160xf32>
    %10 = arith.mulf %7, %9 : vector<256x160xf32>
    %c0_11 = arith.constant 0 : index
    %c0_12 = arith.constant 0 : index
    %11 = vector.load %arg6[%c0_11, %c0_12] : memref<1x160xf32, #tpu.memory_space<vmem>>, vector<1x160xf32>
    %12 = vector.broadcast %11 : vector<1x160xf32> to vector<256x160xf32>
    %13 = arith.addf %10, %12 : vector<256x160xf32>
    %14 = vector.extract_strided_slice %13 {offsets = [0, 0], sizes = [256, 128], strides = [1, 1]} : vector<256x160xf32> to vector<256x128xf32>
    %15 = vector.extract_strided_slice %13 {offsets = [0, 128], sizes = [256, 32], strides = [1, 1]} : vector<256x160xf32> to vector<256x32xf32>
    %cst_13 = arith.constant 0.000000e+00 : f32
    %16 = vector.broadcast %cst_13 : f32 to vector<256x32xf32>
    %17 = arith.maximumf %15, %16 : vector<256x32xf32>
    %18 = arith.truncf %17 : vector<256x32xf32> to vector<256x32xbf16>
    %c32 = arith.constant 32 : index
    %c0_14 = arith.constant 0 : index
    %19 = vector.load %arg13[%c32, %c0_14] : memref<320x32xbf16, #tpu.memory_space<vmem>>, vector<256x32xbf16>
    tpu.vector_store %arg13[%c32, %c0_14], %18 {strides = array<i32>} : memref<320x32xbf16, #tpu.memory_space<vmem>>, vector<256x32xbf16>,
    %20 = tpu.iota {dimensions = array<i32: 0>} : vector<256x32xi32>
    %c16_i32 = arith.constant 16 : i32
    %c0_i32 = arith.constant 0 : i32
    %21 = arith.cmpi eq, %c16_i32, %c0_i32 : i32
    %c1_i32 = arith.constant 1 : i32
    %22 = arith.select %21, %c1_i32, %c16_i32 : i32
    %23 = vector.broadcast %22 : i32 to vector<256x32xi32>
    %24 = arith.remsi %20, %23 : vector<256x32xi32>
    %c0_i32_15 = arith.constant 0 : i32
    %25 = vector.broadcast %c0_i32_15 : i32 to vector<256x32xi32>
    %26 = arith.cmpi ne, %24, %25 : vector<256x32xi32>
    %c0_i32_16 = arith.constant 0 : i32
    %27 = vector.broadcast %c0_i32_16 : i32 to vector<256x32xi32>
    %28 = arith.cmpi slt, %24, %27 : vector<256x32xi32>
    %c0_i32_17 = arith.constant 0 : i32
    %29 = arith.cmpi slt, %22, %c0_i32_17 : i32
    %30 = vector.broadcast %29 : i1 to vector<256x32xi1>
    %31 = vector.broadcast %30 : vector<256x32xi1> to vector<256x32xi1>
    %32 = arith.xori %28, %31 : vector<256x32xi1>
    %33 = arith.andi %32, %26 : vector<256x32xi1>
    %34 = vector.broadcast %22 : i32 to vector<256x32xi32>
    %35 = arith.addi %24, %34 : vector<256x32xi32>
    %36 = arith.select %33, %35, %24 : vector<256x32xi1>, vector<256x32xi32>
    %c1_i32_18 = arith.constant 1 : i32
    %37 = vector.broadcast %c1_i32_18 : i32 to vector<256x32xi32>
    %38 = arith.cmpi sge, %36, %37 : vector<256x32xi32>
    %c15_i32 = arith.constant 15 : i32
    %39 = vector.broadcast %c15_i32 : i32 to vector<256x32xi32>
    %40 = arith.cmpi slt, %36, %39 : vector<256x32xi32>
    %c15 = arith.constant 15 : index
    %c0_19 = arith.constant 0 : index
    %41 = vector.load %arg13[%c15, %c0_19] : memref<320x32xbf16, #tpu.memory_space<vmem>>, vector<256x32xbf16>
    %cst_20 = arith.constant 0.000000e+00 : bf16
    %42 = vector.broadcast %cst_20 : bf16 to vector<256x32xbf16>
    %43 = arith.select %38, %41, %42 : vector<256x32xi1>, vector<256x32xbf16>
    %c0_21 = arith.constant 0 : index
    %c0_22 = arith.constant 0 : index
    %c0_23 = arith.constant 0 : index
    %44 = vector.load %arg3[%c0_21, %c0_22, %c0_23] : memref<9x32x32xbf16, #tpu.memory_space<vmem>>, vector<1x32x32xbf16>
    %45 = vector.shape_cast %44 : vector<1x32x32xbf16> to vector<32x32xbf16>
    %cst_24 = arith.constant dense<0.000000e+00> : vector<256x32xf32>
    %46 = tpu.matmul %43, %45, %cst_24 {dimension_numbers = #tpu.dot_dimension_numbers<[1], [0], [0], [1], [0, 0, 1, 1], [], []>} : vector<256x32xbf16>, vector<32x32xbf16>, vector<256x32xf32> -> vector<256x32xf32>
    %c16 = arith.constant 16 : index
    %c0_25 = arith.constant 0 : index
    %47 = vector.load %arg13[%c16, %c0_25] : memref<320x32xbf16, #tpu.memory_space<vmem>>, vector<256x32xbf16>
    %c1 = arith.constant 1 : index
    %c0_26 = arith.constant 0 : index
    %c0_27 = arith.constant 0 : index
    %48 = vector.load %arg3[%c1, %c0_26, %c0_27] : memref<9x32x32xbf16, #tpu.memory_space<vmem>>, vector<1x32x32xbf16>
    %49 = vector.shape_cast %48 : vector<1x32x32xbf16> to vector<32x32xbf16>
    %cst_28 = arith.constant dense<0.000000e+00> : vector<256x32xf32>
    %50 = tpu.matmul %47, %49, %cst_28 {dimension_numbers = #tpu.dot_dimension_numbers<[1], [0], [0], [1], [0, 0, 1, 1], [], []>} : vector<256x32xbf16>, vector<32x32xbf16>, vector<256x32xf32> -> vector<256x32xf32>
    %51 = arith.addf %46, %50 : vector<256x32xf32>
    %c17 = arith.constant 17 : index
    %c0_29 = arith.constant 0 : index
    %52 = vector.load %arg13[%c17, %c0_29] : memref<320x32xbf16, #tpu.memory_space<vmem>>, vector<256x32xbf16>
    %cst_30 = arith.constant 0.000000e+00 : bf16
    %53 = vector.broadcast %cst_30 : bf16 to vector<256x32xbf16>
    %54 = arith.select %40, %52, %53 : vector<256x32xi1>, vector<256x32xbf16>
    %c2 = arith.constant 2 : index
    %c0_31 = arith.constant 0 : index
    %c0_32 = arith.constant 0 : index
    %55 = vector.load %arg3[%c2, %c0_31, %c0_32] : memref<9x32x32xbf16, #tpu.memory_space<vmem>>, vector<1x32x32xbf16>
    %56 = vector.shape_cast %55 : vector<1x32x32xbf16> to vector<32x32xbf16>
    %cst_33 = arith.constant dense<0.000000e+00> : vector<256x32xf32>
    %57 = tpu.matmul %54, %56, %cst_33 {dimension_numbers = #tpu.dot_dimension_numbers<[1], [0], [0], [1], [0, 0, 1, 1], [], []>} : vector<256x32xbf16>, vector<32x32xbf16>, vector<256x32xf32> -> vector<256x32xf32>
    %58 = arith.addf %51, %57 : vector<256x32xf32>
    %c31 = arith.constant 31 : index
    %c0_34 = arith.constant 0 : index
    %59 = vector.load %arg13[%c31, %c0_34] : memref<320x32xbf16, #tpu.memory_space<vmem>>, vector<256x32xbf16>
    %cst_35 = arith.constant 0.000000e+00 : bf16
    %60 = vector.broadcast %cst_35 : bf16 to vector<256x32xbf16>
    %61 = arith.select %38, %59, %60 : vector<256x32xi1>, vector<256x32xbf16>
    %c3 = arith.constant 3 : index
    %c0_36 = arith.constant 0 : index
    %c0_37 = arith.constant 0 : index
    %62 = vector.load %arg3[%c3, %c0_36, %c0_37] : memref<9x32x32xbf16, #tpu.memory_space<vmem>>, vector<1x32x32xbf16>
    %63 = vector.shape_cast %62 : vector<1x32x32xbf16> to vector<32x32xbf16>
    %cst_38 = arith.constant dense<0.000000e+00> : vector<256x32xf32>
    %64 = tpu.matmul %61, %63, %cst_38 {dimension_numbers = #tpu.dot_dimension_numbers<[1], [0], [0], [1], [0, 0, 1, 1], [], []>} : vector<256x32xbf16>, vector<32x32xbf16>, vector<256x32xf32> -> vector<256x32xf32>
    %65 = arith.addf %58, %64 : vector<256x32xf32>
    %c32_39 = arith.constant 32 : index
    %c0_40 = arith.constant 0 : index
    %66 = vector.load %arg13[%c32_39, %c0_40] : memref<320x32xbf16, #tpu.memory_space<vmem>>, vector<256x32xbf16>
    %c4 = arith.constant 4 : index
    %c0_41 = arith.constant 0 : index
    %c0_42 = arith.constant 0 : index
    %67 = vector.load %arg3[%c4, %c0_41, %c0_42] : memref<9x32x32xbf16, #tpu.memory_space<vmem>>, vector<1x32x32xbf16>
    %68 = vector.shape_cast %67 : vector<1x32x32xbf16> to vector<32x32xbf16>
    %cst_43 = arith.constant dense<0.000000e+00> : vector<256x32xf32>
    %69 = tpu.matmul %66, %68, %cst_43 {dimension_numbers = #tpu.dot_dimension_numbers<[1], [0], [0], [1], [0, 0, 1, 1], [], []>} : vector<256x32xbf16>, vector<32x32xbf16>, vector<256x32xf32> -> vector<256x32xf32>
    %70 = arith.addf %65, %69 : vector<256x32xf32>
    %c33 = arith.constant 33 : index
    %c0_44 = arith.constant 0 : index
    %71 = vector.load %arg13[%c33, %c0_44] : memref<320x32xbf16, #tpu.memory_space<vmem>>, vector<256x32xbf16>
    %cst_45 = arith.constant 0.000000e+00 : bf16
    %72 = vector.broadcast %cst_45 : bf16 to vector<256x32xbf16>
    %73 = arith.select %40, %71, %72 : vector<256x32xi1>, vector<256x32xbf16>
    %c5 = arith.constant 5 : index
    %c0_46 = arith.constant 0 : index
    %c0_47 = arith.constant 0 : index
    %74 = vector.load %arg3[%c5, %c0_46, %c0_47] : memref<9x32x32xbf16, #tpu.memory_space<vmem>>, vector<1x32x32xbf16>
    %75 = vector.shape_cast %74 : vector<1x32x32xbf16> to vector<32x32xbf16>
    %cst_48 = arith.constant dense<0.000000e+00> : vector<256x32xf32>
    %76 = tpu.matmul %73, %75, %cst_48 {dimension_numbers = #tpu.dot_dimension_numbers<[1], [0], [0], [1], [0, 0, 1, 1], [], []>} : vector<256x32xbf16>, vector<32x32xbf16>, vector<256x32xf32> -> vector<256x32xf32>
    %77 = arith.addf %70, %76 : vector<256x32xf32>
    %c47 = arith.constant 47 : index
    %c0_49 = arith.constant 0 : index
    %78 = vector.load %arg13[%c47, %c0_49] : memref<320x32xbf16, #tpu.memory_space<vmem>>, vector<256x32xbf16>
    %cst_50 = arith.constant 0.000000e+00 : bf16
    %79 = vector.broadcast %cst_50 : bf16 to vector<256x32xbf16>
    %80 = arith.select %38, %78, %79 : vector<256x32xi1>, vector<256x32xbf16>
    %c6 = arith.constant 6 : index
    %c0_51 = arith.constant 0 : index
    %c0_52 = arith.constant 0 : index
    %81 = vector.load %arg3[%c6, %c0_51, %c0_52] : memref<9x32x32xbf16, #tpu.memory_space<vmem>>, vector<1x32x32xbf16>
    %82 = vector.shape_cast %81 : vector<1x32x32xbf16> to vector<32x32xbf16>
    %cst_53 = arith.constant dense<0.000000e+00> : vector<256x32xf32>
    %83 = tpu.matmul %80, %82, %cst_53 {dimension_numbers = #tpu.dot_dimension_numbers<[1], [0], [0], [1], [0, 0, 1, 1], [], []>} : vector<256x32xbf16>, vector<32x32xbf16>, vector<256x32xf32> -> vector<256x32xf32>
    %84 = arith.addf %77, %83 : vector<256x32xf32>
    %c48 = arith.constant 48 : index
    %c0_54 = arith.constant 0 : index
    %85 = vector.load %arg13[%c48, %c0_54] : memref<320x32xbf16, #tpu.memory_space<vmem>>, vector<256x32xbf16>
    %c7 = arith.constant 7 : index
    %c0_55 = arith.constant 0 : index
    %c0_56 = arith.constant 0 : index
    %86 = vector.load %arg3[%c7, %c0_55, %c0_56] : memref<9x32x32xbf16, #tpu.memory_space<vmem>>, vector<1x32x32xbf16>
    %87 = vector.shape_cast %86 : vector<1x32x32xbf16> to vector<32x32xbf16>
    %cst_57 = arith.constant dense<0.000000e+00> : vector<256x32xf32>
    %88 = tpu.matmul %85, %87, %cst_57 {dimension_numbers = #tpu.dot_dimension_numbers<[1], [0], [0], [1], [0, 0, 1, 1], [], []>} : vector<256x32xbf16>, vector<32x32xbf16>, vector<256x32xf32> -> vector<256x32xf32>
    %89 = arith.addf %84, %88 : vector<256x32xf32>
    %c49 = arith.constant 49 : index
    %c0_58 = arith.constant 0 : index
    %90 = vector.load %arg13[%c49, %c0_58] : memref<320x32xbf16, #tpu.memory_space<vmem>>, vector<256x32xbf16>
    %cst_59 = arith.constant 0.000000e+00 : bf16
    %91 = vector.broadcast %cst_59 : bf16 to vector<256x32xbf16>
    %92 = arith.select %40, %90, %91 : vector<256x32xi1>, vector<256x32xbf16>
    %c8 = arith.constant 8 : index
    %c0_60 = arith.constant 0 : index
    %c0_61 = arith.constant 0 : index
    %93 = vector.load %arg3[%c8, %c0_60, %c0_61] : memref<9x32x32xbf16, #tpu.memory_space<vmem>>, vector<1x32x32xbf16>
    %94 = vector.shape_cast %93 : vector<1x32x32xbf16> to vector<32x32xbf16>
    %cst_62 = arith.constant dense<0.000000e+00> : vector<256x32xf32>
    %95 = tpu.matmul %92, %94, %cst_62 {dimension_numbers = #tpu.dot_dimension_numbers<[1], [0], [0], [1], [0, 0, 1, 1], [], []>} : vector<256x32xbf16>, vector<32x32xbf16>, vector<256x32xf32> -> vector<256x32xf32>
    %96 = arith.addf %89, %95 : vector<256x32xf32>
    %c0_63 = arith.constant 0 : index
    %c0_64 = arith.constant 0 : index
    %97 = vector.load %arg7[%c0_63, %c0_64] : memref<1x32xf32, #tpu.memory_space<vmem>>, vector<1x32xf32>
    %98 = vector.broadcast %97 : vector<1x32xf32> to vector<256x32xf32>
    %99 = arith.mulf %96, %98 : vector<256x32xf32>
    %c0_65 = arith.constant 0 : index
    %c0_66 = arith.constant 0 : index
    %100 = vector.load %arg8[%c0_65, %c0_66] : memref<1x32xf32, #tpu.memory_space<vmem>>, vector<1x32xf32>
    %101 = vector.broadcast %100 : vector<1x32xf32> to vector<256x32xf32>
    %102 = arith.addf %99, %101 : vector<256x32xf32>
    %cst_67 = arith.constant 0.000000e+00 : f32
    %103 = vector.broadcast %cst_67 : f32 to vector<256x32xf32>
    %104 = arith.maximumf %102, %103 : vector<256x32xf32>
    %105 = arith.truncf %104 : vector<256x32xf32> to vector<256x32xbf16>
    %c0_68 = arith.constant 0 : index
    %c0_69 = arith.constant 0 : index
    %106 = vector.load %arg4[%c0_68, %c0_69] : memref<32x128xbf16, #tpu.memory_space<vmem>>, vector<32x128xbf16>
    %cst_70 = arith.constant dense<0.000000e+00> : vector<256x128xf32>
    %107 = tpu.matmul %105, %106, %cst_70 {dimension_numbers = #tpu.dot_dimension_numbers<[1], [0], [0], [1], [0, 0, 1, 1], [], []>} : vector<256x32xbf16>, vector<32x128xbf16>, vector<256x128xf32> -> vector<256x128xf32>
    %c0_71 = arith.constant 0 : index
    %c0_72 = arith.constant 0 : index
    %108 = vector.load %arg9[%c0_71, %c0_72] : memref<1x128xf32, #tpu.memory_space<vmem>>, vector<1x128xf32>
    %109 = vector.broadcast %108 : vector<1x128xf32> to vector<256x128xf32>
    %110 = arith.mulf %107, %109 : vector<256x128xf32>
    %c0_73 = arith.constant 0 : index
    %c0_74 = arith.constant 0 : index
    %111 = vector.load %arg10[%c0_73, %c0_74] : memref<1x128xf32, #tpu.memory_space<vmem>>, vector<1x128xf32>
    %112 = vector.broadcast %111 : vector<1x128xf32> to vector<256x128xf32>
    %113 = arith.addf %110, %112 : vector<256x128xf32>
    %114 = arith.addf %113, %14 : vector<256x128xf32>
    %c0_75 = arith.constant 0 : index
    %c0_76 = arith.constant 0 : index
    %c0_77 = arith.constant 0 : index
    %115 = vector.load %arg12[%c0_75, %c0_76, %c0_77] : memref<1x256x128xf32, #tpu.memory_space<vmem>>, vector<1x256x128xf32>
    %116 = vector.shape_cast %115 : vector<1x256x128xf32> to vector<256x128xf32>
    %117 = vector.shape_cast %114 : vector<256x128xf32> to vector<1x256x128xf32>
    tpu.vector_store %arg12[%c0_75, %c0_76, %c0_77], %117 {strides = array<i32>} : memref<1x256x128xf32, #tpu.memory_space<vmem>>, vector<1x256x128xf32>,
    %cst_78 = arith.constant 0.000000e+00 : f32
    %118 = vector.broadcast %cst_78 : f32 to vector<256x128xf32>
    %119 = arith.maximumf %114, %118 : vector<256x128xf32>
    %c0_79 = arith.constant 0 : index
    %c0_80 = arith.constant 0 : index
    %c0_81 = arith.constant 0 : index
    %120 = vector.load %arg11[%c0_79, %c0_80, %c0_81] : memref<1x256x128xf32, #tpu.memory_space<vmem>>, vector<1x256x128xf32>
    %121 = vector.shape_cast %120 : vector<1x256x128xf32> to vector<256x128xf32>
    %122 = vector.shape_cast %119 : vector<256x128xf32> to vector<1x256x128xf32>
    tpu.vector_store %arg11[%c0_79, %c0_80, %c0_81], %122 {strides = array<i32>} : memref<1x256x128xf32, #tpu.memory_space<vmem>>, vector<1x256x128xf32>,
    return
  }
  func.func @transform_0(%arg0: i32) -> (i32, i32, i32) {
    %c0_i32 = arith.constant 0 : i32
    %c0_i32_0 = arith.constant 0 : i32
    %c0_i32_1 = arith.constant 0 : i32
    return %arg0, %c0_i32, %c0_i32_0 : i32, i32, i32
  }
  func.func @transform_1(%arg0: i32) -> (i32, i32) {
    %c0_i32 = arith.constant 0 : i32
    %c0_i32_0 = arith.constant 0 : i32
    %c0_i32_1 = arith.constant 0 : i32
    return %c0_i32, %c0_i32_0 : i32, i32
  }
  func.func @transform_2(%arg0: i32) -> (i32, i32, i32) {
    %c0_i32 = arith.constant 0 : i32
    %c0_i32_0 = arith.constant 0 : i32
    %c0_i32_1 = arith.constant 0 : i32
    %c0_i32_2 = arith.constant 0 : i32
    return %c0_i32, %c0_i32_0, %c0_i32_1 : i32, i32, i32
  }
  func.func @transform_3(%arg0: i32) -> (i32, i32) {
    %c0_i32 = arith.constant 0 : i32
    %c0_i32_0 = arith.constant 0 : i32
    %c0_i32_1 = arith.constant 0 : i32
    return %c0_i32, %c0_i32_0 : i32, i32
  }
  func.func @transform_4(%arg0: i32) -> (i32, i32) {
    %c0_i32 = arith.constant 0 : i32
    %c0_i32_0 = arith.constant 0 : i32
    %c0_i32_1 = arith.constant 0 : i32
    return %c0_i32, %c0_i32_0 : i32, i32
  }
  func.func @transform_5(%arg0: i32) -> (i32, i32) {
    %c0_i32 = arith.constant 0 : i32
    %c0_i32_0 = arith.constant 0 : i32
    %c0_i32_1 = arith.constant 0 : i32
    return %c0_i32, %c0_i32_0 : i32, i32
  }
  func.func @transform_6(%arg0: i32) -> (i32, i32) {
    %c0_i32 = arith.constant 0 : i32
    %c0_i32_0 = arith.constant 0 : i32
    %c0_i32_1 = arith.constant 0 : i32
    return %c0_i32, %c0_i32_0 : i32, i32
  }
  func.func @transform_7(%arg0: i32) -> (i32, i32) {
    %c0_i32 = arith.constant 0 : i32
    %c0_i32_0 = arith.constant 0 : i32
    %c0_i32_1 = arith.constant 0 : i32
    return %c0_i32, %c0_i32_0 : i32, i32
  }
  func.func @transform_8(%arg0: i32) -> (i32, i32) {
    %c0_i32 = arith.constant 0 : i32
    %c0_i32_0 = arith.constant 0 : i32
    %c0_i32_1 = arith.constant 0 : i32
    return %c0_i32, %c0_i32_0 : i32, i32
  }
  func.func @transform_9(%arg0: i32) -> (i32, i32) {
    %c0_i32 = arith.constant 0 : i32
    %c0_i32_0 = arith.constant 0 : i32
    %c0_i32_1 = arith.constant 0 : i32
    return %c0_i32, %c0_i32_0 : i32, i32
  }
  func.func @transform_10(%arg0: i32) -> (i32, i32, i32) {
    %c0_i32 = arith.constant 0 : i32
    %c0_i32_0 = arith.constant 0 : i32
    %c0_i32_1 = arith.constant 0 : i32
    return %arg0, %c0_i32, %c0_i32_0 : i32, i32, i32
  }
  func.func @transform_11(%arg0: i32) -> (i32, i32, i32) {
    %c0_i32 = arith.constant 0 : i32
    %c0_i32_0 = arith.constant 0 : i32
    %c0_i32_1 = arith.constant 0 : i32
    return %arg0, %c0_i32, %c0_i32_0 : i32, i32, i32
  }
}

</mosaic_0001>

<bundles_post_ra>
// kernel: bottleneck_forward.1
= control target key start
LH: loop header
LB: loop body
LE: loop exit
PB: predicated region body
PF: predicated region fallthrough
CT: control target
= control target key end

     0   :  { %s9803_s0 = inlined_call_operand.vmem [shape: bf16[2,256,64], index: 0, kind: input, shape index: {}]   ;;  %s9804_s1 = inlined_call_operand.vmem [shape: bf16[64,160], index: 1, kind: input, shape index: {}]   ;;  %s9805_s2 = inlined_call_operand.vmem [shape: bf16[9,32,32], index: 2, kind: input, shape index: {}]   ;;  %s9806_s3 = inlined_call_operand.vmem [shape: bf16[32,128], index: 3, kind: input, shape index: {}]   ;;  %s9807_s4 = inlined_call_operand.vmem [shape: f32[1,160], index: 4, kind: input, shape index: {}]   ;;  %s9808_s5 = inlined_call_operand.vmem [shape: f32[1,160], index: 5, kind: input, shape index: {}]   ;;  %s9809_s6 = inlined_call_operand.vmem [shape: f32[1,32], index: 6, kind: input, shape index: {}]   ;;  %s9810_s7 = inlined_call_operand.vmem [shape: f32[1,32], index: 7, kind: input, shape index: {}]   ;;  %s9811_s8 = inlined_call_operand.vmem [shape: f32[1,128], index: 8, kind: input, shape index: {}]   ;;  %s9812_s9 = inlined_call_operand.vmem [shape: f32[1,128], index: 9, kind: input, shape index: {}]   ;;  %s9813_s10 = inlined_call_operand.hbm [shape: f32[2,256,128], index: 10, kind: output, shape index: {0}]   ;;  %s9814_s11 = inlined_call_operand.hbm [shape: f32[2,256,128], index: 11, kind: output, shape index: {1}]  }
   0x1   :  { %9882 = sst [smem:[#allocation75_spill]] %s9803_s0 }
   0x2   :  { %9883 = sst [smem:[#allocation76_spill]] %s9804_s1 }
   0x3   :  { %9884 = sst [smem:[#allocation77_spill]] %s9805_s2 }
   0x4   :  { %17 = vsyncpa [#allocation4], 0 }
   0x5   :  { %19 = vsyncpa [#allocation4 + $0x1], 0 }
   0x6   :  { %20 = vsyncpa [#allocation6], 0 }
   0x7   :  { %22 = vsyncpa [#allocation6 + $0x1], 0  ;;  %s7305_s17 = smov 0   ;;  %s7307_s18 = smov 0  }
   0x8   :  { %s7309_s19 = smov 0   ;;  %s7311_s20 = smov 0  }
   0x9 LB: > { %s7326_s21 = sadd.s32 4294967295, %s7237_s20   ;;  %s5926_s22 = sadd.s32 4294967294, %s7237_s20   ;;  %s7237_s20 = sphi %s7311_s20, %s10185_s20   ;;  %s7233_s19 = sphi %s7309_s19, %s10184_s19   ;;  %s7229_s18 = sphi %s7307_s18, %s10183_s18   ;;  %s7225_s17 = sphi %s7305_s17, %s10182_s17  }
   0xa   : > { %s7330_s23 = sadd.s32 1, %s7237_s20   ;;  %s250_s24 = sadd.s32 1, %s7233_s19 }
   0xb   : > { %s247_s25 = ssub.s32 %s7237_s20, %s7330_s23  ;;  %p260_p0 = scmp.ne.s32.totalorder %s7233_s19, %s7229_s18 }
   0xc   : > { %p248_p1 = scmp.eq.s32.totalorder %s247_s25, 0  ;;  %p261_p2 = scmp.eq.s32.totalorder %s7326_s21, 1 }
   0xd   : > { %p266_p3 = scmp.ne.s32.totalorder %s7229_s18, %s7225_s17  ;;  %p267_p4 = scmp.eq.s32.totalorder %s5926_s22, 1 }
   0xe   : > { %s7341_s26 = scalar_select %p248_p1, %s7233_s19, %s250_s24  }
   0xf   : > { %p7343_p5 = por %p261_p2, %p260_p0  ;;  %p7347_p6 = por %p267_p4, %p266_p3 }
  0x10   : > { %9885 = sst [smem:[#allocation9_spill]] %s7341_s26  ;;  %p5929_p7 = scmp.ge.s32.totalorder %s7237_s20, 1 }
  0x11   : > { %p346_p8 = scmp.lt.s32.totalorder %s7237_s20, 3 }
  0x13   : > { %p347_p9 = pnand %p5929_p7, %p346_p8 }
  0x15   : > { %350 = sbr.rel (%p347_p9) target bundleno = 1219 (0x4c3), region = 60 }
  0x1c   : > { %s9888_s1 = sld [smem:[#allocation76_spill]]  ;;  %p391_p10 = scmp.lt.s32.totalorder %s7326_s21, 1  ;;  %v9815_v2 = vmov 0   ;;  %vm564_vm0 = vcmask 523264   ;;  %vm399_vm1 = vcmask 261120   ;;  %v808_v30 = vlaneseq }
  0x1d   : > { %645 = vmatprep.mubr.bf16.mxu0 %v9815_v2  ;;  %s9889_s0 = sld [smem:[#allocation75_spill]]  ;;  %400 = vst.msk [vmem:[#allocation2] sm:$0xff] %vm399_vm1, %v9815_v2  ;;  %401 = vst.msk [vmem:[#allocation2 + $0x8] sm:$0xff] %vm399_vm1, %v9815_v2  ;;  %s9890_s2 = sld [smem:[#allocation77_spill]]  ;;  %vm7240_vm3 = vmmov 1  }
  0x1e   : > { %s392_s16 = scalar_select %p391_p10, %s7326_s21, 1  ;;  %402 = vst.msk [vmem:[#allocation2 + $0x90] sm:$0xff] %vm399_vm1, %v9815_v2  ;;  %403 = vst.msk [vmem:[#allocation2 + $0x98] sm:$0xff] %vm399_vm1, %v9815_v2  ;;  %v7456_v31 = vshrl.u32 %v808_v30, 7  ;;  %v806_v48 = vld [vmem:[%s9807_s4] sm:$0x3] }
  0x1f   : > { %vm1521_vm4 = vmpackc.low %vm7240_vm3, %vm7240_vm3  ;;  %v882_v51 = vld [vmem:[%s9808_s5] sm:$0x3]  ;;  %vm9835_vm13 = vsmask.f32 7424  ;;  %s9538_s22 = sand.u32 1, %s7229_s18   ;;  %s6231_s13 = sshll.u32 %s7326_s21, 12 }
  0x20   : > { %s6230_s30 = sshll.u32 %s392_s16, 7  ;;  %v1059_v33 = vand.u32 15, %v7456_v31  ;;  %v1025_v34 = vadd.s32 16, %v7456_v31  ;;  %v1027_v36 = vadd.s32 32, %v7456_v31  ;;  %v7469_v38 = vsel %vm1521_vm4, 65537, %v9815_v2  ;;  %s5930_s29 = sshll.u32 %s9538_s22, 8 }
  0x21   : > { %v1029_v39 = vadd.s32 48, %v7456_v31  ;;  %v1031_v45 = vadd.s32 64, %v7456_v31  ;;  %v810_v46 = vsub.s32 0, %v7456_v31  ;;  %v814_v49 = vsub.s32 1, %v7456_v31  ;;  %s9567_s12 = scalar_lea.vmem [#allocation3], %s5930_s29  ;;  %s9715_s16 = scalar_lea.hbm %s9814_s11, %s6231_s13 }
  0x22   : > { %v7077_v0 = vld [vmem:[%s9888_s1 + $0x4] ss:$8 sps:$4 sm:$0xff]   ;;  %v7079_v1 = vld [vmem:[%s9888_s1] ss:$8 sps:$4 sm:$0xff]   ;;  %v7080_v3 = vld [vmem:[%s9888_s1 + $0x14] ss:$8 sps:$4 sm:$0xff]  }
  0x23   : > { %613 = vmatprep.subr.bf16.mxu0 %v7077_v0  ;;  %v7082_v4 = vld [vmem:[%s9888_s1 + $0x10] ss:$8 sps:$4 sm:$0xff]   ;;  %v7083_v5 = vld [vmem:[%s9888_s1 + $0x24] ss:$8 sps:$4 sm:$0xff]   ;;  %s7374_s26 = scalar_lea.vmem %s9889_s0, %s6230_s30  ;;  %v7085_v6 = vld [vmem:[%s9888_s1 + $0x20] ss:$8 sps:$4 sm:$0xff]   ;;  %v7494_v56 = vrot.slane %v806_v48, %v810_v46  ;;  %v7498_v59 = vrot.slane %v806_v48, %v814_v49  ;;  %v7500_v61 = vrot.slane %v882_v51, %v810_v46 }
  0x24   : > { %614 = vmatpush1.bf16.msra.mxu0 %v7079_v1  ;;  %v7086_v7 = vld [vmem:[%s9888_s1 + $0x34] ss:$8 sps:$4 sm:$0xff]   ;;  %v7088_v8 = vld [vmem:[%s9888_s1 + $0x30] ss:$8 sps:$4 sm:$0xff]   ;;  %v7089_v9 = vld [vmem:[%s7374_s26] sm:$0xff]   ;;  %vm1439_vm2 = vcmp.ge.s32.totalorder %v1059_v33, 1  ;;  %v7504_v1 = vrot.slane %v882_v51, %v814_v49 }
  0x25   : > { %615 = vmatprep.subr.bf16.mxu0 %v7080_v3  ;;  %v7090_v10 = vld [vmem:[%s7374_s26 + $0x8] sm:$0xff]   ;;  %v7091_v11 = vld [vmem:[%s7374_s26 + $0x10] sm:$0xff]   ;;  %v7092_v12 = vld [vmem:[%s7374_s26 + $0x18] sm:$0xff]   ;;  %v1073_v35 = vand.u32 15, %v1025_v34  ;;  %v1087_v40 = vand.u32 15, %v1027_v36  ;;  %v1101_v42 = vand.u32 15, %v1029_v39 }
  0x26   : > { %v7093_v13 = vld [vmem:[%s7374_s26 + $0x20] sm:$0xff]   ;;  %v7094_v14 = vld [vmem:[%s7374_s26 + $0x28] sm:$0xff]   ;;  %v7095_v15 = vld [vmem:[%s7374_s26 + $0x30] sm:$0xff]   ;;  %v1115_v55 = vand.u32 15, %v1031_v45  ;;  %v1024_v57 = vadd.s32 8, %v7456_v31  ;;  %v1026_v58 = vadd.s32 24, %v7456_v31 }
  0x27   : > { %v7096_v16 = vld [vmem:[%s7374_s26 + $0x38] sm:$0xff]   ;;  %v7097_v17 = vld [vmem:[%s7374_s26 + $0x40] sm:$0xff]   ;;  %v7098_v18 = vld [vmem:[%s7374_s26 + $0x48] sm:$0xff]   ;;  %vm1441_vm6 = vcmp.ge.s32.totalorder %v1073_v35, 1  ;;  %vm1443_vm8 = vcmp.ge.s32.totalorder %v1087_v40, 1  ;;  %vm7476_vm10 = vcmp.ge.s32.totalorder %v1101_v42, 1 }
  0x28   : > { %616 = vmatpush1.bf16.msra.mxu0 %v7082_v4  ;;  %v7099_v19 = vld [vmem:[%s7374_s26 + $0x50] sm:$0xff]   ;;  %v7100_v20 = vld [vmem:[%s7374_s26 + $0x58] sm:$0xff]   ;;  %v7101_v21 = vld [vmem:[%s7374_s26 + $0x60] sm:$0xff]   ;;  %vm7507_vm12 = vcmp.ge.s32.totalorder %v1115_v55, 1  ;;  %s9561_s30 = scalar_lea.vmem [#allocation5], %s5930_s29  ;;  %s5816_s15 = sshll.u32 %s9567_s12, 4  ;;  %s9728_s15 = int_to_ptr.vmem [resolvable:$true] %s5816_s15 }
  0x29   : > { %617 = vmatprep.subr.bf16.mxu0 %v7083_v5  ;;  %v7105_v22 = vld [vmem:[%s9890_s2 + $0x10] sm:$0xff]   ;;  %v7106_v23 = vld [vmem:[%s9890_s2 + $0x18] sm:$0xff]   ;;  %v7102_v24 = vld [vmem:[%s7374_s26 + $0x68] sm:$0xff]   ;;  %v1033_v5 = vadd.s32 80, %v7456_v31  ;;  %s5832_s14 = sshll.u32 %s9561_s30, 4  ;;  %s9726_s29 = scalar_lea.hbm %s9813_s10, %s6231_s13  ;;  %s9717_s14 = int_to_ptr.vmem [resolvable:$true] %s5832_s14 }
  0x2a   : > { %v7103_v25 = vld [vmem:[%s7374_s26 + $0x70] sm:$0xff]   ;;  %v7108_v27 = vld [vmem:[%s9890_s2 + $0x38] sm:$0xff]   ;;  %v7451_v29 = vld [vmem:[#allocation2 + $0x8] sm:$0xff]  ;;  %s5803_s21 = scalar_lea.sflag [#allocation6], %s9538_s22  ;;  %s7143_s24 = scalar_lea.vmem %s9717_s14, 4096 }
  0x2b   : > { %v7107_v26 = vld [vmem:[%s9890_s2 + $0x30] sm:$0xff]   ;;  %v7104_v28 = vld [vmem:[%s7374_s26 + $0x78] sm:$0xff]   ;;  %v7461_v32 = vld [vmem:[%s9890_s2 + $0x40] sm:$0xff]   ;;  %p7144_p11 = scmp.ne.s32.totalorder %s9717_s14, %s7143_s24  ;;  %s7241_s0 = smov [#allocation5]  }
  0x2c   : > { %618 = vmatpush1.bf16.msra.mxu0 %v7085_v6  ;;  %6521 = vmatprep.subr.bf16.mxu1 %v7107_v26  ;;  %vm1520_vm5 = vmpackc.low %vm1439_vm2, %vm1439_vm2  ;;  %v3058_v33 = vld [vmem:[#allocation2 + $0x8] sm:$0x80]  ;;  %v7547_v35 = vld [vmem:[%s9890_s2] sm:$0xff]   ;;  %s7147_s1 = sshll.u32 %s7241_s0, 4  ;;  %s7148_s1 = int_to_ptr.vmem [resolvable:$false] %s7147_s1 }
  0x2d   : > { %619 = vmatprep.subr.bf16.mxu0 %v7086_v7  ;;  %6522 = vmatpush3.bf16.msra.mxu1 %v7107_v26  ;;  %v1552_v37 = vsel %vm1520_vm5, 65537, %v9815_v2  ;;  %vm1522_vm7 = vmpackc.low %vm1441_vm6, %vm1441_vm6  ;;  %p7145_p12 = pnand %p7144_p11, %p7343_p5  ;;  %p7150_p0 = scmp.lt.s32.totalorder %s9717_s14, %s7148_s1 }
  0x2e   : > { %6523 = vmatprep.subr.bf16.mxu1 %v7108_v27  ;;  %v5974_v41 = vcombine.low %v1552_v37, %v7469_v38  ;;  %v1554_v43 = vsel %vm1522_vm7, 65537, %v9815_v2  ;;  %vm1524_vm9 = vmpackc.low %vm1443_vm8, %vm1443_vm8 }
  0x2f   : > { %v5975_v50 = vcombine.low %v1554_v43, %v7469_v38  ;;  %v1556_v54 = vsel %vm1524_vm9, 65537, %v9815_v2  ;;  %vm1526_vm11 = vmpackc.low %vm7476_vm10, %vm7476_vm10  ;;  %p7146_p13 = pneg %p7145_p12 }
  0x30   : > { %620 = vmatpush1.bf16.msra.mxu0 %v7088_v8  ;;  %v1634_v44 = vshll.u32 %v5974_v41, 16  ;;  %v1637_v53 = vshrl.u32 %v5974_v41, 16  ;;  %v5976_v62 = vcombine.low %v1556_v54, %v7469_v38  ;;  %v1558_v63 = vsel %vm1526_vm11, 65537, %v9815_v2  ;;  %vm1528_vm14 = vmpackc.low %vm7507_vm12, %vm7507_vm12 }
  0x31   : > { %6413 = vmatprep.subr.bf16.mxu0 %v7105_v22  ;;  %6524 = vmatpush3.bf16.msra.mxu1 %v7108_v27  ;;  %v1641_v60 = vshll.u32 %v5975_v50, 16  ;;  %v1066_v8 = vand.u32 15, %v1024_v57  ;;  %v1560_v34 = vsel %vm1528_vm14, 65537, %v9815_v2  ;;  %vm2024_vm12 = vsmask.f32 256 }
  0x32   : > { %6557 = vmatprep.subr.bf16.mxu1 %v7461_v32  ;;  %v7488_v52 = vrot.slane %v1634_v44, 1  ;;  %v7568_v47 = vcombine.low %v1560_v34, %v7469_v38 }
  0x33   : > { %5958 = vmatmul.mubr.msk.bf16.vlgmr.msra.gmra.mrb[0].mxu0 %vm564_vm0, %v7089_v9  ;;  %v1080_v9 = vand.u32 15, %v1026_v58  ;;  %vm7533_vm15 = vcmp.lt.s32.totalorder %v1066_v8, 15 }
  0x34   : > { %655 = vmatprep.mubr.bf16.mxu0 %v9815_v2  ;;  %6414 = vmatpush3.bf16.msra.mxu0 %v7105_v22  ;;  %9893 = vst [vmem:[#allocation10_spill] sm:$0xff] %v7488_v52  ;;  %v1639_v3 = vor.u32 %v1637_v53, %v7488_v52  ;;  %v1129_v22 = vand.u32 15, %v1033_v5  ;;  %vm9832_vm3 = vcmp.ne.s16.totalorder %v7488_v52, 0  ;;  %vm2396_vm5 = vmpackc.low %vm7533_vm15, %vm7533_vm15 }
  0x35   : > { %6415 = vmatprep.subr.bf16.mxu0 %v7106_v23  ;;  %v3060_v46 = vsel %vm9832_vm3, %v3058_v33, 0  ;;  %v1669_v33 = vshrl.u32 %v7568_v47, 16 }
  0x36   : > { %vm7556_vm4 = vcmp.ge.s32.totalorder %v1129_v22, 1 }
  0x37   : > { %vm1530_vm6 = vmpackc.low %vm7556_vm4, %vm7556_vm4 }
  0x38   : > { %6416 = vmatpush3.bf16.msra.mxu0 %v7106_v23 }
  0x39   : > { %6449 = vmatprep.subr.bf16.mxu0 %v7547_v35 }
  0x3b   : > { %5959 = vmatmul.mubr.msk.bf16.gmra.mrb[4].mxu0 %vm564_vm0, %v7090_v10 }
  0x3c   : > { %665 = vmatprep.mubr.bf16.mxu0 %v9815_v2 }
  0x43   : > { %5960 = vmatmul.mubr.msk.bf16.gmra.mrb[8].mxu0 %vm564_vm0, %v7091_v11 }
  0x44   : > { %675 = vmatprep.mubr.bf16.mxu0 %v9815_v2 }
  0x4b   : > { %5961 = vmatmul.mubr.msk.bf16.gmra.mrb[12].mxu0 %vm564_vm0, %v7092_v12  ;;  %v1643_v12 = vrot.slane %v1641_v60, 1  ;;  %v2428_v60 = vsel %vm2396_vm5, 65537, %v9815_v2 }
  0x4c   : > { %685 = vmatprep.mubr.bf16.mxu0 %v9815_v2 }
  0x53   : > { %5962 = vmatmul.mubr.msk.bf16.gmra.mrb[16].mxu0 %vm564_vm0, %v7093_v13  ;;  %v7515_v13 = vcombine.low %v1558_v63, %v7469_v38 }
  0x54   : > { %695 = vmatprep.mubr.bf16.mxu0 %v9815_v2 }
  0x55   : > { %v1657_v30 = vshll.u32 %v7515_v13, 16  ;;  %v1661_v5 = vshrl.u32 %v7515_v13, 16  ;;  %v7614_v13 = vcombine.low %v7469_v38, %v2428_v60 }
  0x57   : > { %v1659_v53 = vrot.slane %v1657_v30, 1 }
  0x5b   : > { %5963 = vmatmul.mubr.msk.bf16.gmra.mrb[20].mxu0 %vm564_vm0, %v7094_v14 }
  0x5c   : > { %705 = vmatprep.mubr.bf16.mxu0 %v9815_v2 }
  0x63   : > { %5964 = vmatmul.mubr.msk.bf16.gmra.mrb[24].mxu0 %vm564_vm0, %v7095_v15 }
  0x64   : > { %715 = vmatprep.mubr.bf16.mxu0 %v9815_v2 }
  0x6b   : > { %5965 = vmatmul.mubr.msk.bf16.gmra.mrb[28].mxu0 %vm564_vm0, %v7096_v16 }
  0x6c   : > { %725 = vmatprep.mubr.bf16.mxu0 %v9815_v2 }
  0x73   : > { %5966 = vmatmul.mubr.msk.bf16.gmra.mrb[32].mxu0 %vm564_vm0, %v7097_v17  ;;  %v1645_v17 = vshrl.u32 %v5975_v50, 16 }
  0x74   : > { %735 = vmatprep.mubr.bf16.mxu0 %v9815_v2 }
  0x75   : > { %v1647_v36 = vor.u32 %v1645_v17, %v1643_v12 }
  0x7b   : > { %5967 = vmatmul.mubr.msk.bf16.gmra.mrb[36].mxu0 %vm564_vm0, %v7098_v18  ;;  %v1649_v18 = vshll.u32 %v5976_v62, 16 }
  0x7c   : > { %745 = vmatprep.mubr.bf16.mxu0 %v9815_v2 }
  0x7d   : > { %v1651_v37 = vrot.slane %v1649_v18, 1 }
  0x7f   : > { %v7576_v58 = vsel %vm9835_vm13, %v1647_v36, %v1651_v37  ;;  %v7112_v36 = vld [vmem:[%s9890_s2 + $0x8] sm:$0xff]  }
  0x80   : > { %vm9841_vm9 = vcmp.ne.s16.totalorder %v7576_v58, 0 }
  0x83   : > { %5968 = vmatmul.mubr.msk.bf16.gmra.mrb[40].mxu0 %vm564_vm0, %v7099_v19 }
  0x84   : > { %755 = vmatprep.mubr.bf16.mxu0 %v9815_v2 }
  0x8b   : > { %5969 = vmatmul.mubr.msk.bf16.gmra.mrb[44].mxu0 %vm564_vm0, %v7100_v20 }
  0x8c   : > { %765 = vmatprep.mubr.bf16.mxu0 %v9815_v2 }
  0x93   : > { %5970 = vmatmul.mubr.msk.bf16.gmra.mrb[48].mxu0 %vm564_vm0, %v7101_v21  ;;  %v7527_v21 = vsel %vm9835_vm13, %v1639_v3, %v1643_v12  ;;  %v3083_v3 = vshrl.u32 %v3060_v46, 16 }
  0x94   : > { %775 = vmatprep.mubr.bf16.mxu0 %v9815_v2  ;;  %9897 = vst [vmem:[#allocation12_spill] sm:$0xff] %v7527_v21  ;;  %vm9818_vm2 = vcmp.ne.s16.totalorder %v7527_v21, 0 }
  0x95   : > { %v7554_v42 = vsel %vm9818_vm2, %v7451_v29, 0 }
  0x9b   : > { %5971 = vmatmul.mubr.msk.bf16.gmra.mrb[52].mxu0 %vm564_vm0, %v7102_v24  ;;  %v1035_v24 = vadd.s32 96, %v7456_v31 }
  0x9c   : > { %785 = vmatprep.mubr.bf16.mxu0 %v9815_v2 }
  0xa3   : > { %5972 = vmatmul.mubr.msk.bf16.gmra.mrb[56].mxu0 %vm564_vm0, %v7103_v25 }
  0xa4   : > { %795 = vmatprep.mubr.bf16.mxu0 %v9815_v2 }
  0xab   : > { %5973 = vmatmul.mubr.msk.bf16.gmra.mrb[60].mxu0 %vm564_vm0, %v7104_v28  ;;  %vm7537_vm0 = vcmp.lt.s32.totalorder %v1080_v9, 15  ;;  %v1653_v28 = vshrl.u32 %v5976_v62, 16 }
  0xac   : > { %6417 = vmatprep.mubr.msk.bf16.mxu0 %vm399_vm1, %v7451_v29  ;;  %v1143_v29 = vand.u32 15, %v1035_v24  ;;  %vm2398_vm7 = vmpackc.low %vm7537_vm0, %vm7537_vm0  ;;  %v1663_v24 = vor.u32 %v1661_v5, %v1659_v53 }
  0xad   : > { %v1655_v51 = vor.u32 %v1653_v28, %v1651_v37  ;;  %v7611_v12 = vsel %vm2398_vm7, 65537, %v9815_v2 }
  0xae   : > { %vm7599_vm8 = vcmp.ge.s32.totalorder %v1143_v29, 1 }
  0xaf   : > { %v7605_v9 = vsel %vm9835_vm13, %v1655_v51, %v1659_v53  ;;  %vm1532_vm10 = vmpackc.low %vm7599_vm8, %vm7599_vm8 }
  0xb0   : > { %vm9840_vm11 = vcmp.ne.s16.totalorder %v7605_v9, 0  ;;  %v1564_v43 = vsel %vm1532_vm10, 65537, %v9815_v2 }
 0x106   : > { %v647_v0 = vpop.f32.mrb[0].mxu0 }
 0x107   : > { %v818_v6 = vmul.f32 %v7494_v56, %v647_v0  ;;  %v649_v7 = vpop.f32.mrb[1].mxu0  ;;  %v2030_v0 = vshrl.u32 %v7554_v42, 16 }
 0x108   : > { %v819_v10 = vmul.f32 %v7498_v59, %v649_v7  ;;  %v651_v11 = vpop.f32.mrb[2].mxu0 }
 0x109   : > { %v7518_v14 = vadd.f32 %v7500_v61, %v818_v6  ;;  %v820_v15 = vmul.f32 %v7494_v56, %v651_v11  ;;  %v653_v16 = vpop.f32.mrb[3].mxu0  ;;  %v1665_v6 = vshll.u32 %v7568_v47, 16  ;;  %v1037_v11 = vadd.s32 112, %v7456_v31 }
 0x10a   : > { %v895_v19 = vadd.f32 %v7504_v1, %v819_v10  ;;  %v821_v20 = vmul.f32 %v7498_v59, %v653_v16  ;;  %v1562_v10 = vsel %vm1530_vm6, 65537, %v9815_v2  ;;  %v7616_v18 = vrot.slane %v2030_v0, 7 }
 0x10b   : > { %9896 = vst [vmem:[#allocation11_spill] sm:$0xff] %v7518_v14  ;;  %v7530_v23 = vadd.f32 %v7500_v61, %v820_v15  ;;  %v1667_v25 = vrot.slane %v1665_v6, 1  ;;  %v7626_v26 = vcombine.low %v1562_v10, %v7469_v38  ;;  %v1157_v34 = vand.u32 15, %v1037_v11 }
 0x10c   : > { %v897_v27 = vadd.f32 %v7504_v1, %v821_v20  ;;  %v958_v39 = vmax.f32 %v895_v19, 0.0  ;;  %v7618_v19 = vrot.slane %v3083_v3, 7 }
 0x10d   : > { %9898 = vst [vmem:[#allocation13_spill] sm:$0xff] %v7530_v23  ;;  %v1673_v51 = vshll.u32 %v7626_v26, 16  ;;  %vm7664_vm14 = vcmp.ge.s32.totalorder %v1157_v34, 1  ;;  %v1671_v7 = vor.u32 %v1669_v33, %v1667_v25 }
 0x10e   : > { %v959_v40 = vmax.f32 %v897_v27, 0.0  ;;  %v657_v41 = vpop.f32.mrb[4].mxu0  ;;  %vm1534_vm15 = vmpackc.low %vm7664_vm14, %vm7664_vm14 }
 0x10f   : > { %v822_v44 = vmul.f32 %v7494_v56, %v657_v41  ;;  %v659_v45 = vpop.f32.mrb[5].mxu0 }
 0x110   : > { %v990_v48 = vpack.c.bf16 %v959_v40, %v958_v39  ;;  %v823_v49 = vmul.f32 %v7498_v59, %v659_v45  ;;  %v661_v50 = vpop.f32.mrb[6].mxu0 }
 0x111   : > { %v7572_v54 = vadd.f32 %v7500_v61, %v822_v44  ;;  %v824_v55 = vmul.f32 %v7494_v56, %v661_v50  ;;  %v663_v57 = vpop.f32.mrb[7].mxu0  ;;  %v1039_v44 = vadd.s32 128, %v7456_v31 }
 0x112   : > { %1006 = vst.msk [vmem:[#allocation2 + $0x10] sm:$0xff] %vm399_vm1, %v990_v48  ;;  %v899_v62 = vadd.f32 %v7504_v1, %v823_v49  ;;  %v825_v63 = vmul.f32 %v7498_v59, %v663_v57  ;;  %v7662_v57 = vcombine.low %v1564_v43, %v7469_v38 }
 0x113   : > { %9905 = vst [vmem:[#allocation14_spill] sm:$0xff] %v7572_v54  ;;  %v7595_v4 = vadd.f32 %v7500_v61, %v824_v55  ;;  %v7659_v55 = vsel %vm9835_vm13, %v1663_v24, %v1667_v25 }
 0x114   : > { %v901_v8 = vadd.f32 %v7504_v1, %v825_v63  ;;  %v960_v15 = vmax.f32 %v899_v62, 0.0  ;;  %vm9839_vm4 = vcmp.ne.s16.totalorder %v7659_v55, 0 }
 0x115   : > { %9906 = vst [vmem:[#allocation15_spill] sm:$0xff] %v7595_v4 }
 0x116   : > { %v961_v16 = vmax.f32 %v901_v8, 0.0  ;;  %v667_v17 = vpop.f32.mrb[8].mxu0  ;;  %v1171_v8 = vand.u32 15, %v1039_v44 }
 0x117   : > { %v826_v20 = vmul.f32 %v7494_v56, %v667_v17  ;;  %v669_v22 = vpop.f32.mrb[9].mxu0  ;;  %v1675_v17 = vrot.slane %v1673_v51, 1 }
 0x118   : > { %v991_v27 = vpack.c.bf16 %v961_v16, %v960_v15  ;;  %v827_v28 = vmul.f32 %v7498_v59, %v669_v22  ;;  %v671_v30 = vpop.f32.mrb[10].mxu0  ;;  %vm7698_vm0 = vcmp.ge.s32.totalorder %v1171_v8, 1 }
 0x119   : > { %v7634_v37 = vadd.f32 %v7500_v61, %v826_v20  ;;  %v828_v39 = vmul.f32 %v7494_v56, %v671_v30  ;;  %v673_v40 = vpop.f32.mrb[11].mxu0  ;;  %v1505_v41 = vld [vmem:[#allocation2 + $0x10] sm:$0xff]  ;;  %vm1536_vm5 = vmpackc.low %vm7698_vm0, %vm7698_vm0 }
 0x11a   : > { %1007 = vst.msk [vmem:[#allocation2 + $0x18] sm:$0xff] %vm399_vm1, %v991_v27  ;;  %v903_v45 = vadd.f32 %v7504_v1, %v827_v28  ;;  %v829_v46 = vmul.f32 %v7498_v59, %v673_v40  ;;  %v1779_v47 = vsel %vm9841_vm9, %v1505_v41, 0  ;;  %6418 = vmatmul.mubr.msk.bf16.vlgmr.msra.gmra.mrb[64].mxu0 %vm399_vm1, %v1505_v41  ;;  %v3061_v29 = vsel %vm9818_vm2, %v1505_v41, 0 }
 0x11b   : > { %9909 = vst [vmem:[#allocation16_spill] sm:$0xff] %v7634_v37  ;;  %v7653_v48 = vadd.f32 %v7500_v61, %v828_v39  ;;  %v2038_v49 = vshrl.u32 %v1779_v47, 16  ;;  %v3087_v50 = vshrl.u32 %v3061_v29, 16  ;;  %6450 = vmatpush3.bf16.msra.mxu0 %v7547_v35  ;;  %v2041_v63 = vshll.u32 %v1779_v47, 16 }
 0x11c   : > { %v905_v53 = vadd.f32 %v7504_v1, %v829_v46  ;;  %6451 = vmatprep.subr.bf16.mxu0 %v7112_v36  ;;  %v3090_v3 = vshll.u32 %v3061_v29, 16  ;;  %v962_v35 = vmax.f32 %v903_v45, 0.0  ;;  %v1677_v27 = vshrl.u32 %v7626_v26, 16 }
 0x11d   : > { %9910 = vst [vmem:[#allocation17_spill] sm:$0xff] %v7653_v48  ;;  %v7668_v62 = vrot.slane %v2038_v49, 7  ;;  %v7670_v0 = vrot.slane %v3087_v50, 7  ;;  %v1681_v28 = vshll.u32 %v7662_v57, 16  ;;  %v1566_v45 = vsel %vm1534_vm15, 65537, %v9815_v2 }
 0x11e   : > { %v963_v5 = vmax.f32 %v905_v53, 0.0  ;;  %v677_v6 = vpop.f32.mrb[12].mxu0  ;;  %v7716_v29 = vsel %vm9835_vm13, %v1671_v7, %v1675_v17  ;;  %v1679_v49 = vor.u32 %v1677_v27, %v1675_v17 }
 0x11f   : > { %v2043_v10 = vor.u32 %v2041_v63, %v7668_v62  ;;  %v830_v11 = vmul.f32 %v7494_v56, %v677_v6  ;;  %v679_v15 = vpop.f32.mrb[13].mxu0  ;;  %v3092_v16 = vor.u32 %v3090_v3, %v7670_v0  ;;  %6452 = vmatpush3.bf16.msra.mxu0 %v7112_v36  ;;  %v1683_v63 = vrot.slane %v1681_v28, 1 }
 0x120   : > { %v992_v20 = vpack.c.bf16 %v963_v5, %v962_v35  ;;  %v831_v22 = vmul.f32 %v7498_v59, %v679_v15  ;;  %v681_v24 = vpop.f32.mrb[14].mxu0  ;;  %v7724_v5 = vcombine.low %v1566_v45, %v7469_v38  ;;  %v1041_v6 = vadd.s32 144, %v7456_v31 }
 0x121   : > { %v3726_v25 = vld [vmem:[#allocation2 + $0x18] sm:$0xff]  ;;  %v7682_v30 = vadd.f32 %v7500_v61, %v830_v11  ;;  %v832_v33 = vmul.f32 %v7494_v56, %v681_v24  ;;  %v683_v34 = vpop.f32.mrb[15].mxu0  ;;  %v3093_v36 = vsel %vm2024_vm12, %v7618_v19, %v3092_v16  ;;  %v7689_v39 = vsel %vm2024_vm12, %v7616_v18, %v2043_v10 }
 0x122   : > { %1008 = vst.msk [vmem:[#allocation2 + $0x20] sm:$0xff] %vm399_vm1, %v992_v20  ;;  %v907_v26 = vadd.f32 %v7504_v1, %v831_v22  ;;  %v833_v40 = vmul.f32 %v7498_v59, %v683_v34  ;;  %v1780_v41 = vsel %vm9840_vm11, %v3726_v25, 0  ;;  %6421 = vmatprep.mubr.msk.bf16.mxu0 %vm399_vm1, %v3726_v25  ;;  %6525 = vmatprep.mubr.msk.bf16.mxu1 %vm399_vm1, %v3093_v36  ;;  %v3062_v47 = vsel %vm9841_vm9, %v3726_v25, 0 }
 0x123   : > { %9913 = vst [vmem:[#allocation18_spill] sm:$0xff] %v7682_v30  ;;  %v7703_v19 = vadd.f32 %v7500_v61, %v832_v33  ;;  %v2046_v44 = vshrl.u32 %v1780_v41, 16  ;;  %v2049_v51 = vshll.u32 %v1780_v41, 16  ;;  %v3095_v53 = vshrl.u32 %v3062_v47, 16 }
 0x124   : > { %v909_v46 = vadd.f32 %v7504_v1, %v833_v40  ;;  %v964_v60 = vmax.f32 %v907_v26, 0.0  ;;  %v3098_v15 = vshll.u32 %v3062_v47, 16  ;;  %vm9838_vm6 = vcmp.ne.s16.totalorder %v7716_v29, 0 }
 0x125   : > { %9916 = vst [vmem:[#allocation19_spill] sm:$0xff] %v7703_v19  ;;  %v7718_v50 = vrot.slane %v2046_v44, 7  ;;  %v3097_v11 = vrot.slane %v3095_v53, 7  ;;  %v1685_v22 = vshrl.u32 %v7662_v57, 16  ;;  %v1568_v24 = vsel %vm1536_vm5, 65537, %v9815_v2 }
 0x126   : > { %v965_v3 = vmax.f32 %v909_v46, 0.0  ;;  %v687_v35 = vpop.f32.mrb[16].mxu0  ;;  %v1185_v41 = vand.u32 15, %v1041_v6  ;;  %v1689_v45 = vshll.u32 %v7724_v5, 16  ;;  %v7763_v53 = vcombine.low %v1568_v24, %v7469_v38 }
 0x127   : > { %v2051_v7 = vor.u32 %v2049_v51, %v7718_v50  ;;  %v834_v8 = vmul.f32 %v7494_v56, %v687_v35  ;;  %v689_v10 = vpop.f32.mrb[17].mxu0  ;;  %v3100_v34 = vor.u32 %v3098_v15, %v3097_v11  ;;  %v7760_v51 = vsel %vm9835_vm13, %v1679_v49, %v1683_v63 }
 0x128   : > { %v993_v16 = vpack.c.bf16 %v965_v3, %v964_v60  ;;  %v835_v17 = vmul.f32 %v7498_v59, %v689_v10  ;;  %v691_v20 = vpop.f32.mrb[18].mxu0  ;;  %v7110_v60 = vld [vmem:[%s9890_s2 + $0x48] sm:$0xff]   ;;  %vm7775_vm7 = vcmp.ge.s32.totalorder %v1185_v41, 1  ;;  %vm9837_vm8 = vcmp.ne.s16.totalorder %v7760_v51, 0 }
 0x129   : > { %v3727_v27 = vld [vmem:[#allocation2 + $0x20] sm:$0xff]  ;;  %v7739_v28 = vadd.f32 %v7500_v61, %v834_v8  ;;  %v836_v25 = vmul.f32 %v7494_v56, %v691_v20  ;;  %v693_v33 = vpop.f32.mrb[19].mxu0  ;;  %v7744_v36 = vsel %vm2024_vm12, %v7668_v62, %v2051_v7  ;;  %v3101_v3 = vsel %vm2024_vm12, %v7670_v0, %v3100_v34  ;;  %vm1538_vm10 = vmpackc.low %vm7775_vm7, %vm7775_vm7 }
 0x12a   : > { %1009 = vst.msk [vmem:[#allocation2 + $0x28] sm:$0xff] %vm399_vm1, %v993_v16  ;;  %v3063_v57 = vsel %vm9840_vm11, %v3727_v27, 0  ;;  %v911_v26 = vadd.f32 %v7504_v1, %v835_v17  ;;  %v837_v40 = vmul.f32 %v7498_v59, %v693_v33  ;;  %6422 = vmatmul.mubr.msk.bf16.gmra.mrb[68].mxu0 %vm399_vm1, %v3727_v27  ;;  %v1781_v62 = vsel %vm9839_vm4, %v3727_v27, 0  ;;  %6526 = vmatmul.mubr.msk.bf16.vlgmr.msra.gmra.mrb[0].mxu1 %vm399_vm1, %v3101_v3 }
 0x12b   : > { %9917 = vst [vmem:[#allocation20_spill] sm:$0xff] %v7739_v28  ;;  %v3103_v43 = vshrl.u32 %v3063_v57, 16  ;;  %v7753_v44 = vadd.f32 %v7500_v61, %v836_v25  ;;  %v2054_v47 = vshrl.u32 %v1781_v62, 16  ;;  %v3106_v6 = vshll.u32 %v3063_v57, 16  ;;  %6558 = vmatpush3.bf16.msra.mxu1 %v7461_v32  ;;  %v7113_v57 = vld [vmem:[%s9890_s2 + $0x50] sm:$0xff]  }
 0x12c   : > { %v913_v46 = vadd.f32 %v7504_v1, %v837_v40  ;;  %v1687_v7 = vor.u32 %v1685_v22, %v1683_v63  ;;  %v966_v8 = vmax.f32 %v911_v26, 0.0  ;;  %v2057_v17 = vshll.u32 %v1781_v62, 16  ;;  %6559 = vmatprep.subr.bf16.mxu1 %v7110_v60 }
 0x12d   : > { %9918 = vst [vmem:[#allocation21_spill] sm:$0xff] %v7753_v44  ;;  %v7770_v35 = vrot.slane %v3103_v43, 7  ;;  %v7772_v15 = vrot.slane %v2054_v47, 7  ;;  %v1691_v27 = vrot.slane %v1689_v45, 1  ;;  %v1693_v33 = vshrl.u32 %v7724_v5, 16 }
 0x12e   : > { %v967_v10 = vmax.f32 %v913_v46, 0.0  ;;  %v697_v49 = vpop.f32.mrb[20].mxu0  ;;  %v1697_v34 = vshll.u32 %v7763_v53, 16  ;;  %v1043_v47 = vadd.s32 160, %v7456_v31 }
 0x12f   : > { %v838_v20 = vmul.f32 %v7494_v56, %v697_v49  ;;  %v699_v24 = vpop.f32.mrb[21].mxu0  ;;  %v3108_v0 = vor.u32 %v3106_v6, %v7770_v35  ;;  %v2059_v40 = vor.u32 %v2057_v17, %v7772_v15  ;;  %6560 = vmatpush3.bf16.msra.mxu1 %v7110_v60  ;;  %v1695_v17 = vor.u32 %v1693_v33, %v1691_v27 }
 0x130   : > { %v994_v63 = vpack.c.bf16 %v967_v10, %v966_v8  ;;  %v839_v22 = vmul.f32 %v7498_v59, %v699_v24  ;;  %v701_v25 = vpop.f32.mrb[22].mxu0  ;;  %v7812_v8 = vsel %vm9835_vm13, %v1687_v7, %v1691_v27  ;;  %6593 = vmatprep.subr.bf16.mxu1 %v7113_v57  ;;  %v1199_v33 = vand.u32 15, %v1043_v47 }
 0x131   : > { %v3728_v26 = vld [vmem:[#allocation2 + $0x28] sm:$0xff]  ;;  %v7791_v32 = vadd.f32 %v7500_v61, %v838_v20  ;;  %v840_v41 = vmul.f32 %v7494_v56, %v701_v25  ;;  %v703_v43 = vpop.f32.mrb[23].mxu0  ;;  %v3109_v62 = vsel %vm2024_vm12, %v3097_v11, %v3108_v0  ;;  %v1570_v20 = vsel %vm1538_vm10, 65537, %v9815_v2 }
 0x132   : > { %1010 = vst.msk [vmem:[#allocation2 + $0x30] sm:$0xff] %vm399_vm1, %v994_v63  ;;  %v3064_v5 = vsel %vm9839_vm4, %v3728_v26, 0  ;;  %v915_v45 = vadd.f32 %v7504_v1, %v839_v22  ;;  %v841_v46 = vmul.f32 %v7498_v59, %v703_v43  ;;  %6425 = vmatprep.mubr.msk.bf16.mxu0 %vm399_vm1, %v3728_v26  ;;  %6529 = vmatprep.mubr.msk.bf16.mxu1 %vm399_vm1, %v3109_v62  ;;  %v1782_v6 = vsel %vm9838_vm6, %v3728_v26, 0 }
 0x133   : > { %9921 = vst [vmem:[#allocation22_spill] sm:$0xff] %v7791_v32  ;;  %v3111_v11 = vshrl.u32 %v3064_v5, 16  ;;  %v7807_v3 = vadd.f32 %v7500_v61, %v840_v41  ;;  %v2062_v49 = vshrl.u32 %v1782_v6, 16  ;;  %v3114_v0 = vshll.u32 %v3064_v5, 16 }
 0x134   : > { %v917_v10 = vadd.f32 %v7504_v1, %v841_v46  ;;  %v1699_v63 = vrot.slane %v1697_v34, 1  ;;  %v7825_v7 = vsel %vm2024_vm12, %v7718_v50, %v2059_v40  ;;  %v968_v60 = vmax.f32 %v915_v45, 0.0 }
 0x135   : > { %9922 = vst [vmem:[#allocation23_spill] sm:$0xff] %v7807_v3  ;;  %v7821_v24 = vrot.slane %v3111_v11, 7  ;;  %v7827_v25 = vrot.slane %v2062_v49, 7  ;;  %v2065_v26 = vshll.u32 %v1782_v6, 16  ;;  %v7832_v43 = vcombine.low %v1570_v20, %v7469_v38 }
 0x136   : > { %v969_v22 = vmax.f32 %v917_v10, 0.0  ;;  %v707_v27 = vpop.f32.mrb[24].mxu0  ;;  %v1701_v40 = vshrl.u32 %v7763_v53, 16  ;;  %v1045_v5 = vadd.s32 176, %v7456_v31  ;;  %vm7851_vm14 = vcmp.ge.s32.totalorder %v1199_v33, 1 }
 0x137   : > { %v842_v16 = vmul.f32 %v7494_v56, %v707_v27  ;;  %v709_v41 = vpop.f32.mrb[25].mxu0  ;;  %v3116_v57 = vor.u32 %v3114_v0, %v7821_v24  ;;  %v2067_v46 = vor.u32 %v2065_v26, %v7827_v25  ;;  %v1705_v27 = vshll.u32 %v7832_v43, 16  ;;  %vm1540_vm0 = vmpackc.low %vm7851_vm14, %vm7851_vm14 }
 0x138   : > { %v995_v34 = vpack.c.bf16 %v969_v22, %v968_v60  ;;  %v843_v62 = vmul.f32 %v7498_v59, %v709_v41  ;;  %v711_v50 = vpop.f32.mrb[26].mxu0  ;;  %vm9836_vm15 = vcmp.ne.s16.totalorder %v7812_v8, 0  ;;  %v1213_v41 = vand.u32 15, %v1045_v5 }
 0x139   : > { %v3729_v45 = vld [vmem:[#allocation2 + $0x30] sm:$0xff]  ;;  %v7839_v47 = vadd.f32 %v7500_v61, %v842_v16  ;;  %v844_v11 = vmul.f32 %v7494_v56, %v711_v50  ;;  %v713_v6 = vpop.f32.mrb[27].mxu0  ;;  %v3117_v10 = vsel %vm2024_vm12, %v7770_v35, %v3116_v57  ;;  %v1703_v5 = vor.u32 %v1701_v40, %v1699_v63 }
 0x13a   : > { %1011 = vst.msk [vmem:[#allocation2 + $0x38] sm:$0xff] %vm399_vm1, %v995_v34  ;;  %v3065_v49 = vsel %vm9838_vm6, %v3729_v45, 0  ;;  %v919_v53 = vadd.f32 %v7504_v1, %v843_v62  ;;  %v845_v20 = vmul.f32 %v7498_v59, %v713_v6  ;;  %6426 = vmatmul.mubr.msk.bf16.gmra.mrb[72].mxu0 %vm399_vm1, %v3729_v45  ;;  %6530 = vmatmul.mubr.msk.bf16.gmra.mrb[4].mxu1 %vm399_vm1, %v3117_v10  ;;  %v1783_v22 = vsel %vm9837_vm8, %v3729_v45, 0 }
 0x13b   : > { %9923 = vst [vmem:[#allocation24_spill] sm:$0xff] %v7839_v47  ;;  %v3119_v60 = vshrl.u32 %v3065_v49, 16  ;;  %v7856_v35 = vadd.f32 %v7500_v61, %v844_v11  ;;  %v2070_v16 = vshrl.u32 %v1783_v22, 16  ;;  %v3122_v33 = vshll.u32 %v3065_v49, 16 }
 0x13c   : > { %v921_v26 = vadd.f32 %v7504_v1, %v845_v20  ;;  %v7866_v34 = vsel %vm9835_vm13, %v1695_v17, %v1699_v63  ;;  %v7873_v62 = vsel %vm2024_vm12, %v7772_v15, %v2067_v46  ;;  %v970_v50 = vmax.f32 %v919_v53, 0.0 }
 0x13d   : > { %9926 = vst [vmem:[#allocation25_spill] sm:$0xff] %v7856_v35  ;;  %v7863_v57 = vrot.slane %v3119_v60, 7  ;;  %v7875_v11 = vrot.slane %v2070_v16, 7  ;;  %v2073_v10 = vshll.u32 %v1783_v22, 16  ;;  %v7879_v60 = vrot.slane %v1705_v27, 1 }
 0x13e   : > { %v971_v45 = vmax.f32 %v921_v26, 0.0  ;;  %v717_v6 = vpop.f32.mrb[28].mxu0  ;;  %v9927_v15 = vmov 0   ;;  %vm7883_vm5 = vcmp.ge.s32.totalorder %v1213_v41, 1  ;;  %vm9834_vm10 = vcmp.ne.s16.totalorder %v7866_v34, 0 }
 0x13f   : > { %v846_v49 = vmul.f32 %v7494_v56, %v717_v6  ;;  %v719_v20 = vpop.f32.mrb[29].mxu0  ;;  %v3124_v17 = vor.u32 %v3122_v33, %v7863_v57  ;;  %v1572_v46 = vsel %vm1540_vm0, 65537, %v9927_v15  ;;  %v2075_v63 = vor.u32 %v2073_v10, %v7875_v11  ;;  %vm1542_vm7 = vmpackc.low %vm7883_vm5, %vm7883_vm5 }
 0x140   : > { %v996_v0 = vpack.c.bf16 %v971_v45, %v970_v50  ;;  %v847_v2 = vmul.f32 %v7498_v59, %v719_v20  ;;  %v721_v35 = vpop.f32.mrb[30].mxu0 }
 0x141   : > { %v3730_v26 = vld [vmem:[#allocation2 + $0x38] sm:$0xff]  ;;  %v7889_v40 = vadd.f32 %v7500_v61, %v846_v49  ;;  %v848_v22 = vmul.f32 %v7494_v56, %v721_v35  ;;  %v723_v27 = vpop.f32.mrb[31].mxu0  ;;  %v3125_v16 = vsel %vm2024_vm12, %v7821_v24, %v3124_v17  ;;  %v7903_v35 = vcombine.low %v7469_v38, %v7611_v12 }
 0x142   : > { %1012 = vst.msk [vmem:[#allocation2 + $0x40] sm:$0xff] %vm399_vm1, %v996_v0  ;;  %v3066_v41 = vsel %vm9837_vm8, %v3730_v26, 0  ;;  %v923_v33 = vadd.f32 %v7504_v1, %v847_v2  ;;  %v849_v50 = vmul.f32 %v7498_v59, %v723_v27  ;;  %6429 = vmatprep.mubr.msk.bf16.mxu0 %vm399_vm1, %v3730_v26  ;;  %6533 = vmatprep.mubr.msk.bf16.mxu1 %vm399_vm1, %v3125_v16  ;;  %v1784_v6 = vsel %vm9836_vm15, %v3730_v26, 0 }
 0x143   : > { %9930 = vst [vmem:[#allocation26_spill] sm:$0xff] %v7889_v40  ;;  %v3127_v45 = vshrl.u32 %v3066_v41, 16  ;;  %v7906_v24 = vadd.f32 %v7500_v61, %v848_v22  ;;  %v2078_v49 = vshrl.u32 %v1784_v6, 16  ;;  %v7917_v12 = vcombine.low %v1572_v46, %v7469_v38 }
 0x144   : > { %v925_v10 = vadd.f32 %v7504_v1, %v849_v50  ;;  %v3130_v17 = vshll.u32 %v3066_v41, 16  ;;  %v7923_v0 = vsel %vm9835_vm13, %v1703_v5, %v7879_v60  ;;  %v7927_v53 = vsel %vm2024_vm12, %v7827_v25, %v2075_v63 }
 0x145   : > { %9931 = vst [vmem:[#allocation27_spill] sm:$0xff] %v7906_v24  ;;  %v7919_v20 = vrot.slane %v3127_v45, 7  ;;  %9932 = vst [vmem:[#allocation28_spill] sm:$0xff] %v7923_v0  ;;  %v972_v26 = vmax.f32 %v923_v33, 0.0  ;;  %v7929_v27 = vrot.slane %v2078_v49, 7  ;;  %v1574_v50 = vsel %vm1542_vm7, 65537, %v9927_v15 }
 0x146   : > { %v973_v22 = vmax.f32 %v925_v10, 0.0  ;;  %v727_v16 = vpop.f32.mrb[32].mxu0  ;;  %v2081_v46 = vshll.u32 %v1784_v6, 16  ;;  %v1047_v5 = vadd.s32 192, %v7456_v31  ;;  %v1709_v63 = vshrl.u32 %v7832_v43, 16 }
 0x147   : > { %v850_v45 = vmul.f32 %v7494_v56, %v727_v16  ;;  %v729_v2 = vpop.f32.mrb[33].mxu0  ;;  %v3132_v41 = vor.u32 %v3130_v17, %v7919_v20  ;;  %v1713_v33 = vshll.u32 %v7917_v12, 16  ;;  %v1717_v44 = vshrl.u32 %v7917_v12, 16 }
 0x148   : > { %v997_v24 = vpack.c.bf16 %v973_v22, %v972_v26  ;;  %v851_v47 = vmul.f32 %v7498_v59, %v729_v2  ;;  %v731_v25 = vpop.f32.mrb[34].mxu0  ;;  %v2083_v49 = vor.u32 %v2081_v46, %v7929_v27  ;;  %v7957_v46 = vcombine.low %v1574_v50, %v7469_v38 }
 0x149   : > { %v7938_v10 = vld [vmem:[#allocation2 + $0x40] sm:$0xff]  ;;  %v7942_v6 = vadd.f32 %v7500_v61, %v850_v45  ;;  %v852_v16 = vmul.f32 %v7494_v56, %v731_v25  ;;  %v733_v17 = vpop.f32.mrb[35].mxu0  ;;  %v3133_v26 = vsel %vm2024_vm12, %v7863_v57, %v3132_v41  ;;  %v1227_v41 = vand.u32 15, %v1047_v5 }
 0x14a   : > { %1013 = vst.msk [vmem:[#allocation2 + $0x48] sm:$0xff] %vm399_vm1, %v997_v24  ;;  %v3067_v43 = vsel %vm9836_vm15, %v7938_v10, 0  ;;  %v927_v2 = vadd.f32 %v7504_v1, %v851_v47  ;;  %v853_v22 = vmul.f32 %v7498_v59, %v733_v17  ;;  %6430 = vmatmul.mubr.msk.bf16.gmra.mrb[76].mxu0 %vm399_vm1, %v7938_v10  ;;  %6534 = vmatmul.mubr.msk.bf16.gmra.mrb[8].mxu1 %vm399_vm1, %v3133_v26  ;;  %v7962_v57 = vld [vmem:[%s9890_s2 + $0x20] sm:$0xff]   ;;  %v1785_v47 = vsel %vm9834_vm10, %v7938_v10, 0 }
 0x14b   : > { %9933 = vst [vmem:[#allocation29_spill] sm:$0xff] %v7942_v6  ;;  %v3135_v24 = vshrl.u32 %v3067_v43, 16  ;;  %v7965_v45 = vadd.f32 %v7500_v61, %v852_v16  ;;  %v2086_v17 = vshrl.u32 %v1785_v47, 16  ;;  %v1711_v50 = vor.u32 %v1709_v63, %v7879_v60  ;;  %6485 = vmatprep.subr.bf16.mxu0 %v7962_v57 }
 0x14c   : > { %v929_v25 = vadd.f32 %v7504_v1, %v853_v22  ;;  %v1715_v26 = vrot.slane %v1713_v33, 1  ;;  %v3138_v40 = vshll.u32 %v3067_v43, 16  ;;  %v7978_v16 = vsel %vm2024_vm12, %v7875_v11, %v2083_v49 }
 0x14d   : > { %9934 = vst [vmem:[#allocation30_spill] sm:$0xff] %v7965_v45  ;;  %v7973_v6 = vrot.slane %v3135_v24, 7  ;;  %v974_v45 = vmax.f32 %v927_v2, 0.0  ;;  %v7980_v5 = vrot.slane %v2086_v17, 7  ;;  %v1721_v28 = vshll.u32 %v7957_v46, 16 }
 0x14e   : > { %v975_v3 = vmax.f32 %v929_v25, 0.0  ;;  %v737_v22 = vpop.f32.mrb[36].mxu0  ;;  %v2089_v60 = vshll.u32 %v1785_v47, 16  ;;  %vm7985_vm14 = vcmp.ge.s32.totalorder %v1227_v41, 1  ;;  %vm9820_vm0 = vcmp.ne.s16.totalorder %v7923_v0, 0 }
 0x14f   : > { %v854_v63 = vmul.f32 %v7494_v56, %v737_v22  ;;  %v739_v33 = vpop.f32.mrb[37].mxu0  ;;  %v3140_v24 = vor.u32 %v3138_v40, %v7973_v6  ;;  %v7992_v2 = vsel %vm9835_vm13, %v1711_v50, %v1715_v26  ;;  %vm1544_vm5 = vmpackc.low %vm7985_vm14, %vm7985_vm14 }
 0x150   : > { %v998_v12 = vpack.c.bf16 %v975_v3, %v974_v45  ;;  %v855_v11 = vmul.f32 %v7498_v59, %v739_v33  ;;  %v741_v49 = vpop.f32.mrb[38].mxu0  ;;  %9937 = vst [vmem:[#allocation31_spill] sm:$0xff] %v7992_v2  ;;  %v2091_v47 = vor.u32 %v2089_v60, %v7980_v5  ;;  %v1719_v60 = vor.u32 %v1717_v44, %v1715_v26 }
 0x151   : > { %v7994_v25 = vld [vmem:[#allocation2 + $0x48] sm:$0xff]  ;;  %v7998_v17 = vadd.f32 %v7500_v61, %v854_v63  ;;  %v856_v40 = vmul.f32 %v7494_v56, %v741_v49  ;;  %v743_v41 = vpop.f32.mrb[39].mxu0  ;;  %v3141_v3 = vsel %vm2024_vm12, %v7919_v20, %v3140_v24  ;;  %v1723_v24 = vrot.slane %v1721_v28, 1 }
 0x152   : > { %1014 = vst.msk [vmem:[#allocation2 + $0x50] sm:$0xff] %vm399_vm1, %v998_v12  ;;  %v3068_v45 = vsel %vm9834_vm10, %v7994_v25, 0  ;;  %v931_v50 = vadd.f32 %v7504_v1, %v855_v11  ;;  %v857_v22 = vmul.f32 %v7498_v59, %v743_v41  ;;  %6433 = vmatprep.mubr.msk.bf16.mxu0 %vm399_vm1, %v7994_v25  ;;  %6537 = vmatprep.mubr.msk.bf16.mxu1 %vm399_vm1, %v3141_v3  ;;  %v1786_v33 = vsel %vm9820_vm0, %v7994_v25, 0 }
 0x153   : > { %9938 = vst [vmem:[#allocation32_spill] sm:$0xff] %v7998_v17  ;;  %v3143_v20 = vshrl.u32 %v3068_v45, 16  ;;  %v8016_v63 = vadd.f32 %v7500_v61, %v856_v40  ;;  %v2094_v11 = vshrl.u32 %v1786_v33, 16  ;;  %v9940_v49 = vshrl.u32 %v7614_v13, 16 }
 0x154   : > { %v933_v12 = vadd.f32 %v7504_v1, %v857_v22  ;;  %v8027_v44 = vadd.s32 40, %v7456_v31  ;;  %v3146_v43 = vshll.u32 %v3068_v45, 16  ;;  %v1576_v40 = vsel %vm1544_vm5, 65537, %v9927_v15 }
 0x155   : > { %9939 = vst [vmem:[#allocation33_spill] sm:$0xff] %v8016_v63  ;;  %v8024_v41 = vrot.slane %v9940_v49, 7  ;;  %v8029_v26 = vrot.slane %v3143_v20, 7  ;;  %v8034_v3 = vsel %vm2024_vm12, %v7929_v27, %v2091_v47  ;;  %v976_v28 = vmax.f32 %v931_v50, 0.0 }
 0x156   : > { %v977_v63 = vmax.f32 %v933_v12, 0.0  ;;  %v8036_v22 = vrot.slane %v2094_v11, 7  ;;  %v747_v17 = vpop.f32.mrb[40].mxu0  ;;  %vm9819_vm7 = vcmp.ne.s16.totalorder %v7992_v2, 0  ;;  %v2097_v49 = vshll.u32 %v1786_v33, 16 }
 0x157   : > { %v858_v32 = vmul.f32 %v7494_v56, %v747_v17  ;;  %v749_v48 = vpop.f32.mrb[41].mxu0  ;;  %v3148_v20 = vor.u32 %v3146_v43, %v8029_v26  ;;  %v8042_v45 = vsel %vm9835_vm13, %v1719_v60, %v1723_v24  ;;  %v8046_v50 = vcombine.low %v1576_v40, %v7469_v38 }
 0x158   : > { %9941 = vst [vmem:[#allocation34_spill] sm:$0xff] %v8042_v45  ;;  %v999_v19 = vpack.c.bf16 %v977_v63, %v976_v28  ;;  %v859_v27 = vmul.f32 %v7498_v59, %v749_v48  ;;  %v751_v47 = vpop.f32.mrb[42].mxu0  ;;  %v1049_v12 = vadd.s32 208, %v7456_v31  ;;  %v2099_v33 = vor.u32 %v2097_v49, %v8036_v22 }
 0x159   : > { %v8049_v11 = vld [vmem:[#allocation2 + $0x50] sm:$0xff]  ;;  %v8053_v17 = vadd.f32 %v7500_v61, %v858_v32  ;;  %v860_v43 = vmul.f32 %v7494_v56, %v751_v47  ;;  %v753_v60 = vpop.f32.mrb[43].mxu0  ;;  %v3149_v63 = vsel %vm2024_vm12, %v7973_v6, %v3148_v20  ;;  %v1725_v32 = vshrl.u32 %v7957_v46, 16 }
 0x15a   : > { %1015 = vst.msk [vmem:[#allocation2 + $0x58] sm:$0xff] %vm399_vm1, %v999_v19  ;;  %v3069_v48 = vsel %vm9820_vm0, %v8049_v11, 0  ;;  %v935_v40 = vadd.f32 %v7504_v1, %v859_v27  ;;  %v861_v28 = vmul.f32 %v7498_v59, %v753_v60  ;;  %6434 = vmatmul.mubr.msk.bf16.gmra.mrb[80].mxu0 %vm399_vm1, %v8049_v11  ;;  %6538 = vmatmul.mubr.msk.bf16.gmra.mrb[12].mxu1 %vm399_vm1, %v3149_v63  ;;  %v1787_v19 = vsel %vm9819_vm7, %v8049_v11, 0 }
 0x15b   : > { %9942 = vst [vmem:[#allocation35_spill] sm:$0xff] %v8053_v17  ;;  %v3151_v49 = vshrl.u32 %v3069_v48, 16  ;;  %v8069_v6 = vadd.f32 %v7500_v61, %v860_v43  ;;  %v1094_v20 = vand.u32 15, %v8027_v44  ;;  %v2102_v47 = vshrl.u32 %v1787_v19, 16 }
 0x15c   : > { %v937_v27 = vadd.f32 %v7504_v1, %v861_v28  ;;  %v1729_v60 = vshll.u32 %v8046_v50, 16  ;;  %v1241_v17 = vand.u32 15, %v1049_v12  ;;  %vm9833_vm14 = vcmp.ne.s16.totalorder %v8042_v45, 0 }
 0x15d   : > { %9943 = vst [vmem:[#allocation36_spill] sm:$0xff] %v8069_v6  ;;  %v8078_v63 = vrot.slane %v3151_v49, 7  ;;  %v3154_v46 = vshll.u32 %v3069_v48, 16  ;;  %v8082_v43 = vsel %vm2024_vm12, %v7980_v5, %v2099_v33  ;;  %v978_v6 = vmax.f32 %v935_v40, 0.0 }
 0x15e   : > { %9944 = vst [vmem:[#allocation37_spill] sm:$0xff] %v8082_v43  ;;  %v979_v37 = vmax.f32 %v937_v27, 0.0  ;;  %v8084_v30 = vrot.slane %v2102_v47, 7  ;;  %v757_v44 = vpop.f32.mrb[44].mxu0  ;;  %v1727_v23 = vor.u32 %v1725_v32, %v1723_v24  ;;  %v2105_v28 = vshll.u32 %v1787_v19, 16 }
 0x15f   : > { %v862_v4 = vmul.f32 %v7494_v56, %v757_v44  ;;  %v759_v14 = vpop.f32.mrb[45].mxu0  ;;  %v3156_v12 = vor.u32 %v3154_v46, %v8078_v63  ;;  %v1051_v49 = vadd.s32 224, %v7456_v31  ;;  %v8090_v5 = vrot.slane %v1729_v60, 1 }
 0x160   : > { %v1000_v54 = vpack.c.bf16 %v979_v37, %v978_v6  ;;  %v863_v48 = vmul.f32 %v7498_v59, %v759_v14  ;;  %v761_v21 = vpop.f32.mrb[46].mxu0  ;;  %vm8092_vm5 = vcmp.ge.s32.totalorder %v1241_v17, 1  ;;  %v2107_v24 = vor.u32 %v2105_v28, %v8084_v30 }
 0x161   : > { %v8096_v40 = vld [vmem:[#allocation2 + $0x58] sm:$0xff]  ;;  %v8100_v32 = vadd.f32 %v7500_v61, %v862_v4  ;;  %v864_v19 = vmul.f32 %v7494_v56, %v761_v21  ;;  %v763_v27 = vpop.f32.mrb[47].mxu0  ;;  %v3157_v14 = vsel %vm2024_vm12, %v8029_v26, %v3156_v12  ;;  %vm1546_vm2 = vmpackc.low %vm8092_vm5, %vm8092_vm5  ;;  %v1255_v47 = vand.u32 15, %v1051_v49 }
 0x162   : > { %9947 = vst [vmem:[#allocation38_spill] sm:$0xff] %v8096_v40  ;;  %1016 = vst.msk [vmem:[#allocation2 + $0x60] sm:$0xff] %vm399_vm1, %v1000_v54  ;;  %v3070_v37 = vsel %vm9819_vm7, %v8096_v40, 0  ;;  %v939_v17 = vadd.f32 %v7504_v1, %v863_v48  ;;  %v865_v6 = vmul.f32 %v7498_v59, %v763_v27  ;;  %6437 = vmatprep.mubr.msk.bf16.mxu0 %vm399_vm1, %v8096_v40  ;;  %6541 = vmatprep.mubr.msk.bf16.mxu1 %vm399_vm1, %v3157_v14 }
 0x163   : > { %9948 = vst [vmem:[#allocation39_spill] sm:$0xff] %v8100_v32  ;;  %v3159_v4 = vshrl.u32 %v3070_v37, 16  ;;  %v8116_v26 = vadd.f32 %v7500_v61, %v864_v19  ;;  %v1788_v54 = vsel %vm9833_vm14, %v8096_v40, 0  ;;  %v8129_v12 = vsel %vm9835_vm13, %v1727_v23, %v8090_v5 }
 0x164   : > { %v941_v46 = vadd.f32 %v7504_v1, %v865_v6  ;;  %v2110_v44 = vshrl.u32 %v1788_v54, 16  ;;  %9950 = vst [vmem:[#allocation41_spill] sm:$0xff] %v8129_v12  ;;  %v3162_v19 = vshll.u32 %v3070_v37, 16  ;;  %v8135_v33 = vsel %vm2024_vm12, %v8036_v22, %v2107_v24 }
 0x165   : > { %9949 = vst [vmem:[#allocation40_spill] sm:$0xff] %v8116_v26  ;;  %v8131_v48 = vrot.slane %v3159_v4, 7  ;;  %9951 = vst [vmem:[#allocation42_spill] sm:$0xff] %v8135_v33  ;;  %vm8137_vm5 = vcmp.lt.s32.totalorder %v1094_v20, 15  ;;  %v980_v27 = vmax.f32 %v939_v17, 0.0  ;;  %v1578_v60 = vsel %vm1546_vm2, 65537, %v9927_v15 }
 0x166   : > { %v981_v14 = vmax.f32 %v941_v46, 0.0  ;;  %v8141_v6 = vrot.slane %v2110_v44, 7  ;;  %v767_v21 = vpop.f32.mrb[48].mxu0  ;;  %v2113_v23 = vshll.u32 %v1788_v54, 16  ;;  %vm8146_vm7 = vcmp.ge.s32.totalorder %v1255_v47, 1 }
 0x167   : > { %v866_v4 = vmul.f32 %v7494_v56, %v767_v21  ;;  %v769_v28 = vpop.f32.mrb[49].mxu0  ;;  %v3164_v37 = vor.u32 %v3162_v19, %v8131_v48  ;;  %vm9826_vm0 = vcmp.ne.s16.totalorder %v8129_v12, 0  ;;  %v1053_v46 = vadd.s32 240, %v7456_v31  ;;  %vm1548_vm2 = vmpackc.low %vm8146_vm7, %vm8146_vm7 }
 0x168   : > { %v1001_v20 = vpack.c.bf16 %v981_v14, %v980_v27  ;;  %v867_v24 = vmul.f32 %v7498_v59, %v769_v28  ;;  %v771_v17 = vpop.f32.mrb[50].mxu0  ;;  %v2115_v54 = vor.u32 %v2113_v23, %v8141_v6  ;;  %v8172_v23 = vcombine.low %v1578_v60, %v7469_v38 }
 0x169   : > { %v8153_v44 = vld [vmem:[#allocation2 + $0x60] sm:$0xff]  ;;  %v8157_v21 = vadd.f32 %v7500_v61, %v866_v4  ;;  %v868_v47 = vmul.f32 %v7494_v56, %v771_v17  ;;  %v773_v19 = vpop.f32.mrb[51].mxu0  ;;  %v3165_v27 = vsel %vm2024_vm12, %v8078_v63, %v3164_v37  ;;  %v8186_v60 = vadd.s32 56, %v7456_v31 }
 0x16a   : > { %9956 = vst [vmem:[#allocation43_spill] sm:$0xff] %v8153_v44  ;;  %1017 = vst.msk [vmem:[#allocation2 + $0x68] sm:$0xff] %vm399_vm1, %v1001_v20  ;;  %v3071_v28 = vsel %vm9833_vm14, %v8153_v44, 0  ;;  %v943_v14 = vadd.f32 %v7504_v1, %v867_v24  ;;  %v869_v26 = vmul.f32 %v7498_v59, %v773_v19  ;;  %6438 = vmatmul.mubr.msk.bf16.gmra.mrb[84].mxu0 %vm399_vm1, %v8153_v44  ;;  %6542 = vmatmul.mubr.msk.bf16.gmra.mrb[16].mxu1 %vm399_vm1, %v3165_v27 }
 0x16b   : > { %9957 = vst [vmem:[#allocation44_spill] sm:$0xff] %v8157_v21  ;;  %v3167_v63 = vshrl.u32 %v3071_v28, 16  ;;  %v8178_v4 = vadd.f32 %v7500_v61, %v868_v47  ;;  %v1789_v37 = vsel %vm9826_vm0, %v8153_v44, 0  ;;  %v1733_v20 = vshrl.u32 %v8046_v50, 16 }
 0x16c   : > { %v945_v24 = vadd.f32 %v7504_v1, %v869_v26  ;;  %v2118_v17 = vshrl.u32 %v1789_v37, 16  ;;  %v1269_v19 = vand.u32 15, %v1053_v46  ;;  %v3170_v27 = vshll.u32 %v3071_v28, 16 }
 0x16d   : > { %9958 = vst [vmem:[#allocation45_spill] sm:$0xff] %v8178_v4  ;;  %v8188_v22 = vrot.slane %v3167_v63, 7  ;;  %v1580_v21 = vsel %vm1548_vm2, 65537, %v9927_v15  ;;  %v8193_v47 = vsel %vm2024_vm12, %v8084_v30, %v2115_v54  ;;  %v982_v4 = vmax.f32 %v943_v14, 0.0  ;;  %vm2400_vm2 = vmpackc.low %vm8137_vm5, %vm8137_vm5 }
 0x16e   : > { %9959 = vst [vmem:[#allocation46_spill] sm:$0xff] %v8193_v47  ;;  %v983_v32 = vmax.f32 %v945_v24, 0.0  ;;  %v8195_v33 = vrot.slane %v2118_v17, 7  ;;  %v777_v50 = vpop.f32.mrb[52].mxu0  ;;  %v1737_v26 = vshll.u32 %v8172_v23, 16  ;;  %v2121_v46 = vshll.u32 %v1789_v37, 16 }
 0x16f   : > { %v870_v45 = vmul.f32 %v7494_v56, %v777_v50  ;;  %v779_v2 = vpop.f32.mrb[53].mxu0  ;;  %v1735_v63 = vor.u32 %v1733_v20, %v8090_v5  ;;  %v3172_v28 = vor.u32 %v3170_v27, %v8188_v22  ;;  %v8203_v54 = vcombine.low %v1580_v21, %v7469_v38 }
 0x170   : > { %9960 = vst [vmem:[#allocation47_spill] sm:$0xff] %v8195_v33  ;;  %v1002_v44 = vpack.c.bf16 %v983_v32, %v982_v4  ;;  %v871_v0 = vmul.f32 %v7498_v59, %v779_v2  ;;  %v781_v30 = vpop.f32.mrb[54].mxu0  ;;  %vm8205_vm7 = vcmp.ge.s32.totalorder %v1269_v19, 1  ;;  %v2123_v5 = vor.u32 %v2121_v46, %v8195_v33 }
 0x171   : > { %v8212_v37 = vld [vmem:[#allocation2 + $0x68] sm:$0xff]  ;;  %v8216_v32 = vadd.f32 %v7500_v61, %v870_v45  ;;  %v872_v2 = vmul.f32 %v7494_v56, %v781_v30  ;;  %v783_v4 = vpop.f32.mrb[55].mxu0  ;;  %v3173_v21 = vsel %vm2024_vm12, %v8131_v48, %v3172_v28  ;;  %v1739_v19 = vrot.slane %v1737_v26, 1 }
 0x172   : > { %1018 = vst.msk [vmem:[#allocation2 + $0x70] sm:$0xff] %vm399_vm1, %v1002_v44  ;;  %v3072_v20 = vsel %vm9826_vm0, %v8212_v37, 0  ;;  %v947_v24 = vadd.f32 %v7504_v1, %v871_v0  ;;  %v873_v17 = vmul.f32 %v7498_v59, %v783_v4  ;;  %6441 = vmatprep.mubr.msk.bf16.mxu0 %vm399_vm1, %v8212_v37  ;;  %6545 = vmatprep.mubr.msk.bf16.mxu1 %vm399_vm1, %v3173_v21  ;;  %v9965_v48 = vshrl.u32 %v7903_v35, 16  ;;  %vm1550_vm0 = vmpackc.low %vm8205_vm7, %vm8205_vm7 }
 0x173   : > { %9963 = vst [vmem:[#allocation48_spill] sm:$0xff] %v8216_v32  ;;  %v3175_v45 = vshrl.u32 %v3072_v20, 16  ;;  %v8231_v27 = vadd.f32 %v7500_v61, %v872_v2  ;;  %v8243_v0 = vsel %vm2400_vm2, 65537, %v9927_v15  ;;  %v9966_v50 = vshll.u32 %v7554_v42, 16 }
 0x174   : > { %v8235_v44 = vrot.slane %v9965_v48, 7  ;;  %v949_v46 = vadd.f32 %v7504_v1, %v873_v17  ;;  %v1741_v28 = vshrl.u32 %v8172_v23, 16  ;;  %v1745_v30 = vshll.u32 %v8203_v54, 16 }
 0x175   : > { %9964 = vst [vmem:[#allocation49_spill] sm:$0xff] %v8231_v27  ;;  %v8248_v26 = vor.u32 %v9966_v50, %v7616_v18  ;;  %v8256_v2 = vrot.slane %v3175_v45, 7  ;;  %v3178_v49 = vshll.u32 %v3072_v20, 16  ;;  %v8260_v4 = vsel %vm2024_vm12, %v8141_v6, %v2123_v5 }
 0x176   : > { %9967 = vst [vmem:[#allocation50_spill] sm:$0xff] %v8260_v4  ;;  %v1108_v42 = vand.u32 15, %v8186_v60  ;;  %v984_v18 = vmax.f32 %v947_v24, 0.0  ;;  %v985_v21 = vmax.f32 %v949_v46, 0.0  ;;  %v8264_v17 = vsel %vm9835_vm13, %v1735_v63, %v1739_v19  ;;  %v787_v23 = vpop.f32.mrb[56].mxu0 }
 0x177   : > { %v8267_v48 = vadd.s32 72, %v7456_v31  ;;  %v874_v14 = vmul.f32 %v7494_v56, %v787_v23  ;;  %v789_v45 = vpop.f32.mrb[57].mxu0  ;;  %v3180_v20 = vor.u32 %v3178_v49, %v8256_v2  ;;  %v1582_v50 = vsel %vm1550_vm0, 65537, %v9927_v15 }
 0x178   : > { %v8273_v6 = vadd.s32 88, %v7456_v31  ;;  %v1003_v60 = vpack.c.bf16 %v985_v21, %v984_v18  ;;  %v875_v5 = vmul.f32 %v7498_v59, %v789_v45  ;;  %v791_v24 = vpop.f32.mrb[58].mxu0  ;;  %v1743_v63 = vor.u32 %v1741_v28, %v1739_v19  ;;  %v1503_v21 = vld [vmem:[#allocation2] sm:$0x80] }
 0x179   : > { %v1747_v46 = vrot.slane %v1745_v30, 1  ;;  %v8276_v27 = vld [vmem:[#allocation2 + $0x70] sm:$0xff]  ;;  %vm1773_vm5 = vcmp.ne.s16.totalorder %v8264_v17, 0  ;;  %v8280_v23 = vadd.f32 %v7500_v61, %v874_v14  ;;  %v876_v49 = vmul.f32 %v7494_v56, %v791_v24  ;;  %v793_v32 = vpop.f32.mrb[59].mxu0 }
 0x17a   : > { %9968 = vst [vmem:[#allocation51_spill] sm:$0xff] %v8276_v27  ;;  %v3181_v4 = vsel %vm2024_vm12, %v8188_v22, %v3180_v20  ;;  %1019 = vst.msk [vmem:[#allocation2 + $0x78] sm:$0xff] %vm399_vm1, %v1003_v60  ;;  %v3073_v19 = vsel %vm1773_vm5, %v8276_v27, 0  ;;  %v951_v28 = vadd.f32 %v7504_v1, %v875_v5  ;;  %v877_v30 = vmul.f32 %v7498_v59, %v793_v32 }
 0x17b   : > { %9969 = vst [vmem:[#allocation52_spill] sm:$0xff] %v8280_v23  ;;  %6442 = vmatmul.mubr.msk.bf16.gmra.mrb[88].mxu0 %vm399_vm1, %v8276_v27  ;;  %6546 = vmatmul.mubr.msk.bf16.gmra.mrb[20].mxu1 %vm399_vm1, %v3181_v4  ;;  %v8295_v18 = vcombine.low %v1582_v50, %v7469_v38  ;;  %v3183_v22 = vshrl.u32 %v3073_v19, 16  ;;  %v8298_v14 = vadd.f32 %v7500_v61, %v876_v49  ;;  %vm8300_vm0 = vcmp.lt.s32.totalorder %v1108_v42, 15 }
 0x17c   : > { %v1122_v20 = vand.u32 15, %v8267_v48  ;;  %v953_v32 = vadd.f32 %v7504_v1, %v877_v30  ;;  %v8307_v60 = vsel %vm9835_vm13, %v1743_v63, %v1747_v46  ;;  %v1136_v4 = vand.u32 15, %v8273_v6  ;;  %vm2402_vm14 = vmpackc.low %vm8300_vm0, %vm8300_vm0 }
 0x17d   : > { %9970 = vst [vmem:[#allocation53_spill] sm:$0xff] %v8298_v14  ;;  %v1036_v50 = vadd.s32 104, %v7456_v31  ;;  %v1749_v5 = vshrl.u32 %v8203_v54, 16  ;;  %v3185_v24 = vrot.slane %v3183_v22, 7  ;;  %v3186_v49 = vshll.u32 %v3073_v19, 16 }
 0x17e   : > { %v1777_v42 = vsel %vm9832_vm3, %v1503_v21, 0  ;;  %v986_v14 = vmax.f32 %v951_v28, 0.0  ;;  %v987_v23 = vmax.f32 %v953_v32, 0.0  ;;  %v797_v33 = vpop.f32.mrb[60].mxu0  ;;  %v1753_v48 = vshll.u32 %v8295_v18, 16 }
 0x17f   : > { %v1038_v30 = vadd.s32 120, %v7456_v31  ;;  %vm1774_vm7 = vcmp.ne.s16.totalorder %v8307_v60, 0  ;;  %v878_v6 = vmul.f32 %v7494_v56, %v797_v33  ;;  %v799_v63 = vpop.f32.mrb[61].mxu0  ;;  %v3188_v47 = vor.u32 %v3186_v49, %v3185_v24  ;;  %v10035_v60 = vld [vmem:[#allocation42_spill] sm:$0xff] }
 0x180   : > { %v1040_v54 = vadd.s32 136, %v7456_v31  ;;  %v1004_v22 = vpack.c.bf16 %v987_v23, %v986_v14  ;;  %v879_v19 = vmul.f32 %v7498_v59, %v799_v63  ;;  %v801_v52 = vpop.f32.mrb[62].mxu0  ;;  %v2026_v21 = vshrl.u32 %v1777_v42, 16 }
 0x181   : > { %v1042_v28 = vadd.s32 152, %v7456_v31  ;;  %v8321_v32 = vld [vmem:[#allocation2 + $0x78] sm:$0xff]  ;;  %v8324_v12 = vadd.f32 %v7500_v61, %v878_v6  ;;  %v880_v40 = vmul.f32 %v7494_v56, %v801_v52  ;;  %v803_v43 = vpop.f32.mrb[63].mxu0  ;;  %v1751_v33 = vor.u32 %v1749_v5, %v1747_v46 }
 0x182   : > { %9973 = vst [vmem:[#allocation54_spill] sm:$0xff] %v8321_v32  ;;  %v3189_v49 = vsel %vm2024_vm12, %v8256_v2, %v3188_v47  ;;  %1020 = vst.msk [vmem:[#allocation2 + $0x80] sm:$0xff] %vm399_vm1, %v1004_v22  ;;  %v3074_v23 = vsel %vm1774_vm7, %v8321_v32, 0  ;;  %v955_v14 = vadd.f32 %v7504_v1, %v879_v19  ;;  %v881_v42 = vmul.f32 %v7498_v59, %v803_v43 }
 0x183   : > { %9974 = vst [vmem:[#allocation55_spill] sm:$0xff] %v8324_v12  ;;  %v1755_v63 = vrot.slane %v1753_v48, 1  ;;  %6445 = vmatprep.mubr.msk.bf16.mxu0 %vm399_vm1, %v8321_v32  ;;  %6549 = vmatprep.mubr.msk.bf16.mxu1 %vm399_vm1, %v3189_v49  ;;  %v3191_v52 = vshrl.u32 %v3074_v23, 16  ;;  %v8339_v56 = vadd.f32 %v7500_v61, %v880_v40  ;;  %vm8341_vm2 = vcmp.lt.s32.totalorder %v1122_v20, 15 }
 0x184   : > { %v1150_v2 = vand.u32 15, %v1036_v50  ;;  %v957_v46 = vadd.f32 %v7504_v1, %v881_v42  ;;  %v2028_v5 = vrot.slane %v2026_v21, 7  ;;  %vm8346_vm3 = vcmp.lt.s32.totalorder %v1136_v4, 15  ;;  %vm2404_vm0 = vmpackc.low %vm8341_vm2, %vm8341_vm2 }
 0x185   : > { %9975 = vst [vmem:[#allocation56_spill] sm:$0xff] %v8339_v56  ;;  %v1164_v43 = vand.u32 15, %v1038_v30  ;;  %v3193_v48 = vrot.slane %v3191_v52, 7  ;;  %v3194_v6 = vshll.u32 %v3074_v23, 16  ;;  %v1178_v61 = vand.u32 15, %v1040_v54 }
 0x186   : > { %v1192_v40 = vand.u32 15, %v1042_v28  ;;  %v988_v20 = vmax.f32 %v955_v14, 0.0  ;;  %v989_v22 = vmax.f32 %v957_v46, 0.0  ;;  %v8354_v50 = vsel %vm9835_vm13, %v1751_v33, %v1755_v63 }
 0x187   : > { %v1044_v1 = vadd.s32 168, %v7456_v31  ;;  %v3196_v4 = vor.u32 %v3194_v6, %v3193_v48  ;;  %v2518_v19 = vshll.u32 %v7903_v35, 16  ;;  %v8360_v30 = vcombine.low %v7469_v38, %v8243_v0 }
 0x188   : > { %vm8362_vm10 = vcmp.lt.s32.totalorder %v1150_v2, 15  ;;  %v1005_v54 = vpack.c.bf16 %v989_v22, %v988_v20  ;;  %v2036_v21 = vsel %vm2024_vm12, %v2028_v5, %v8248_v26  ;;  %v2434_v28 = vsel %vm2402_vm14, 65537, %v9927_v15  ;;  %vm2406_vm14 = vmpackc.low %vm8346_vm3, %vm8346_vm3  ;;  %v2378_v22 = vld [vmem:[#allocation2 + $0x8] sm:$0xff] }
 0x189   : > { %vm8372_vm13 = vcmp.lt.s32.totalorder %v1164_v43, 15  ;;  %v8376_v0 = vld [vmem:[#allocation2 + $0x80] sm:$0xff]  ;;  %vm1775_vm15 = vcmp.ne.s16.totalorder %v8354_v50, 0  ;;  %v1757_v33 = vshrl.u32 %v8295_v18, 16  ;;  %v3197_v49 = vsel %vm2024_vm12, %v3185_v24, %v3196_v4  ;;  %vm2408_vm6 = vmpackc.low %vm8362_vm10, %vm8362_vm10  ;;  %v10040_v50 = vld [vmem:[#allocation47_spill] sm:$0xff] }
 0x18a   : > { %9984 = vst [vmem:[#allocation57_spill] sm:$0xff] %v8376_v0  ;;  %vm8384_vm8 = vcmp.lt.s32.totalorder %v1178_v61, 15  ;;  %1021 = vst.msk [vmem:[#allocation2 + $0x88] sm:$0xff] %vm399_vm1, %v1005_v54  ;;  %v3075_v23 = vsel %vm1775_vm15, %v8376_v0, 0  ;;  %6446 = vmatmul.mubr.msk.bf16.gmra.mrb[92].mxu0 %vm399_vm1, %v8376_v0  ;;  %6550 = vmatmul.mubr.msk.bf16.gmra.mrb[24].mxu1 %vm399_vm1, %v3197_v49  ;;  %v9987_v18 = vshll.u32 %v7614_v13, 16  ;;  %vm8403_vm4 = vcmp.lt.s32.totalorder %v1192_v40, 15 }
 0x18b   : > { %v1206_v42 = vand.u32 15, %v1044_v1  ;;  %v3199_v52 = vshrl.u32 %v3075_v23, 16  ;;  %6453 = vmatprep.mubr.msk.bf16.mxu0 %vm399_vm1, %v2036_v21  ;;  %v2523_v2 = vshrl.u32 %v8360_v30, 16  ;;  %vm2410_vm11 = vmpackc.low %vm8372_vm13, %vm8372_vm13  ;;  %v2520_v13 = vor.u32 %v2518_v19, %v8235_v44 }
 0x18c   : > { %v8398_v24 = vor.u32 %v9987_v18, %v8024_v41  ;;  %v6033_v46 = vcombine.low %v7469_v38, %v2434_v28  ;;  %v2436_v5 = vsel %vm2404_vm0, 65537, %v9927_v15  ;;  %vm2412_vm9 = vmpackc.low %vm8384_vm8, %vm8384_vm8  ;;  %v8423_v43 = vor.u32 %v1757_v33, %v1755_v63 }
 0x18d   : > { %v3201_v6 = vrot.slane %v3199_v52, 7  ;;  %v3202_v61 = vshll.u32 %v3075_v23, 16  ;;  %v2438_v40 = vsel %vm2406_vm14, 65537, %v9927_v15  ;;  %vm2414_vm2 = vmpackc.low %vm8403_vm4, %vm8403_vm4  ;;  %v2526_v47 = vshll.u32 %v8360_v30, 16  ;;  %v7116_v30 = vld [vmem:[%s9890_s2 + $0x28] sm:$0xff]  }
 0x18e   : > { %9988 = vst [vmem:[#allocation58_spill] sm:$0xff] %v8398_v24  ;;  %9991 = vst [vmem:[#allocation59_spill] sm:$0xff] %v8423_v43  ;;  %vm9872_vm0 = vcmp.ne.s16.totalorder %v8398_v24, 0  ;;  %v2440_v63 = vsel %vm2408_vm6, 65537, %v9927_v15  ;;  %vm8442_vm8 = vcmp.lt.s32.totalorder %v1206_v42, 15  ;;  %v8446_v1 = vrot.slane %v2523_v2, 7 }
 0x18f   : > { %v3204_v59 = vor.u32 %v3202_v61, %v3201_v6  ;;  %v2442_v4 = vsel %vm2410_vm11, 65537, %v9927_v15  ;;  %v2444_v19 = vsel %vm2412_vm9, 65537, %v9927_v15  ;;  %v2531_v45 = vshrl.u32 %v6033_v46, 16  ;;  %vm2416_vm3 = vmpackc.low %vm8442_vm8, %vm8442_vm8  ;;  %v10018_v24 = vld [vmem:[#allocation37_spill] sm:$0xff] }
 0x190   : > { %v8459_v54 = vcombine.low %v7469_v38, %v2436_v5  ;;  %v8462_v21 = vcombine.low %v7469_v38, %v2438_v40  ;;  %v2446_v28 = vsel %vm2414_vm2, 65537, %v9927_v15  ;;  %vm1776_vm13 = vcmp.ne.s16.totalorder %v8423_v43, 0 }
 0x191   : > { %v8465_v33 = vld [vmem:[#allocation2 + $0x88] sm:$0xff]  ;;  %v3205_v35 = vsel %vm2024_vm12, %v3193_v48, %v3204_v59  ;;  %v8471_v49 = vsel %vm2024_vm12, %v8024_v41, %v2520_v13  ;;  %v6036_v26 = vcombine.low %v7469_v38, %v2440_v63  ;;  %v8485_v48 = vsel %vm9872_vm0, %v2378_v22, 0 }
 0x192   : > { %9994 = vst [vmem:[#allocation60_spill] sm:$0xff] %v8465_v33  ;;  %9995 = vst [vmem:[#allocation61_spill] sm:$0xff] %v8471_v49  ;;  %v3076_v23 = vsel %vm1776_vm13, %v8465_v33, 0  ;;  %6454 = vmatmul.mubr.msk.bf16.vlgmr.msra.gmra.mrb[64].mxu0 %vm399_vm1, %v7689_v39  ;;  %6553 = vmatprep.mubr.msk.bf16.mxu1 %vm399_vm1, %v3205_v35  ;;  %v6037_v41 = vcombine.low %v7469_v38, %v2442_v4  ;;  %v6038_v18 = vcombine.low %v7469_v38, %v2444_v19 }
 0x193   : > { %v3207_v14 = vshrl.u32 %v3076_v23, 16  ;;  %6457 = vmatprep.mubr.msk.bf16.mxu0 %vm399_vm1, %v7744_v36  ;;  %6486 = vmatpush3.bf16.msra.mxu0 %v7962_v57  ;;  %v2528_v42 = vor.u32 %v2526_v47, %v8446_v1  ;;  %v2534_v52 = vshll.u32 %v6033_v46, 16  ;;  %v6039_v39 = vcombine.low %v7469_v38, %v2446_v28 }
 0x194   : > { %6487 = vmatprep.subr.bf16.mxu0 %v7116_v30  ;;  %v2533_v2 = vrot.slane %v2531_v45, 7  ;;  %v2539_v13 = vshrl.u32 %v8459_v54, 16  ;;  %v2547_v5 = vshrl.u32 %v8462_v21, 16  ;;  %v2448_v36 = vsel %vm2416_vm3, 65537, %v9927_v15 }
 0x195   : > { %v3209_v61 = vrot.slane %v3207_v14, 7  ;;  %v3210_v57 = vshll.u32 %v3076_v23, 16  ;;  %v2555_v40 = vshrl.u32 %v6036_v26, 16  ;;  %vm9868_vm9 = vcmp.ne.s16.totalorder %v8471_v49, 0 }
 0x196   : > { %v2676_v46 = vshll.u32 %v8485_v48, 16  ;;  %v2563_v47 = vshrl.u32 %v6037_v41, 16  ;;  %v2571_v63 = vshrl.u32 %v6038_v18, 16  ;;  %v8506_v22 = vsel %vm2024_vm12, %v8235_v44, %v2528_v42 }
 0x197   : > { %v3212_v59 = vor.u32 %v3210_v57, %v3209_v61  ;;  %6488 = vmatpush3.bf16.msra.mxu0 %v7116_v30  ;;  %9996 = vst [vmem:[#allocation62_spill] sm:$0xff] %v8506_v22  ;;  %v2579_v4 = vshrl.u32 %v6039_v39, 16  ;;  %v6040_v20 = vcombine.low %v7469_v38, %v2448_v36  ;;  %v2536_v19 = vor.u32 %v2534_v52, %v2533_v2 }
 0x198   : > { %v2541_v45 = vrot.slane %v2539_v13, 7  ;;  %v2542_v28 = vshll.u32 %v8459_v54, 16  ;;  %v2549_v35 = vrot.slane %v2547_v5, 7  ;;  %v2550_v14 = vshll.u32 %v8462_v21, 16  ;;  %v7125_v54 = vld [vmem:[#allocation2 + $0x10] sm:$0xff] }
 0x199   : > { %v3213_v23 = vsel %vm2024_vm12, %v3201_v6, %v3212_v59  ;;  %v2557_v56 = vrot.slane %v2555_v40, 7  ;;  %v2558_v12 = vshll.u32 %v6036_v26, 16  ;;  %v2565_v44 = vrot.slane %v2563_v47, 7  ;;  %v3725_v5 = vld [vmem:[#allocation2 + $0x10] sm:$0xff] }
 0x19a   : > { %6458 = vmatmul.mubr.msk.bf16.gmra.mrb[68].mxu0 %vm399_vm1, %v7825_v7  ;;  %6554 = vmatmul.mubr.msk.bf16.gmra.mrb[28].mxu1 %vm399_vm1, %v3213_v23  ;;  %v2566_v30 = vshll.u32 %v6037_v41, 16  ;;  %v2573_v42 = vrot.slane %v2571_v63, 7  ;;  %v2574_v36 = vshll.u32 %v6038_v18, 16  ;;  %v8518_v6 = vrot.slane %v2579_v4, 7 }
 0x19b   : > { %6461 = vmatprep.mubr.msk.bf16.mxu0 %vm399_vm1, %v7873_v62  ;;  %6561 = vmatprep.mubr.msk.bf16.mxu1 %vm399_vm1, %v7125_v54  ;;  %v2582_v21 = vshll.u32 %v6039_v39, 16  ;;  %v2587_v52 = vshrl.u32 %v6040_v20, 16  ;;  %v8522_v26 = vsel %vm9868_vm9, %v7125_v54, 0  ;;  %v2674_v7 = vshrl.u32 %v8485_v48, 16 }
 0x19c   : > { %9997 = vst [vmem:[#allocation63_spill] sm:$0xff] %v8518_v6  ;;  %v2678_v13 = vrot.slane %v2676_v46, 1  ;;  %vm9869_vm11 = vcmp.ne.s16.totalorder %v8506_v22, 0  ;;  %v2544_v41 = vor.u32 %v2542_v28, %v2541_v45  ;;  %v2552_v18 = vor.u32 %v2550_v14, %v2549_v35  ;;  %v7114_v46 = vld [vmem:[%s9890_s2 + $0x58] sm:$0xff]   ;;  %v10038_v22 = vld [vmem:[#allocation46_spill] sm:$0xff] }
 0x19d   : > { %v8528_v62 = vsel %vm2024_vm12, %v8446_v1, %v2536_v19  ;;  %v2560_v61 = vor.u32 %v2558_v12, %v2557_v56  ;;  %v2568_v57 = vor.u32 %v2566_v30, %v2565_v44  ;;  %v2576_v39 = vor.u32 %v2574_v36, %v2573_v42  ;;  %v8588_v36 = vld [vmem:[#allocation2 + $0x20] sm:$0xff] }
 0x19e   : > { %9998 = vst [vmem:[#allocation64_spill] sm:$0xff] %v8528_v62  ;;  %v2681_v40 = vshll.u32 %v8522_v26, 16  ;;  %v2584_v47 = vor.u32 %v2582_v21, %v8518_v6  ;;  %v8532_v63 = vrot.slane %v2587_v52, 7  ;;  %v2590_v48 = vshll.u32 %v6040_v20, 16  ;;  %v8553_v20 = vld [vmem:[#allocation2 + $0x18] sm:$0xff]  ;;  %10005 = vst [vmem:[#allocation71_spill] sm:$0xff] %v8588_v36 }
 0x19f   : > { %v8539_v59 = vsel %vm9872_vm0, %v3725_v5, 0  ;;  %v1046_v1 = vadd.s32 184, %v7456_v31  ;;  %v8542_v12 = vor.u32 %v2678_v13, %v2674_v7  ;;  %vm9871_vm4 = vcmp.ne.s16.totalorder %v8528_v62, 0  ;;  %10000 = vst [vmem:[#allocation66_spill] sm:$0xff] %v8553_v20  ;;  %v8616_v5 = vld [vmem:[#allocation2 + $0x28] sm:$0xff] }
 0x1a0   : > { %9999 = vst [vmem:[#allocation65_spill] sm:$0xff] %v8532_v63  ;;  %v8546_v4 = vsel %vm2024_vm12, %v2533_v2, %v2544_v41  ;;  %v8549_v19 = vsel %vm2024_vm12, %v2541_v45, %v2552_v18  ;;  %v8560_v28 = vsel %vm9869_vm11, %v8553_v20, 0  ;;  %v8563_v23 = vsel %vm2024_vm12, %v2549_v35, %v2560_v61  ;;  %10008 = vst [vmem:[#allocation73_spill] sm:$0xff] %v8616_v5  ;;  %v10027_v62 = vld [vmem:[#allocation31_spill] sm:$0xff] }
 0x1a1   : > { %v8566_v2 = vsel %vm2024_vm12, %v2557_v56, %v2568_v57  ;;  %v8569_v45 = vsel %vm2024_vm12, %v2565_v44, %v2576_v39  ;;  %v8576_v14 = vrot.slane %v2681_v40, 1  ;;  %v8580_v35 = vsel %vm2024_vm12, %v2573_v42, %v2584_v47  ;;  %v8600_v42 = vld [vmem:[%s9890_s2 + $0x60] sm:$0xff]   ;;  %v8623_v57 = vld [vmem:[#allocation2 + $0x30] sm:$0xff]  ;;  %v8630_v40 = vld [vmem:[#allocation2 + $0x38] sm:$0xff] }
 0x1a2   : > { %6462 = vmatmul.mubr.msk.bf16.gmra.mrb[72].mxu0 %vm399_vm1, %v7927_v53  ;;  %6562 = vmatmul.mubr.msk.bf16.vlgmr.msra.gmra.mrb[0].mxu1 %vm399_vm1, %v8553_v20  ;;  %10001 = vst [vmem:[#allocation67_spill] sm:$0xff] %v8566_v2  ;;  %10002 = vst [vmem:[#allocation68_spill] sm:$0xff] %v8569_v45  ;;  %v7127_v53 = vld [vmem:[%s9890_s2 + $0x50] sm:$0xff]   ;;  %v8583_v56 = vor.u32 %v2590_v48, %v8532_v63  ;;  %v1790_v44 = vsel %vm1773_vm5, %v8212_v37, 0  ;;  %v1220_v54 = vand.u32 15, %v1046_v1  ;;  %v1048_v21 = vadd.s32 200, %v7456_v31 }
 0x1a3   : > { %6594 = vmatpush3.bf16.msra.mxu1 %v7127_v53  ;;  %6465 = vmatprep.mubr.msk.bf16.mxu0 %vm399_vm1, %v7978_v16  ;;  %10003 = vst [vmem:[#allocation69_spill] sm:$0xff] %v8580_v35  ;;  %v8595_v16 = vsel %vm9868_vm9, %v8553_v20, 0  ;;  %10006 = vst [vmem:[#allocation72_spill] sm:$0xff] %v8600_v42  ;;  %v1791_v52 = vsel %vm1774_vm7, %v8276_v27, 0  ;;  %v1792_v7 = vsel %vm1775_vm15, %v8321_v32, 0  ;;  %v1050_v41 = vadd.s32 216, %v7456_v31 }
 0x1a4   : > { %10004 = vst [vmem:[#allocation70_spill] sm:$0xff] %v8583_v56  ;;  %6565 = vmatprep.mubr.msk.bf16.mxu1 %vm399_vm1, %v8588_v36  ;;  %6595 = vmatprep.subr.bf16.mxu1 %v7114_v46  ;;  %vm10007_vm6 = vcmp.ne.s16.totalorder %v7576_v58, 0  ;;  %vm10009_vm10 = vcmp.ne.s16.totalorder %v7605_v9, 0  ;;  %vm10010_vm14 = vcmp.ne.s16.totalorder %v7659_v55, 0  ;;  %10011 = vst [vmem:[#allocation74_spill] sm:$0xff] %v8630_v40  ;;  %vm10012_vm2 = vcmp.ne.s16.totalorder %v7716_v29, 0 }
 0x1a5   : > { %v8614_v18 = vsel %vm10007_vm6, %v8588_v36, 0  ;;  %v8621_v61 = vsel %vm10009_vm10, %v8616_v5, 0  ;;  %v8628_v39 = vsel %vm10010_vm14, %v8623_v57, 0  ;;  %v8635_v58 = vsel %vm10012_vm2, %v8630_v40, 0 }
 0x1a6   : > { %vm10013_vm8 = vcmp.ne.s16.totalorder %v7760_v51, 0  ;;  %vm10014_vm3 = vcmp.ne.s16.totalorder %v7812_v8, 0  ;;  %vm10015_vm6 = vcmp.ne.s16.totalorder %v7866_v34, 0  ;;  %v2126_v48 = vshrl.u32 %v1790_v44, 16 }
 0x1a7   : > { %v8640_v9 = vsel %vm10013_vm8, %v7938_v10, 0  ;;  %v8645_v47 = vsel %vm10014_vm3, %v7994_v25, 0  ;;  %v8650_v55 = vsel %vm10015_vm6, %v8049_v11, 0  ;;  %6596 = vmatpush3.bf16.msra.mxu1 %v7114_v46  ;;  %v2134_v29 = vshrl.u32 %v1791_v52, 16 }
 0x1a8   : > { %v2142_v1 = vshrl.u32 %v1792_v7, 16  ;;  %6629 = vmatprep.subr.bf16.mxu1 %v8600_v42  ;;  %vm8653_vm10 = vcmp.lt.s32.totalorder %v1220_v54, 15  ;;  %v1234_v10 = vand.u32 15, %v1048_v21  ;;  %v8661_v25 = vsel %vm9871_vm4, %v8588_v36, 0  ;;  %v10020_v54 = vld [vmem:[#allocation28_spill] sm:$0xff]  ;;  %v10026_v42 = vld [vmem:[#allocation43_spill] sm:$0xff] }
 0x1a9   : > { %v1248_v34 = vand.u32 15, %v1050_v41  ;;  %v1052_v53 = vadd.s32 232, %v7456_v31  ;;  %v4194_v46 = vshrl.u32 %v8621_v61, 16  ;;  %v1054_v21 = vadd.s32 248, %v7456_v31  ;;  %vm2418_vm14 = vmpackc.low %vm8653_vm10, %vm8653_vm10  ;;  %v8762_v36 = vld [vmem:[#allocation2 + $0x40] sm:$0xff] }
 0x1aa   : > { %6466 = vmatmul.mubr.msk.bf16.gmra.mrb[76].mxu0 %vm399_vm1, %v8034_v3  ;;  %6566 = vmatmul.mubr.msk.bf16.gmra.mrb[4].mxu1 %vm399_vm1, %v8616_v5  ;;  %v2128_v49 = vrot.slane %v2126_v48, 7  ;;  %v10019_v3 = vld [vmem:[#allocation38_spill] sm:$0xff]  ;;  %vm10021_vm2 = vcmp.ne.s16.totalorder %v10020_v54, 0  ;;  %v2136_v30 = vrot.slane %v2134_v29, 7  ;;  %v8687_v41 = vrot.slane %v2142_v1, 7  ;;  %10039 = vst [vmem:[#allocation37_spill] sm:$0xff] %v8762_v36 }
 0x1ab   : > { %6469 = vmatprep.mubr.msk.bf16.mxu0 %vm399_vm1, %v10018_v24  ;;  %6569 = vmatprep.mubr.msk.bf16.mxu1 %vm399_vm1, %v8623_v57  ;;  %v8685_v31 = vsel %vm10021_vm2, %v10019_v3, 0  ;;  %vm8689_vm8 = vcmp.lt.s32.totalorder %v1234_v10, 15  ;;  %v2129_v24 = vshll.u32 %v1790_v44, 16  ;;  %v2137_v8 = vshll.u32 %v1791_v52, 16  ;;  %v10029_v52 = vld [vmem:[#allocation34_spill] sm:$0xff] }
 0x1ac   : > { %vm8693_vm3 = vcmp.lt.s32.totalorder %v1248_v34, 15  ;;  %v1262_v51 = vand.u32 15, %v1052_v53  ;;  %v2145_v20 = vshll.u32 %v1792_v7, 16  ;;  %v8700_v54 = vsel %vm1776_vm13, %v8376_v0, 0  ;;  %vm2420_vm2 = vmpackc.low %vm8689_vm8, %vm8689_vm8  ;;  %v10031_v53 = vld [vmem:[#allocation41_spill] sm:$0xff] }
 0x1ad   : > { %v2450_v29 = vsel %vm2418_vm14, 65537, %v9927_v15  ;;  %v1276_v1 = vand.u32 15, %v1054_v21  ;;  %vm10028_vm6 = vcmp.ne.s16.totalorder %v10027_v62, 0  ;;  %vm10030_vm10 = vcmp.ne.s16.totalorder %v10029_v52, 0 }
 0x1ae   : > { %v8707_v44 = vsel %vm10028_vm6, %v10026_v42, 0  ;;  %v8712_v34 = vsel %vm10030_vm10, %v8212_v37, 0  ;;  %v2131_v7 = vor.u32 %v2129_v24, %v2128_v49  ;;  %vm10032_vm14 = vcmp.ne.s16.totalorder %v10031_v53, 0  ;;  %vm2422_vm6 = vmpackc.low %vm8693_vm3, %vm8693_vm3 }
 0x1af   : > { %v8720_v21 = vsel %vm10032_vm14, %v8276_v27, 0  ;;  %v8725_v62 = vsel %vm1773_vm5, %v8321_v32, 0  ;;  %v2139_v10 = vor.u32 %v2137_v8, %v2136_v30  ;;  %v2147_v52 = vor.u32 %v2145_v20, %v8687_v41 }
 0x1b0   : > { %v8734_v24 = vsel %vm1774_vm7, %v8376_v0, 0  ;;  %v2150_v53 = vshrl.u32 %v8700_v54, 16  ;;  %v8738_v43 = vcombine.low %v7469_v38, %v2450_v29  ;;  %vm8740_vm10 = vcmp.lt.s32.totalorder %v1262_v51, 15 }
 0x1b1   : > { %v4250_v20 = vshrl.u32 %v8707_v44, 16  ;;  %v4258_v8 = vshrl.u32 %v8712_v34, 16  ;;  %v8749_v35 = vsel %vm1775_vm15, %v8465_v33, 0  ;;  %vm8755_vm5 = vcmp.lt.s32.totalorder %v1276_v1, 15  ;;  %vm2424_vm15 = vmpackc.low %vm8740_vm10, %vm8740_vm10 }
 0x1b2   : > { %6470 = vmatmul.mubr.msk.bf16.gmra.mrb[80].mxu0 %vm399_vm1, %v10035_v60  ;;  %6570 = vmatmul.mubr.msk.bf16.gmra.mrb[8].mxu1 %vm399_vm1, %v8630_v40  ;;  %v4266_v29 = vshrl.u32 %v8720_v21, 16  ;;  %v2132_v60 = vsel %vm2024_vm12, %v10040_v50, %v2131_v7  ;;  %v2452_v1 = vsel %vm2420_vm2, 65537, %v9927_v15  ;;  %v4274_v33 = vshrl.u32 %v8725_v62, 16  ;;  %vm2426_vm7 = vmpackc.low %vm8755_vm5, %vm8755_vm5 }
 0x1b3   : > { %6473 = vmatprep.mubr.msk.bf16.mxu0 %vm399_vm1, %v10038_v22  ;;  %6573 = vmatprep.mubr.msk.bf16.mxu1 %vm399_vm1, %v8762_v36  ;;  %v2454_v22 = vsel %vm2422_vm6, 65537, %v9927_v15  ;;  %v4282_v36 = vshrl.u32 %v8734_v24, 16  ;;  %v8783_v7 = vsel %vm2024_vm12, %v2128_v49, %v2139_v10  ;;  %v8786_v50 = vsel %vm2024_vm12, %v2136_v30, %v2147_v52 }
 0x1b4   : > { %v4290_v48 = vshrl.u32 %v8749_v35, 16  ;;  %v8792_v0 = vrot.slane %v2150_v53, 7  ;;  %v4196_v45 = vrot.slane %v4194_v46, 7  ;;  %v8799_v49 = vcombine.low %v7469_v38, %v2452_v1 }
 0x1b5   : > { %v8802_v30 = vcombine.low %v7469_v38, %v2454_v22  ;;  %v4197_v10 = vshll.u32 %v8621_v61, 16  ;;  %v10041_v52 = vshrl.u32 %v8628_v39, 16  ;;  %v2456_v53 = vsel %vm2424_vm15, 65537, %v9927_v15 }
 0x1b6   : > { %v4205_v13 = vshll.u32 %v8628_v39, 16  ;;  %v10042_v51 = vshrl.u32 %v8635_v58, 16  ;;  %v4213_v46 = vshll.u32 %v8635_v58, 16  ;;  %v2458_v1 = vsel %vm2426_vm7, 65537, %v9927_v15  ;;  %v8824_v58 = vld [vmem:[#allocation2 + $0x48] sm:$0xff] }
 0x1b7   : > { %v4204_v17 = vrot.slane %v10041_v52, 7  ;;  %v10043_v40 = vshrl.u32 %v8614_v18, 16  ;;  %v4199_v63 = vor.u32 %v4197_v10, %v4196_v45  ;;  %v10045_v61 = vshrl.u32 %v8640_v9, 16 }
 0x1b8   : > { %v4212_v32 = vrot.slane %v10042_v51, 7  ;;  %v4221_v27 = vshll.u32 %v8640_v9, 16  ;;  %v10046_v39 = vshrl.u32 %v8645_v47, 16  ;;  %v10047_v51 = vld [vmem:[#allocation50_spill] sm:$0xff]  ;;  %vm9873_vm8 = vcmp.ne.s16.totalorder %v8546_v4, 0 }
 0x1b9   : > { %v8815_v22 = vrot.slane %v10043_v40, 7  ;;  %v4220_v6 = vrot.slane %v10045_v61, 7  ;;  %v4207_v52 = vor.u32 %v4205_v13, %v4204_v17  ;;  %v4229_v40 = vshll.u32 %v8645_v47, 16 }
 0x1ba   : > { %v4215_v56 = vor.u32 %v4213_v46, %v4212_v32  ;;  %v4228_v2 = vrot.slane %v10046_v39, 7  ;;  %6474 = vmatmul.mubr.msk.bf16.gmra.mrb[84].mxu0 %vm399_vm1, %v10047_v51  ;;  %6574 = vmatmul.mubr.msk.bf16.gmra.mrb[12].mxu1 %vm399_vm1, %v8824_v58  ;;  %v10049_v9 = vshrl.u32 %v8650_v55, 16  ;;  %v4237_v10 = vshll.u32 %v8650_v55, 16 }
 0x1bb   : > { %10044 = vst [vmem:[#allocation38_spill] sm:$0xff] %v8815_v22  ;;  %v8831_v15 = vsel %vm2024_vm12, %v8815_v22, %v4199_v63  ;;  %6477 = vmatprep.mubr.msk.bf16.mxu0 %vm399_vm1, %v2132_v60  ;;  %6577 = vmatprep.mubr.msk.bf16.mxu1 %vm399_vm1, %v8049_v11  ;;  %v8841_v46 = vsel %vm2024_vm12, %v4196_v45, %v4207_v52  ;;  %v10050_v39 = vshrl.u32 %v8685_v31, 16  ;;  %v4252_v55 = vrot.slane %v4250_v20, 7 }
 0x1bc   : > { %10048 = vst [vmem:[#allocation28_spill] sm:$0xff] %v8831_v15  ;;  %v4236_v13 = vrot.slane %v10049_v9, 7  ;;  %v8844_v61 = vsel %vm2024_vm12, %v4204_v17, %v4215_v56  ;;  %v4223_v63 = vor.u32 %v4221_v27, %v4220_v6  ;;  %v4231_v51 = vor.u32 %v4229_v40, %v4228_v2 }
 0x1bd   : > { %v4244_v47 = vrot.slane %v10050_v39, 7  ;;  %v4245_v9 = vshll.u32 %v8685_v31, 16  ;;  %v4253_v11 = vshll.u32 %v8707_v44, 16  ;;  %v4260_v22 = vrot.slane %v4258_v8, 7 }
 0x1be   : > { %v4239_v15 = vor.u32 %v4237_v10, %v4236_v13  ;;  %v8850_v60 = vsel %vm2024_vm12, %v4212_v32, %v4223_v63  ;;  %v4261_v45 = vshll.u32 %v8712_v34, 16  ;;  %vm9874_vm3 = vcmp.ne.s16.totalorder %v8549_v19, 0 }
 0x1bf   : > { %v8856_v27 = vsel %vm2024_vm12, %v4220_v6, %v4231_v51  ;;  %v4247_v17 = vor.u32 %v4245_v9, %v4244_v47  ;;  %v4268_v52 = vrot.slane %v4266_v29, 7  ;;  %v4255_v31 = vor.u32 %v4253_v11, %v4252_v55 }
 0x1c0   : > { %v8859_v56 = vsel %vm2024_vm12, %v4228_v2, %v4239_v15  ;;  %v4263_v20 = vor.u32 %v4261_v45, %v4260_v22  ;;  %v4269_v32 = vshll.u32 %v8720_v21, 16  ;;  %v4276_v40 = vrot.slane %v4274_v33, 7 }
 0x1c1   : > { %v8863_v44 = vsel %vm2024_vm12, %v4236_v13, %v4247_v17  ;;  %v4277_v34 = vshll.u32 %v8725_v62, 16  ;;  %v4284_v8 = vrot.slane %v4282_v36, 7  ;;  %v4285_v10 = vshll.u32 %v8734_v24, 16 }
 0x1c2   : > { %v8868_v6 = vsel %vm2024_vm12, %v4244_v47, %v4255_v31  ;;  %v8871_v2 = vsel %vm2024_vm12, %v4252_v55, %v4263_v20  ;;  %v4271_v29 = vor.u32 %v4269_v32, %v4268_v52  ;;  %v8873_v15 = vrot.slane %v4290_v48, 7  ;;  %6478 = vmatmul.mubr.msk.bf16.gmra.mrb[88].mxu0 %vm399_vm1, %v8783_v7  ;;  %6578 = vmatmul.mubr.msk.bf16.gmra.mrb[16].mxu1 %vm399_vm1, %v10019_v3 }
 0x1c3   : > { %v2603_v33 = vshrl.u32 %v8799_v49, 16  ;;  %v4279_v36 = vor.u32 %v4277_v34, %v4276_v40  ;;  %v4287_v21 = vor.u32 %v4285_v10, %v4284_v8  ;;  %v4293_v62 = vshll.u32 %v8749_v35, 16  ;;  %6481 = vmatprep.mubr.msk.bf16.mxu0 %vm399_vm1, %v8786_v50  ;;  %6581 = vmatprep.mubr.msk.bf16.mxu1 %vm399_vm1, %v10026_v42  ;;  %v10055_v34 = vld [vmem:[#allocation67_spill] sm:$0xff] }
 0x1c4   : > { %v2153_v24 = vshll.u32 %v8700_v54, 16  ;;  %v6044_v48 = vcombine.low %v7469_v38, %v2456_v53  ;;  %v6045_v7 = vcombine.low %v7469_v38, %v2458_v1  ;;  %v8889_v3 = vsel %vm2024_vm12, %v4260_v22, %v4271_v29  ;;  %v10056_v10 = vld [vmem:[#allocation51_spill] sm:$0xff] }
 0x1c5   : > { %v2697_v13 = vshll.u32 %v8661_v25, 16  ;;  %v8893_v63 = vsel %vm2024_vm12, %v4268_v52, %v4279_v36  ;;  %v8896_v35 = vsel %vm2024_vm12, %v4276_v40, %v4287_v21  ;;  %v4295_v54 = vor.u32 %v4293_v62, %v8873_v15 }
 0x1c6   : > { %v2155_v50 = vor.u32 %v2153_v24, %v8792_v0  ;;  %v2655_v42 = vsel %vm9873_vm8, %v8616_v5, 0  ;;  %v2598_v38 = vshll.u32 %v8738_v43, 16  ;;  %v2611_v53 = vshrl.u32 %v8802_v30, 16 }
 0x1c7   : > { %vm9877_vm2 = vcmp.ne.s16.totalorder %v8563_v23, 0  ;;  %v10051_v1 = vshrl.u32 %v8738_v43, 16  ;;  %v2605_v39 = vrot.slane %v2603_v33, 7  ;;  %v2606_v47 = vshll.u32 %v8799_v49, 16 }
 0x1c8   : > { %v8910_v51 = vsel %vm2024_vm12, %v4284_v8, %v4295_v54  ;;  %v2685_v0 = vshrl.u32 %v8522_v26, 16  ;;  %v3765_v9 = vshrl.u32 %v8539_v59, 16  ;;  %v2619_v55 = vshrl.u32 %v6044_v48, 16 }
 0x1c9   : > { %v2597_v22 = vrot.slane %v10051_v1, 7  ;;  %v2627_v11 = vshrl.u32 %v6045_v7, 16  ;;  %vm10052_vm14 = vsmask.f32 7424  ;;  %v2705_v17 = vshll.u32 %v2655_v42, 16 }
 0x1ca   : > { %v2684_v45 = vsel %vm10052_vm14, %v8542_v12, %v8576_v14  ;;  %v10053_v43 = vshll.u32 %v8539_v59, 16  ;;  %v3772_v31 = vshll.u32 %v8595_v16, 16  ;;  %v2156_v49 = vsel %vm2024_vm12, %v8687_v41, %v2155_v50  ;;  %6582 = vmatmul.mubr.msk.bf16.gmra.mrb[20].mxu1 %vm399_vm1, %v8212_v37  ;;  %v10057_v50 = vld [vmem:[#allocation70_spill] sm:$0xff]  ;;  %vm10060_vm10 = vmmov %vm10052_vm14 }
 0x1cb   : > { %v8925_v26 = vsel %vm9874_vm3, %v8623_v57, 0  ;;  %v2613_v20 = vrot.slane %v2611_v53, 7  ;;  %v2614_v32 = vshll.u32 %v8802_v30, 16  ;;  %6482 = vmatmul.mubr.msk.bf16.gmra.mrb[92].mxu0 %vm399_vm1, %v2156_v49  ;;  %v10054_v59 = vshll.u32 %v8560_v28, 16  ;;  %6585 = vmatprep.mubr.msk.bf16.mxu1 %vm399_vm1, %v10056_v10  ;;  %vm10062_vm5 = vmmov %vm10060_vm10  ;;  %v4827_v49 = vld [vmem:[#allocation2 + $0x70] sm:$0xff]  ;;  %v10068_v10 = vld [vmem:[#allocation57_spill] sm:$0xff] }
 0x1cc   : > { %v3769_v52 = vrot.slane %v10053_v43, 1  ;;  %v2699_v40 = vrot.slane %v2697_v13, 1  ;;  %vm2641_vm6 = vcmp.ne.s16.totalorder %v10055_v34, 0  ;;  %v2600_v41 = vor.u32 %v2598_v38, %v2597_v22  ;;  %6489 = vmatprep.mubr.msk.bf16.mxu0 %vm399_vm1, %v2684_v45  ;;  %v10058_v38 = vld [vmem:[#allocation63_spill] sm:$0xff]  ;;  %vm10063_vm15 = vmmov %vm10062_vm5 }
 0x1cd   : > { %v2691_v12 = vrot.slane %v10054_v59, 1  ;;  %v2608_v8 = vor.u32 %v2606_v47, %v2605_v39  ;;  %v2621_v29 = vrot.slane %v2619_v55, 7  ;;  %v2622_v30 = vshll.u32 %v6044_v48, 16  ;;  %vm10064_vm7 = vmmov %vm10062_vm5  ;;  %v10065_v59 = vld [vmem:[#allocation74_spill] sm:$0xff] }
 0x1ce   : > { %v8937_v33 = vrot.slane %v2627_v11, 7  ;;  %v2630_v36 = vshll.u32 %v6045_v7, 16  ;;  %v2687_v37 = vor.u32 %v2685_v0, %v8576_v14  ;;  %v2693_v21 = vshrl.u32 %v8560_v28, 16  ;;  %v10061_v14 = vld [vmem:[#allocation65_spill] sm:$0xff] }
 0x1cf   : > { %v2701_v62 = vshrl.u32 %v8661_v25, 16  ;;  %v2713_v24 = vshll.u32 %v8925_v26, 16  ;;  %v2707_v13 = vrot.slane %v2705_v17, 1  ;;  %v3774_v54 = vrot.slane %v3772_v31, 1 }
 0x1d0   : > { %v8946_v53 = vsel %vm2024_vm12, %v10058_v38, %v10057_v50  ;;  %v2616_v1 = vor.u32 %v2614_v32, %v2613_v20  ;;  %v2692_v48 = vsel %vm10060_vm10, %v2687_v37, %v2691_v12  ;;  %v2695_v47 = vor.u32 %v2693_v21, %v2691_v12  ;;  %v4828_v32 = vld [vmem:[#allocation2 + $0x78] sm:$0xff] }
 0x1d1   : > { %10059 = vst [vmem:[#allocation43_spill] sm:$0xff] %v8946_v53  ;;  %v2703_v7 = vor.u32 %v2701_v62, %v2699_v40  ;;  %v3770_v55 = vor.u32 %v3769_v52, %v3765_v9  ;;  %v8951_v28 = vsel %vm2024_vm12, %v10061_v14, %v2600_v41  ;;  %v8954_v25 = vsel %vm2024_vm12, %v2597_v22, %v2608_v8  ;;  %v10067_v41 = vld [vmem:[#allocation68_spill] sm:$0xff]  ;;  %v4829_v8 = vld [vmem:[#allocation2 + $0x80] sm:$0xff]  ;;  %v10073_v50 = vld [vmem:[#allocation37_spill] sm:$0xff] }
 0x1d2   : > { %v2624_v0 = vor.u32 %v2622_v30, %v2621_v29  ;;  %v2632_v11 = vor.u32 %v2630_v36, %v8937_v33  ;;  %v2700_v45 = vsel %vm10062_vm5, %v2695_v47, %v2699_v40  ;;  %v2709_v17 = vshrl.u32 %v2655_v42, 16  ;;  %v10066_v42 = vld [vmem:[#allocation54_spill] sm:$0xff] }
 0x1d3   : > { %v8958_v43 = vrot.slane %v2713_v24, 1  ;;  %v3776_v31 = vshrl.u32 %v8595_v16, 16  ;;  %v2708_v9 = vsel %vm10063_vm15, %v2703_v7, %v2707_v13  ;;  %v3775_v52 = vsel %vm10064_vm7, %v3770_v55, %v3774_v54  ;;  %6490 = vmatmul.mubr.msk.bf16.vlgmr.msra.gmra.mrb[64].mxu0 %vm399_vm1, %v2692_v48  ;;  %6586 = vmatmul.mubr.msk.bf16.gmra.mrb[24].mxu1 %vm399_vm1, %v10066_v42  ;;  %vm10069_vm15 = vmmov %vm10064_vm7  ;;  %v10070_v24 = vld [vmem:[#allocation71_spill] sm:$0xff]  ;;  %v4831_v7 = vld [vmem:[#allocation2 + $0x90] sm:$0xff] }
 0x1d4   : > { %v8966_v22 = vsel %vm9877_vm2, %v10065_v59, 0  ;;  %v8969_v12 = vsel %vm2024_vm12, %v2605_v39, %v2616_v1  ;;  %v2711_v16 = vor.u32 %v2709_v17, %v2707_v13  ;;  %vm2642_vm14 = vcmp.ne.s16.totalorder %v10067_v41, 0  ;;  %6493 = vmatprep.mubr.msk.bf16.mxu0 %vm399_vm1, %v2700_v45  ;;  %6589 = vmatprep.mubr.msk.bf16.mxu1 %vm399_vm1, %v10068_v10 }
 0x1d5   : > { %v8974_v40 = vor.u32 %v3776_v31, %v3774_v54  ;;  %vm2645_vm10 = vcmp.ne.s16.totalorder %v8951_v28, 0  ;;  %vm2646_vm5 = vcmp.ne.s16.totalorder %v8954_v25, 0  ;;  %v8983_v39 = vsel %vm2024_vm12, %v2613_v20, %v2624_v0  ;;  %v10072_v20 = vld [vmem:[#allocation69_spill] sm:$0xff]  ;;  %v2394_v28 = vld [vmem:[#allocation2 + $0x88] sm:$0x1] }
 0x1d6   : > { %v8986_v30 = vsel %vm2024_vm12, %v2621_v29, %v2632_v11  ;;  %v4844_v36 = vsel %vm2645_vm10, %v4827_v49, 0  ;;  %v4845_v37 = vsel %vm2646_vm5, %v4828_v32, 0  ;;  %v2716_v21 = vsel %vm10069_vm15, %v2711_v16, %v8958_v43  ;;  %v4830_v29 = vld [vmem:[#allocation2 + $0x88] sm:$0xff] }
 0x1d7   : > { %v2721_v62 = vshll.u32 %v8966_v22, 16  ;;  %v3744_v54 = vsel %vm9869_vm11, %v10070_v24, 0  ;;  %vm2643_vm7 = vcmp.ne.s16.totalorder %v10072_v20, 0  ;;  %vm2647_vm9 = vcmp.ne.s16.totalorder %v8969_v12, 0 }
 0x1d8   : > { %v9003_v38 = vsel %vm2641_vm6, %v10073_v50, 0  ;;  %v4943_v1 = vshll.u32 %v4844_v36, 16  ;;  %v4951_v48 = vshll.u32 %v4845_v37, 16  ;;  %v4846_v47 = vsel %vm2647_vm9, %v4829_v8, 0 }
 0x1d9   : > { %vm2648_vm15 = vcmp.ne.s16.totalorder %v8983_v39, 0  ;;  %vm2649_vm11 = vcmp.ne.s16.totalorder %v8986_v30, 0  ;;  %v4947_v55 = vshrl.u32 %v4844_v36, 16  ;;  %v4955_v14 = vshrl.u32 %v4845_v37, 16  ;;  %v3741_v30 = vld [vmem:[#allocation2 + $0x90] sm:$0x1] }
 0x1da   : > { %v9009_v0 = vrot.slane %v4943_v1, 1  ;;  %v4953_v11 = vrot.slane %v4951_v48, 1  ;;  %v4959_v45 = vshll.u32 %v4846_v47, 16  ;;  %v4847_v17 = vsel %vm2648_vm15, %v4830_v29, 0  ;;  %v10077_v48 = vld [vmem:[#allocation60_spill] sm:$0xff] }
 0x1db   : > { %v3780_v31 = vshll.u32 %v3744_v54, 16  ;;  %v9016_v32 = vsel %vm9871_vm4, %v8616_v5, 0  ;;  %v4967_v42 = vshll.u32 %v4847_v17, 16  ;;  %v9020_v16 = vsel %vm2649_vm11, %v4831_v7, 0  ;;  %6494 = vmatmul.mubr.msk.bf16.gmra.mrb[68].mxu0 %vm399_vm1, %v2708_v9  ;;  %6590 = vmatmul.mubr.msk.bf16.gmra.mrb[28].mxu1 %vm399_vm1, %v10077_v48 }
 0x1dc   : > { %10074 = vst [vmem:[#allocation31_spill] sm:$0xff] %v9009_v0  ;;  %10076 = vst [vmem:[#allocation34_spill] sm:$0xff] %v9020_v16  ;;  %v4949_v8 = vor.u32 %v4947_v55, %v9009_v0  ;;  %v4957_v36 = vor.u32 %v4955_v14, %v4953_v11  ;;  %v4961_v37 = vrot.slane %v4959_v45, 1  ;;  %v4963_v1 = vshrl.u32 %v4846_v47, 16  ;;  %6497 = vmatprep.mubr.msk.bf16.mxu0 %vm399_vm1, %v2716_v21 }
 0x1dd   : > { %v2729_v29 = vshll.u32 %v9003_v38, 16  ;;  %v4969_v49 = vrot.slane %v4967_v42, 1  ;;  %v4971_v13 = vshrl.u32 %v4847_v17, 16  ;;  %v4975_v5 = vshll.u32 %v9020_v16, 16  ;;  %6597 = vmatprep.mubr.msk.bf16.mxu1 %vm399_vm1, %v3775_v52 }
 0x1de   : > { %v3788_v7 = vshll.u32 %v9016_v32, 16  ;;  %vm10078_vm4 = vsmask.f32 7424  ;;  %v4965_v47 = vor.u32 %v4963_v1, %v4961_v37  ;;  %v2717_v14 = vshrl.u32 %v8925_v26, 16 }
 0x1df   : > { %v9032_v55 = vsel %vm10078_vm4, %v4949_v8, %v4953_v11  ;;  %vm10080_vm0 = vmmov %vm10078_vm4  ;;  %v2723_v45 = vrot.slane %v2721_v62, 1  ;;  %v4973_v42 = vor.u32 %v4971_v13, %v4969_v49  ;;  %v9038_v17 = vrot.slane %v4975_v5, 1 }
 0x1e0   : > { %10079 = vst [vmem:[#allocation41_spill] sm:$0xff] %v9032_v55  ;;  %v9035_v9 = vsel %vm10080_vm0, %v4957_v36, %v4961_v37  ;;  %v3782_v48 = vrot.slane %v3780_v31, 1  ;;  %v2659_v52 = vsel %vm2642_vm14, %v8824_v58, 0  ;;  %v3746_v21 = vsel %vm9873_vm8, %v8623_v57, 0  ;;  %vm10083_vm4 = vmmov %vm10080_vm0  ;;  %v9055_v36 = vld [vmem:[#allocation2 + $0x50] sm:$0xff] }
 0x1e1   : > { %10081 = vst [vmem:[#allocation42_spill] sm:$0xff] %v9035_v9  ;;  %10082 = vst [vmem:[#allocation46_spill] sm:$0xff] %v9038_v17  ;;  %v9047_v11 = vsel %vm10083_vm4, %v4965_v47, %v4969_v49  ;;  %v2719_v8 = vor.u32 %v2717_v14, %v8958_v43  ;;  %v2725_v26 = vshrl.u32 %v8966_v22, 16  ;;  %v2731_v62 = vrot.slane %v2729_v29, 1 }
 0x1e2   : > { %10084 = vst [vmem:[#allocation47_spill] sm:$0xff] %v9047_v11  ;;  %v9053_v5 = vsel %vm10080_vm0, %v4973_v42, %v9038_v17  ;;  %v3784_v13 = vshrl.u32 %v3744_v54, 16  ;;  %v3790_v31 = vrot.slane %v3788_v7, 1  ;;  %v9060_v37 = vsel %vm2643_vm7, %v9055_v36, 0  ;;  %v7118_v54 = vld [vmem:[%s9890_s2 + $0x68] sm:$0xff]   ;;  %vm10086_vm4 = vmmov %vm10080_vm0  ;;  %v10088_v17 = vld [vmem:[#allocation72_spill] sm:$0xff] }
 0x1e3   : > { %10085 = vst [vmem:[#allocation50_spill] sm:$0xff] %v9053_v5  ;;  %v9065_v43 = vsel %vm9874_vm3, %v10065_v59, 0  ;;  %v2727_v22 = vor.u32 %v2725_v26, %v2723_v45  ;;  %v2737_v49 = vshll.u32 %v2659_v52, 16  ;;  %v3796_v1 = vshll.u32 %v3746_v21, 16  ;;  %vm10087_vm8 = vmmov %vm10080_vm0  ;;  %v9098_v11 = vld [vmem:[#allocation2 + $0x60] sm:$0xff] }
 0x1e4   : > { %v2724_v29 = vsel %vm10086_vm4, %v2719_v8, %v2723_v45  ;;  %v3783_v7 = vsel %vm10080_vm0, %v8974_v40, %v3782_v48  ;;  %v3786_v47 = vor.u32 %v3784_v13, %v3782_v48  ;;  %v2745_v42 = vshll.u32 %v9060_v37, 16  ;;  %vm10089_vm4 = vmmov %vm10080_vm0  ;;  %v9086_v8 = vld [vmem:[%s9890_s2 + $0x70] sm:$0xff]  }
 0x1e5   : > { %6498 = vmatmul.mubr.msk.bf16.gmra.mrb[72].mxu0 %vm399_vm1, %v2724_v29  ;;  %6598 = vmatmul.mubr.msk.bf16.vlgmr.msra.gmra.mrb[0].mxu1 %vm399_vm1, %v3783_v7  ;;  %v2732_v14 = vsel %vm10087_vm8, %v2727_v22, %v2731_v62  ;;  %v3804_v26 = vshll.u32 %v9065_v43, 16  ;;  %vm2644_vm3 = vcmp.ne.s16.totalorder %v8946_v53, 0  ;;  %v2739_v40 = vrot.slane %v2737_v49, 1  ;;  %v9090_v29 = vld [vmem:[#allocation2 + $0x58] sm:$0xff]  ;;  %vm10090_vm8 = vmmov %vm10080_vm0 }
 0x1e6   : > { %6630 = vmatpush3.bf16.msra.mxu1 %v10088_v17  ;;  %6501 = vmatprep.mubr.msk.bf16.mxu0 %vm399_vm1, %v2732_v14  ;;  %v3791_v45 = vsel %vm10089_vm4, %v3786_v47, %v3790_v31  ;;  %v3798_v48 = vrot.slane %v3796_v1, 1  ;;  %v2733_v13 = vshrl.u32 %v9003_v38, 16  ;;  %v3792_v22 = vshrl.u32 %v9016_v32, 16  ;;  %vm10091_vm4 = vmmov %vm10080_vm0 }
 0x1e7   : > { %6601 = vmatprep.mubr.msk.bf16.mxu1 %vm399_vm1, %v3791_v45  ;;  %6631 = vmatprep.subr.bf16.mxu1 %v7118_v54  ;;  %v2661_v17 = vsel %vm2644_vm3, %v9090_v29, 0  ;;  %v3748_v49 = vsel %vm9877_vm2, %v10073_v50, 0  ;;  %v2741_v1 = vshrl.u32 %v2659_v52, 16  ;;  %v2747_v7 = vrot.slane %v2745_v42, 1  ;;  %vm10092_vm2 = vmmov %vm10080_vm0 }
 0x1e8   : > { %v3800_v47 = vshrl.u32 %v3746_v21, 16  ;;  %v3806_v14 = vrot.slane %v3804_v26, 1  ;;  %v2735_v45 = vor.u32 %v2733_v13, %v2731_v62  ;;  %v3794_v5 = vor.u32 %v3792_v22, %v3790_v31 }
 0x1e9   : > { %v2662_v38 = vsel %vm2645_vm10, %v9098_v11, 0  ;;  %v3749_v32 = vsel %vm2641_vm6, %v8824_v58, 0  ;;  %v2743_v16 = vor.u32 %v2741_v1, %v2739_v40  ;;  %v2753_v55 = vshll.u32 %v2661_v17, 16 }
 0x1ea   : > { %6632 = vmatpush3.bf16.msra.mxu1 %v7118_v54  ;;  %v3802_v9 = vor.u32 %v3800_v47, %v3798_v48  ;;  %v3812_v52 = vshll.u32 %v3748_v49, 16  ;;  %v2740_v21 = vsel %vm10090_vm8, %v2735_v45, %v2739_v40  ;;  %v3799_v62 = vsel %vm10080_vm0, %v3794_v5, %v3798_v48  ;;  %v9117_v48 = vld [vmem:[#allocation2 + $0x68] sm:$0xff]  ;;  %vm10094_vm8 = vmmov %vm10080_vm0 }
 0x1eb   : > { %6665 = vmatprep.subr.bf16.mxu1 %v9086_v8  ;;  %v2748_v31 = vsel %vm10091_vm4, %v2743_v16, %v2747_v7  ;;  %v2761_v26 = vshll.u32 %v2662_v38, 16  ;;  %v3820_v54 = vshll.u32 %v3749_v32, 16  ;;  %v2755_v13 = vrot.slane %v2753_v55, 1  ;;  %vm10095_vm4 = vmmov %vm10080_vm0 }
 0x1ec   : > { %v3807_v42 = vsel %vm10092_vm2, %v3802_v9, %v3806_v14  ;;  %v3814_v22 = vrot.slane %v3812_v52, 1  ;;  %v2749_v40 = vshrl.u32 %v9060_v37, 16  ;;  %v3808_v5 = vshrl.u32 %v9065_v43, 16  ;;  %vm10093_vm2 = vmmov %vm10080_vm0 }
 0x1ed   : > { %6502 = vmatmul.mubr.msk.bf16.gmra.mrb[76].mxu0 %vm399_vm1, %v2740_v21  ;;  %6602 = vmatmul.mubr.msk.bf16.gmra.mrb[4].mxu1 %vm399_vm1, %v3799_v62  ;;  %v2663_v16 = vsel %vm2646_vm5, %v9117_v48, 0  ;;  %v3750_v9 = vsel %vm2642_vm14, %v9055_v36, 0  ;;  %v2757_v1 = vshrl.u32 %v2661_v17, 16  ;;  %v2763_v47 = vrot.slane %v2761_v26, 1  ;;  %v9125_v62 = vld [vmem:[#allocation2 + $0x70] sm:$0xff] }
 0x1ee   : > { %6505 = vmatprep.mubr.msk.bf16.mxu0 %vm399_vm1, %v2748_v31  ;;  %6605 = vmatprep.mubr.msk.bf16.mxu1 %vm399_vm1, %v3807_v42  ;;  %v3816_v45 = vshrl.u32 %v3748_v49, 16  ;;  %v3822_v21 = vrot.slane %v3820_v54, 1  ;;  %v2751_v55 = vor.u32 %v2749_v40, %v2747_v7  ;;  %v3810_v52 = vor.u32 %v3808_v5, %v3806_v14 }
 0x1ef   : > { %v2664_v37 = vsel %vm2647_vm9, %v9125_v62, 0  ;;  %v3751_v43 = vsel %vm2643_vm7, %v9090_v29, 0  ;;  %v2759_v31 = vor.u32 %v2757_v1, %v2755_v13  ;;  %v2769_v0 = vshll.u32 %v2663_v16, 16 }
 0x1f0   : > { %v3818_v42 = vor.u32 %v3816_v45, %v3814_v22  ;;  %v3828_v41 = vshll.u32 %v3750_v9, 16  ;;  %v2756_v17 = vsel %vm10093_vm2, %v2751_v55, %v2755_v13  ;;  %v3815_v49 = vsel %vm10094_vm8, %v3810_v52, %v3814_v22  ;;  %v9141_v45 = vld [vmem:[#allocation2 + $0x78] sm:$0xff]  ;;  %vm10096_vm2 = vmmov %vm10080_vm0 }
 0x1f1   : > { %v2764_v7 = vsel %vm10080_vm0, %v2759_v31, %v2763_v47  ;;  %v2777_v26 = vshll.u32 %v2664_v37, 16  ;;  %v3836_v54 = vshll.u32 %v3751_v43, 16  ;;  %v2771_v40 = vrot.slane %v2769_v0, 1  ;;  %vm10097_vm8 = vmmov %vm10080_vm0 }
 0x1f2   : > { %v3823_v14 = vsel %vm10095_vm4, %v3818_v42, %v3822_v21  ;;  %v3830_v5 = vrot.slane %v3828_v41, 1  ;;  %v2765_v1 = vshrl.u32 %v2662_v38, 16  ;;  %v3824_v13 = vshrl.u32 %v3749_v32, 16  ;;  %vm10098_vm4 = vmmov %vm10080_vm0 }
 0x1f3   : > { %v2665_v22 = vsel %vm2648_vm15, %v9141_v45, 0  ;;  %v3752_v55 = vsel %vm2644_vm3, %v9098_v11, 0  ;;  %v2773_v52 = vshrl.u32 %v2663_v16, 16  ;;  %v2779_v31 = vrot.slane %v2777_v26, 1 }
 0x1f4   : > { %v3832_v42 = vshrl.u32 %v3750_v9, 16  ;;  %v2666_v41 = vsel %vm2649_vm11, %v10068_v10, 0  ;;  %v3753_v0 = vsel %vm2645_vm10, %v9117_v48, 0  ;;  %v3844_v20 = vshll.u32 %v3752_v55, 16 }
 0x1f5   : > { %6506 = vmatmul.mubr.msk.bf16.gmra.mrb[80].mxu0 %vm399_vm1, %v2756_v17  ;;  %6606 = vmatmul.mubr.msk.bf16.gmra.mrb[8].mxu1 %vm399_vm1, %v3815_v49  ;;  %v3838_v17 = vrot.slane %v3836_v54, 1  ;;  %v2767_v49 = vor.u32 %v2765_v1, %v2763_v47  ;;  %v2775_v38 = vor.u32 %v2773_v52, %v2771_v40  ;;  %v2793_v47 = vshll.u32 %v2666_v41, 16 }
 0x1f6   : > { %6509 = vmatprep.mubr.msk.bf16.mxu0 %vm399_vm1, %v2764_v7  ;;  %6609 = vmatprep.mubr.msk.bf16.mxu1 %vm399_vm1, %v3823_v14  ;;  %v3826_v7 = vor.u32 %v3824_v13, %v3822_v21  ;;  %v3834_v32 = vor.u32 %v3832_v42, %v3830_v5  ;;  %v2785_v14 = vshll.u32 %v2665_v22, 16  ;;  %v3852_v21 = vshll.u32 %v3753_v0, 16 }
 0x1f7   : > { %v2772_v53 = vsel %vm10096_vm2, %v2767_v49, %v2771_v40  ;;  %v2780_v9 = vsel %vm10080_vm0, %v2775_v38, %v2779_v31  ;;  %vm2650_vm10 = vcmp.ne.s16.totalorder %v8937_v33, 0  ;;  %v3846_v54 = vrot.slane %v3844_v20, 1  ;;  %vm10099_vm2 = vmmov %vm10080_vm0 }
 0x1f8   : > { %v3831_v16 = vsel %vm10097_vm8, %v3826_v7, %v3830_v5  ;;  %v3839_v10 = vsel %vm10098_vm4, %v3834_v32, %v3838_v17  ;;  %v2787_v26 = vrot.slane %v2785_v14, 1  ;;  %v2781_v40 = vshrl.u32 %v2664_v37, 16  ;;  %vm10100_vm8 = vmmov %vm10080_vm0 }
 0x1f9   : > { %v3840_v5 = vshrl.u32 %v3751_v43, 16  ;;  %v3754_v1 = vsel %vm2646_vm5, %v9125_v62, 0  ;;  %v2789_v13 = vshrl.u32 %v2665_v22, 16  ;;  %v2795_v52 = vrot.slane %v2793_v47, 1  ;;  %vm10101_vm5 = vmmov %vm10080_vm0  ;;  %v9180_v47 = vld [vmem:[#allocation2 + $0x80] sm:$0xff] }
 0x1fa   : > { %v3854_v42 = vrot.slane %v3852_v21, 1  ;;  %v2667_v49 = vsel %vm2650_vm10, %v2394_v28, 0  ;;  %v2783_v7 = vor.u32 %v2781_v40, %v2779_v31  ;;  %v3755_v32 = vsel %vm2647_vm9, %v9141_v45, 0  ;;  %vm10102_vm9 = vmmov %vm10080_vm0 }
 0x1fb   : > { %v3842_v38 = vor.u32 %v3840_v5, %v3838_v17  ;;  %v2791_v20 = vor.u32 %v2789_v13, %v2787_v26  ;;  %v3860_v43 = vshll.u32 %v3754_v1, 16  ;;  %v2801_v14 = vshll.u32 %v2667_v49, 16  ;;  %v9185_v5 = vld [vmem:[#allocation2 + $0x88] sm:$0xff]  ;;  %vm10103_vm4 = vmmov %vm10080_vm0 }
 0x1fc   : > { %v3868_v17 = vshll.u32 %v3755_v32, 16  ;;  %v3756_v21 = vsel %vm2648_vm15, %v9180_v47, 0  ;;  %v3864_v28 = vshrl.u32 %v3754_v1, 16  ;;  %vm10104_vm15 = vmmov %vm10080_vm0 }
 0x1fd   : > { %6510 = vmatmul.mubr.msk.bf16.gmra.mrb[84].mxu0 %vm399_vm1, %v2772_v53  ;;  %6610 = vmatmul.mubr.msk.bf16.gmra.mrb[12].mxu1 %vm399_vm1, %v3831_v16  ;;  %v3848_v53 = vshrl.u32 %v3752_v55, 16  ;;  %v2788_v55 = vsel %vm10099_vm2, %v2783_v7, %v2787_v26  ;;  %v3847_v25 = vsel %vm10100_vm8, %v3842_v38, %v3846_v54  ;;  %v2796_v22 = vsel %vm10101_vm5, %v2791_v20, %v2795_v52  ;;  %vm10111_vm5 = vmmov %vm10080_vm0 }
 0x1fe   : > { %6513 = vmatprep.mubr.msk.bf16.mxu0 %vm399_vm1, %v2780_v9  ;;  %6613 = vmatprep.mubr.msk.bf16.mxu1 %vm399_vm1, %v3839_v10  ;;  %v3862_v12 = vrot.slane %v3860_v43, 1  ;;  %v2797_v16 = vshrl.u32 %v2666_v41, 16  ;;  %v2803_v9 = vrot.slane %v2801_v14, 1  ;;  %v3856_v10 = vshrl.u32 %v3753_v0, 16  ;;  %v4149_v14 = vld [vmem:[#allocation2 + $0x10] sm:$0x80] }
 0x1ff   : > { %v3850_v37 = vor.u32 %v3848_v53, %v3846_v54  ;;  %v3870_v26 = vrot.slane %v3868_v17, 1  ;;  %v3757_v53 = vsel %vm2649_vm11, %v9185_v5, 0  ;;  %v3876_v41 = vshll.u32 %v3756_v21, 16  ;;  %vm10108_vm11 = vmmov %vm10080_vm0 }
 0x200   : > { %v2799_v54 = vor.u32 %v2797_v16, %v2795_v52  ;;  %v3858_v40 = vor.u32 %v3856_v10, %v3854_v42  ;;  %v3866_v13 = vor.u32 %v3864_v28, %v3862_v12  ;;  %v3884_v1 = vshll.u32 %v3757_v53, 16  ;;  %v10105_v52 = vld [vmem:[#allocation66_spill] sm:$0xff] }
 0x201   : > { %v3855_v31 = vsel %vm10080_vm0, %v3850_v37, %v3854_v42  ;;  %v10106_v42 = vld [vmem:[#allocation12_spill] sm:$0xff]  ;;  %v3878_v38 = vrot.slane %v3876_v41, 1  ;;  %v3872_v20 = vshrl.u32 %v3755_v32, 16  ;;  %v3880_v43 = vshrl.u32 %v3756_v21, 16  ;;  %v10109_v16 = vld [vmem:[#allocation10_spill] sm:$0xff] }
 0x202   : > { %v2804_v0 = vsel %vm10102_vm9, %v2799_v54, %v2803_v9  ;;  %v3863_v49 = vsel %vm10103_vm4, %v3858_v40, %v3862_v12  ;;  %v3871_v39 = vsel %vm10104_vm15, %v3866_v13, %v3870_v26  ;;  %vm10107_vm2 = vcmp.ne.s16.totalorder %v10106_v42, 0  ;;  %vm10124_vm15 = vmmov %vm10080_vm0 }
 0x203   : > { %v4152_v7 = vsel %vm10107_vm2, %v10105_v52, 0  ;;  %vm10110_vm8 = vcmp.ne.s16.totalorder %v10109_v16, 0  ;;  %v3888_v21 = vshrl.u32 %v3757_v53, 16  ;;  %v7120_v53 = vld [vmem:[%s9890_s2 + $0x78] sm:$0xff]   ;;  %vm10125_vm2 = vcmp.ne.s16.totalorder %v8546_v4, 0 }
 0x204   : > { %v4178_v37 = vshrl.u32 %v4152_v7, 16  ;;  %v4151_v9 = vsel %vm10110_vm8, %v4149_v14, 0  ;;  %v4181_v54 = vshll.u32 %v4152_v7, 16  ;;  %v10113_v7 = vld [vmem:[#allocation28_spill] sm:$0xff]  ;;  %vm10127_vm8 = vmmov %vm10080_vm0 }
 0x205   : > { %6514 = vmatmul.mubr.msk.bf16.gmra.mrb[88].mxu0 %vm399_vm1, %v2788_v55  ;;  %6614 = vmatmul.mubr.msk.bf16.gmra.mrb[16].mxu1 %vm399_vm1, %v3847_v25  ;;  %v3886_v55 = vrot.slane %v3884_v1, 1  ;;  %v3758_v25 = vsel %vm2650_vm10, %v3741_v30, 0  ;;  %v4174_v28 = vshrl.u32 %v4151_v9, 16  ;;  %v10112_v1 = vld [vmem:[#allocation38_spill] sm:$0xff] }
 0x206   : > { %6517 = vmatprep.mubr.msk.bf16.mxu0 %vm399_vm1, %v2796_v22  ;;  %6617 = vmatprep.mubr.msk.bf16.mxu1 %vm399_vm1, %v3855_v31  ;;  %v3874_v22 = vor.u32 %v3872_v20, %v3870_v26  ;;  %v3882_v31 = vor.u32 %v3880_v43, %v3878_v38  ;;  %v3892_v12 = vshll.u32 %v3758_v25, 16  ;;  %v4180_v32 = vrot.slane %v4178_v37, 7  ;;  %v10120_v30 = vld [vmem:[#allocation62_spill] sm:$0xff]  ;;  %v10122_v37 = vld [vmem:[#allocation64_spill] sm:$0xff] }
 0x207   : > { %v3890_v40 = vor.u32 %v3888_v21, %v3886_v55  ;;  %v4176_v41 = vrot.slane %v4174_v28, 7  ;;  %vm10121_vm9 = vcmp.ne.s16.totalorder %v10120_v30, 0  ;;  %vm10123_vm4 = vcmp.ne.s16.totalorder %v10122_v37, 0 }
 0x208   : > { %v3879_v17 = vsel %vm10108_vm11, %v3874_v22, %v3878_v38  ;;  %v3887_v10 = vsel %vm10111_vm5, %v3882_v31, %v3886_v55  ;;  %v3894_v13 = vrot.slane %v3892_v12, 1  ;;  %v4183_v26 = vor.u32 %v4181_v54, %v4180_v32  ;;  %v4820_v22 = vld [vmem:[#allocation2 + $0x38] sm:$0xff]  ;;  %v4821_v31 = vld [vmem:[#allocation2 + $0x40] sm:$0xff]  ;;  %vm10128_vm5 = vmmov %vm10080_vm0 }
 0x209   : > { %v4837_v12 = vsel %vm10125_vm2, %v4820_v22, 0  ;;  %vm10126_vm11 = vcmp.ne.s16.totalorder %v8549_v19, 0 }
 0x20a   : > { %v4887_v28 = vshll.u32 %v4837_v12, 16 }
 0x20c   : > { %v4889_v4 = vrot.slane %v4887_v28, 1 }
 0x20d   : > { %6518 = vmatmul.mubr.msk.bf16.gmra.mrb[92].mxu0 %vm399_vm1, %v2804_v0  ;;  %6618 = vmatmul.mubr.msk.bf16.gmra.mrb[20].mxu1 %vm399_vm1, %v3863_v49  ;;  %v3895_v0 = vsel %vm10080_vm0, %v3890_v40, %v3894_v13  ;;  %v4184_v49 = vsel %vm2024_vm12, %v4176_v41, %v4183_v26  ;;  %v4822_v26 = vld [vmem:[#allocation2 + $0x48] sm:$0xff]  ;;  %v4823_v41 = vld [vmem:[#allocation2 + $0x50] sm:$0xff]  ;;  %vm10129_vm0 = vcmp.ne.s16.totalorder %v8563_v23, 0 }
 0x20e   : > { %6621 = vmatprep.mubr.msk.bf16.mxu1 %vm399_vm1, %v3871_v39  ;;  %v4189_v39 = vshll.u32 %v8614_v18, 16  ;;  %v7121_v18 = vld [vmem:[%s9890_s2 + $0x80] sm:$0xff]   ;;  %v4839_v19 = vsel %vm10129_vm0, %v4822_v26, 0 }
 0x210   : > { %v4191_v52 = vor.u32 %v4189_v39, %v10112_v1  ;;  %v4891_v1 = vshrl.u32 %v4837_v12, 16 }
 0x212   : > { %v4192_v42 = vsel %vm2024_vm12, %v4180_v32, %v4191_v52  ;;  %v4838_v32 = vsel %vm10126_vm11, %v4821_v31, 0 }
 0x213   : > { %v4895_v13 = vshll.u32 %v4838_v32, 16  ;;  %v4899_v34 = vshrl.u32 %v4838_v32, 16 }
 0x215   : > { %6622 = vmatmul.mubr.msk.bf16.gmra.mrb[24].mxu1 %vm399_vm1, %v3879_v17  ;;  %v4897_v52 = vrot.slane %v4895_v13, 1 }
 0x216   : > { %6625 = vmatprep.mubr.msk.bf16.mxu1 %vm399_vm1, %v3887_v10 }
 0x21d   : > { %6626 = vmatmul.mubr.msk.bf16.gmra.mrb[28].mxu1 %vm399_vm1, %v3895_v0 }
 0x21e   : > { %6633 = vmatprep.mubr.msk.bf16.mxu1 %vm399_vm1, %v4184_v49 }
 0x225   : > { %6634 = vmatmul.mubr.msk.bf16.vlgmr.msra.gmra.mrb[0].mxu1 %vm399_vm1, %v4192_v42 }
 0x226   : > { %6666 = vmatpush3.bf16.msra.mxu1 %v9086_v8  ;;  %6637 = vmatprep.mubr.msk.bf16.mxu1 %vm399_vm1, %v10113_v7  ;;  %v4840_v7 = vsel %vm2641_vm6, %v4823_v41, 0  ;;  %vm10134_vm6 = vmmov %vm10128_vm5 }
 0x227   : > { %6667 = vmatprep.subr.bf16.mxu1 %v7120_v53 }
 0x22a   : > { %6668 = vmatpush3.bf16.msra.mxu1 %v7120_v53 }
 0x22b   : > { %6701 = vmatprep.subr.bf16.mxu1 %v7121_v18 }
 0x22d   : > { %6638 = vmatmul.mubr.msk.bf16.gmra.mrb[4].mxu1 %vm399_vm1, %v8841_v46  ;;  %v4150_v46 = vld [vmem:[#allocation2 + $0x90] sm:$0xff] }
 0x22e   : > { %6641 = vmatprep.mubr.msk.bf16.mxu1 %vm399_vm1, %v8844_v61  ;;  %v4167_v8 = vsel %vm1776_vm13, %v4150_v46, 0  ;;  %v4903_v61 = vshll.u32 %v4839_v19, 16 }
 0x235   : > { %6642 = vmatmul.mubr.msk.bf16.gmra.mrb[8].mxu1 %vm399_vm1, %v8850_v60  ;;  %v4298_v60 = vshrl.u32 %v4167_v8, 16 }
 0x236   : > { %6645 = vmatprep.mubr.msk.bf16.mxu1 %vm399_vm1, %v8856_v27 }
 0x237   : > { %v4300_v27 = vrot.slane %v4298_v60, 7  ;;  %v4911_v60 = vshll.u32 %v4840_v7, 16 }
 0x23d   : > { %6646 = vmatmul.mubr.msk.bf16.gmra.mrb[12].mxu1 %vm399_vm1, %v8859_v56  ;;  %v4301_v56 = vshll.u32 %v4167_v8, 16 }
 0x23e   : > { %6649 = vmatprep.mubr.msk.bf16.mxu1 %vm399_vm1, %v8863_v44 }
 0x23f   : > { %v4303_v44 = vor.u32 %v4301_v56, %v4300_v27  ;;  %v4824_v27 = vld [vmem:[#allocation2 + $0x58] sm:$0xff]  ;;  %v4905_v56 = vrot.slane %v4903_v61, 1 }
 0x245   : > { %6650 = vmatmul.mubr.msk.bf16.gmra.mrb[16].mxu1 %vm399_vm1, %v8868_v6  ;;  %v4304_v6 = vsel %vm2024_vm12, %v8873_v15, %v4303_v44  ;;  %v10115_v15 = vld [vmem:[#allocation73_spill] sm:$0xff]  ;;  %v4825_v44 = vld [vmem:[#allocation2 + $0x60] sm:$0xff] }
 0x246   : > { %6653 = vmatprep.mubr.msk.bf16.mxu1 %vm399_vm1, %v8871_v2  ;;  %v7142_v2 = vld [vmem:[#allocation2 + $0x18] sm:$0xff] }
 0x24d   : > { %6654 = vmatmul.mubr.msk.bf16.gmra.mrb[20].mxu1 %vm399_vm1, %v8889_v3  ;;  %v7122_v3 = vld [vmem:[%s9890_s2 + $0x88] sm:$0xff]   ;;  %s7149_s2 = scalar_lea.vmem %s7148_s1, 8192 }
 0x24e   : > { %6657 = vmatprep.mubr.msk.bf16.mxu1 %vm399_vm1, %v8893_v63  ;;  %v7123_v63 = vld [vmem:[%s9806_s3] sm:$0xff]   ;;  %p7151_p1 = scmp.lt.s32.totalorder %s7149_s2, %s7143_s24 }
 0x24f   : > { %6737 = vmatprep.subr.bf16.mxu0 %v7123_v63 }
 0x250   : > { %6738 = vmatpush3.bf16.msra.mxu0 %v7123_v63  ;;  %p7152_p2 = por %p7151_p1, %p7150_p0 }
 0x252   : > { %p7153_p3 = pnand %p7152_p2, %p7146_p13 }
 0x255   : > { %6658 = vmatmul.mubr.msk.bf16.gmra.mrb[24].mxu1 %vm399_vm1, %v8896_v35  ;;  %v7124_v35 = vld [vmem:[%s9806_s3 + $0x8] sm:$0xff]  }
 0x256   : > { %6661 = vmatprep.mubr.msk.bf16.mxu1 %vm399_vm1, %v8910_v51  ;;  %6739 = vmatprep.subr.bf16.mxu0 %v7124_v35  ;;  %v10116_v51 = vld [vmem:[#allocation58_spill] sm:$0xff] }
 0x257   : > { %6740 = vmatpush3.bf16.msra.mxu0 %v7124_v35  ;;  %vm10117_vm12 = vcmp.ne.s16.totalorder %v10116_v51, 0  ;;  %v4907_v35 = vshrl.u32 %v4839_v19, 16 }
 0x25d   : > { %6662 = vmatmul.mubr.msk.bf16.gmra.mrb[28].mxu1 %vm399_vm1, %v4304_v6 }
 0x25e   : > { %6669 = vmatprep.mubr.msk.bf16.mxu1 %vm399_vm1, %v7142_v2  ;;  %v10145_v2 = vld [vmem:[#allocation47_spill] sm:$0xff] }
 0x265   : > { %6670 = vmatmul.mubr.msk.bf16.vlgmr.msra.gmra.mrb[0].mxu1 %vm399_vm1, %v10070_v24  ;;  %v10118_v24 = vld [vmem:[#allocation61_spill] sm:$0xff] }
 0x266   : > { %6702 = vmatpush3.bf16.msra.mxu1 %v7121_v18  ;;  %6673 = vmatprep.mubr.msk.bf16.mxu1 %vm399_vm1, %v10115_v15  ;;  %vm10119_vm13 = vcmp.ne.s16.totalorder %v10118_v24, 0  ;;  %v4913_v15 = vrot.slane %v4911_v60, 1 }
 0x267   : > { %6703 = vmatprep.subr.bf16.mxu1 %v7122_v3 }
 0x26a   : > { %6704 = vmatpush3.bf16.msra.mxu1 %v7122_v3  ;;  %v4841_v3 = vsel %vm2642_vm14, %v4824_v27, 0  ;;  %vm10137_vm14 = vmmov %vm10128_vm5  ;;  %v10144_v27 = vld [vmem:[#allocation34_spill] sm:$0xff] }
 0x26d   : > { %6674 = vmatmul.mubr.msk.bf16.gmra.mrb[4].mxu1 %vm399_vm1, %v8623_v57  ;;  %v4816_v57 = vld [vmem:[#allocation2 + $0x18] sm:$0xff] }
 0x26e   : > { %6677 = vmatprep.mubr.msk.bf16.mxu1 %vm399_vm1, %v10065_v59  ;;  %v4833_v59 = vsel %vm10117_vm12, %v4816_v57, 0  ;;  %vm10130_vm12 = vmmov %vm10128_vm5 }
 0x26f   : > { %v4856_v38 = vshrl.u32 %v4833_v59, 16 }
 0x275   : > { %6678 = vmatmul.mubr.msk.bf16.gmra.mrb[8].mxu1 %vm399_vm1, %v10073_v50 }
 0x276   : > { %6681 = vmatprep.mubr.msk.bf16.mxu1 %vm399_vm1, %v8824_v58  ;;  %v4817_v58 = vld [vmem:[#allocation2 + $0x20] sm:$0xff] }
 0x277   : > { %v4834_v50 = vsel %vm10119_vm13, %v4817_v58, 0  ;;  %vm10131_vm13 = vmmov %vm10128_vm5  ;;  %v4901_v58 = vor.u32 %v4899_v34, %v4897_v52 }
 0x278   : > { %v4867_v17 = vshrl.u32 %v4834_v50, 16 }
 0x27d   : > { %6682 = vmatmul.mubr.msk.bf16.gmra.mrb[12].mxu1 %vm399_vm1, %v9055_v36  ;;  %v4858_v36 = vshll.u32 %v4833_v59, 16  ;;  %v4842_v59 = vsel %vm2643_vm7, %v4825_v44, 0  ;;  %vm10138_vm7 = vmmov %vm10128_vm5 }
 0x27e   : > { %6685 = vmatprep.mubr.msk.bf16.mxu1 %vm399_vm1, %v9090_v29  ;;  %v4818_v29 = vld [vmem:[#allocation2 + $0x28] sm:$0xff] }
 0x285   : > { %6686 = vmatmul.mubr.msk.bf16.gmra.mrb[16].mxu1 %vm399_vm1, %v9098_v11  ;;  %v4863_v11 = vshll.u32 %v4834_v50, 16  ;;  %v4909_v50 = vor.u32 %v4907_v35, %v4905_v56  ;;  %v10147_v35 = vld [vmem:[#allocation46_spill] sm:$0xff] }
 0x286   : > { %6689 = vmatprep.mubr.msk.bf16.mxu1 %vm399_vm1, %v9117_v48  ;;  %v4860_v48 = vrot.slane %v4858_v36, 1  ;;  %v4919_v36 = vshll.u32 %v4841_v3, 16 }
 0x287   : > { %v4865_v20 = vrot.slane %v4863_v11, 1  ;;  %v4906_v11 = vsel %vm10134_vm6, %v4901_v58, %v4905_v56  ;;  %v4979_v56 = vshrl.u32 %v10144_v27, 16 }
 0x288   : > { %v4861_v55 = vor.u32 %v4860_v48, %v4856_v38  ;;  %v4927_v48 = vshll.u32 %v4842_v59, 16  ;;  %v4921_v30 = vrot.slane %v4919_v36, 1  ;;  %v4915_v38 = vshrl.u32 %v4840_v7, 16  ;;  %v10142_v7 = vld [vmem:[#allocation41_spill] sm:$0xff] }
 0x289   : > { %v4869_v10 = vor.u32 %v4867_v17, %v4865_v20  ;;  %v4981_v33 = vor.u32 %v4979_v56, %v10147_v35 }
 0x28d   : > { %6690 = vmatmul.mubr.msk.bf16.gmra.mrb[20].mxu1 %vm399_vm1, %v9125_v62  ;;  %v4819_v62 = vld [vmem:[#allocation2 + $0x30] sm:$0xff] }
 0x28e   : > { %6693 = vmatprep.mubr.msk.bf16.mxu1 %vm399_vm1, %v9141_v45  ;;  %v4835_v45 = vsel %vm10121_vm9, %v4818_v29, 0  ;;  %v4836_v43 = vsel %vm10123_vm4, %v4819_v62, 0  ;;  %vm10135_vm9 = vmmov %vm10128_vm5  ;;  %v4826_v62 = vld [vmem:[#allocation2 + $0x68] sm:$0xff] }
 0x28f   : > { %v4871_v25 = vshll.u32 %v4835_v45, 16  ;;  %v4879_v14 = vshll.u32 %v4836_v43, 16  ;;  %v4875_v16 = vshrl.u32 %v4835_v45, 16  ;;  %v4883_v49 = vshrl.u32 %v4836_v43, 16 }
 0x290   : > { %v4914_v29 = vsel %vm10135_vm9, %v4909_v50, %v4913_v15  ;;  %v4843_v37 = vsel %vm2644_vm3, %v4826_v62, 0  ;;  %vm10139_vm3 = vmmov %vm10128_vm5 }
 0x291   : > { %v4881_v9 = vrot.slane %v4879_v14, 1  ;;  %v4917_v14 = vor.u32 %v4915_v38, %v4913_v15  ;;  %v4935_v31 = vshll.u32 %v4843_v37, 16  ;;  %vm10141_vm4 = vmmov %vm10139_vm3  ;;  %v9418_v38 = vld [vmem:[%s9809_s6] ss:$0 sm:$0xff] }
 0x293   : > { %v4885_v42 = vor.u32 %v4883_v49, %v4881_v9  ;;  %v4922_v17 = vsel %vm10137_vm14, %v4917_v14, %v4921_v30 }
 0x295   : > { %6694 = vmatmul.mubr.msk.bf16.gmra.mrb[24].mxu1 %vm399_vm1, %v9180_v47  ;;  %v4866_v47 = vsel %vm10124_vm15, %v4861_v55, %v4865_v20  ;;  %v4890_v8 = vsel %vm10130_vm12, %v4885_v42, %v4889_v4  ;;  %v4923_v55 = vshrl.u32 %v4841_v3, 16  ;;  %v4832_v42 = vld [vmem:[#allocation2 + $0x98] sm:$0x1]  ;;  %v10146_v3 = vld [vmem:[#allocation50_spill] sm:$0xff] }
 0x296   : > { %6697 = vmatprep.mubr.msk.bf16.mxu1 %vm399_vm1, %v9185_v5  ;;  %v4873_v5 = vrot.slane %v4871_v25, 1  ;;  %v4929_v25 = vrot.slane %v4927_v48, 1  ;;  %v4849_v61 = vsel %vm2650_vm10, %v4832_v42, 0  ;;  %vm10148_vm10 = vmmov %vm10139_vm3 }
 0x297   : > { %v4983_v44 = vshll.u32 %v4849_v61, 16 }
 0x298   : > { %v4877_v21 = vor.u32 %v4875_v16, %v4873_v5  ;;  %v4874_v54 = vsel %vm10127_vm8, %v4869_v10, %v4873_v5  ;;  %v4925_v5 = vor.u32 %v4923_v55, %v4921_v30  ;;  %v4937_v16 = vrot.slane %v4935_v31, 1  ;;  %v9424_v55 = vld [vmem:[%s9810_s7] ss:$0 sm:$0xff] }
 0x299   : > { %v4931_v10 = vshrl.u32 %v4842_v59, 16  ;;  %v4985_v15 = vrot.slane %v4983_v44, 1 }
 0x29a   : > { %v4882_v40 = vsel %vm10128_vm5, %v4877_v21, %v4881_v9  ;;  %v4930_v12 = vsel %vm10138_vm7, %v4925_v5, %v4929_v25  ;;  %v4939_v21 = vshrl.u32 %v4843_v37, 16 }
 0x29b   : > { %v4986_v50 = vsel %vm10148_vm10, %v4981_v33, %v4985_v15 }
 0x29c   : > { %v4941_v13 = vor.u32 %v4939_v21, %v4937_v16 }
 0x29d   : > { %6698 = vmatmul.mubr.msk.bf16.gmra.mrb[28].mxu1 %vm399_vm1, %v4150_v46  ;;  %v4893_v46 = vor.u32 %v4891_v1, %v4889_v4  ;;  %v10140_v4 = vld [vmem:[#allocation31_spill] sm:$0xff] }
 0x29e   : > { %6705 = vmatprep.mubr.msk.bf16.mxu1 %vm399_vm1, %v4866_v47  ;;  %v4946_v41 = vsel %vm10141_vm4, %v4941_v13, %v10140_v4 }
 0x29f   : > { %v4898_v23 = vsel %vm10131_vm13, %v4893_v46, %v4897_v52  ;;  %v10143_v46 = vld [vmem:[#allocation42_spill] sm:$0xff] }
 0x2a5   : > { %6706 = vmatmul.mubr.msk.bf16.vlgmr.msra.gmra.mrb[0].mxu1 %vm399_vm1, %v4874_v54  ;;  %v4933_v54 = vor.u32 %v4931_v10, %v4929_v25 }
 0x2a6   : > { %6709 = vmatprep.mubr.msk.bf16.mxu1 %vm399_vm1, %v4882_v40  ;;  %v9310_v0 = vpop.f32.mrb[64].mxu0 }
 0x2a7   : > { %v9314_v39 = vpop.f32.mrb[65].mxu0  ;;  %v4938_v26 = vsel %vm10139_vm3, %v4933_v54, %v4937_v16 }
 0x2a8   : > { %v9316_v53 = vpop.f32.mrb[66].mxu0 }
 0x2a9   : > { %v9320_v18 = vpop.f32.mrb[67].mxu0 }
 0x2ad   : > { %6710 = vmatmul.mubr.msk.bf16.gmra.mrb[4].mxu1 %vm399_vm1, %v4890_v8 }
 0x2ae   : > { %6713 = vmatprep.mubr.msk.bf16.mxu1 %vm399_vm1, %v4898_v23  ;;  %v9326_v6 = vpop.f32.mrb[68].mxu0 }
 0x2af   : > { %v9330_v63 = vpop.f32.mrb[69].mxu0 }
 0x2b0   : > { %v9332_v57 = vpop.f32.mrb[70].mxu0 }
 0x2b1   : > { %v9336_v24 = vpop.f32.mrb[71].mxu0 }
 0x2b5   : > { %6714 = vmatmul.mubr.msk.bf16.gmra.mrb[8].mxu1 %vm399_vm1, %v4906_v11 }
 0x2b6   : > { %6717 = vmatprep.mubr.msk.bf16.mxu1 %vm399_vm1, %v4914_v29 }
 0x2b8   : > { %v9342_v45 = vpop.f32.mrb[72].mxu0 }
 0x2b9   : > { %v9346_v43 = vpop.f32.mrb[73].mxu0 }
 0x2ba   : > { %v9348_v47 = vpop.f32.mrb[74].mxu0 }
 0x2bb   : > { %v9350_v22 = vpop.f32.mrb[75].mxu0 }
 0x2bd   : > { %6718 = vmatmul.mubr.msk.bf16.gmra.mrb[12].mxu1 %vm399_vm1, %v4922_v17 }
 0x2be   : > { %6721 = vmatprep.mubr.msk.bf16.mxu1 %vm399_vm1, %v4930_v12 }
 0x2c0   : > { %v9356_v9 = vpop.f32.mrb[76].mxu0 }
 0x2c1   : > { %v9358_v32 = vpop.f32.mrb[77].mxu0 }
 0x2c2   : > { %v9360_v28 = vpop.f32.mrb[78].mxu0 }
 0x2c3   : > { %v9362_v40 = vpop.f32.mrb[79].mxu0 }
 0x2c5   : > { %6722 = vmatmul.mubr.msk.bf16.gmra.mrb[16].mxu1 %vm399_vm1, %v4938_v26 }
 0x2c6   : > { %6725 = vmatprep.mubr.msk.bf16.mxu1 %vm399_vm1, %v4946_v41 }
 0x2c8   : > { %v9369_v49 = vpop.f32.mrb[80].mxu0 }
 0x2c9   : > { %v9371_v19 = vpop.f32.mrb[81].mxu0 }
 0x2ca   : > { %v9373_v1 = vpop.f32.mrb[82].mxu0 }
 0x2cb   : > { %v9375_v52 = vpop.f32.mrb[83].mxu0 }
 0x2cd   : > { %6726 = vmatmul.mubr.msk.bf16.gmra.mrb[20].mxu1 %vm399_vm1, %v10142_v7 }
 0x2ce   : > { %6729 = vmatprep.mubr.msk.bf16.mxu1 %vm399_vm1, %v10143_v46 }
 0x2d0   : > { %v9383_v8 = vpop.f32.mrb[84].mxu0 }
 0x2d1   : > { %v9385_v23 = vpop.f32.mrb[85].mxu0 }
 0x2d2   : > { %v9387_v60 = vpop.f32.mrb[86].mxu0 }
 0x2d3   : > { %v9390_v34 = vpop.f32.mrb[87].mxu0 }
 0x2d5   : > { %6730 = vmatmul.mubr.msk.bf16.gmra.mrb[24].mxu1 %vm399_vm1, %v10145_v2 }
 0x2d6   : > { %6733 = vmatprep.mubr.msk.bf16.mxu1 %vm399_vm1, %v10146_v3 }
 0x2d8   : > { %v9397_v58 = vpop.f32.mrb[88].mxu0 }
 0x2d9   : > { %v9399_v51 = vpop.f32.mrb[89].mxu0 }
 0x2da   : > { %v9401_v59 = vpop.f32.mrb[90].mxu0 }
 0x2db   : > { %v9404_v36 = vpop.f32.mrb[91].mxu0 }
 0x2dd   : > { %6734 = vmatmul.mubr.msk.bf16.gmra.mrb[28].mxu1 %vm399_vm1, %v4986_v50 }
 0x2e0   : > { %v9407_v11 = vpop.f32.mrb[92].mxu0 }
 0x2e1   : > { %v9409_v29 = vpop.f32.mrb[93].mxu0 }
 0x2e2   : > { %v9411_v48 = vpop.f32.mrb[94].mxu0 }
 0x2e3   : > { %v9413_v62 = vpop.f32.mrb[95].mxu0 }
 0x378   : > { %v6707_v30 = vpop.f32.mrb[0].mxu1 }
 0x379   : > { %v6773_v20 = vadd.f32 %v6707_v30, %v9310_v0  ;;  %v5081_v37 = vpop.f32.mrb[1].mxu1 }
 0x37a   : > { %v6774_v25 = vadd.f32 %v5081_v37, %v9314_v39  ;;  %v6708_v14 = vpop.f32.mrb[2].mxu1 }
 0x37b   : > { %v5249_v5 = vmul.f32 %v6773_v20, %v9418_v38  ;;  %v6775_v31 = vadd.f32 %v6708_v14, %v9316_v53  ;;  %v5084_v17 = vpop.f32.mrb[3].mxu1 }
 0x37c   : > { %v5247_v12 = vmul.f32 %v6774_v25, %v9418_v38  ;;  %v6776_v16 = vadd.f32 %v5084_v17, %v9320_v18 }
 0x37d   : > { %v5288_v0 = vadd.f32 %v9424_v55, %v5249_v5  ;;  %v5250_v10 = vmul.f32 %v6775_v31, %v9418_v38 }
 0x37e   : > { %v5286_v21 = vadd.f32 %v9424_v55, %v5247_v12  ;;  %v5248_v54 = vmul.f32 %v6776_v16, %v9418_v38 }
 0x37f   : > { %v5289_v39 = vadd.f32 %v9424_v55, %v5250_v10  ;;  %v5320_v4 = vmax.f32 %v5288_v0, 0.0 }
 0x380   : > { %v5287_v13 = vadd.f32 %v9424_v55, %v5248_v54  ;;  %v6711_v26 = vpop.f32.mrb[4].mxu1  ;;  %v5318_v7 = vmax.f32 %v5286_v21, 0.0 }
 0x381   : > { %v5321_v53 = vmax.f32 %v5289_v39, 0.0  ;;  %v6777_v41 = vadd.f32 %v6711_v26, %v9326_v6  ;;  %v5097_v42 = vpop.f32.mrb[5].mxu1 }
 0x382   : > { %v5319_v18 = vmax.f32 %v5287_v13, 0.0  ;;  %v6778_v46 = vadd.f32 %v5097_v42, %v9330_v63  ;;  %v6712_v61 = vpop.f32.mrb[6].mxu1 }
 0x383   : > { %v5351_v27 = vpack.c.bf16 %v5321_v53, %v5320_v4  ;;  %v5253_v56 = vmul.f32 %v6777_v41, %v9418_v38  ;;  %v6779_v44 = vadd.f32 %v6712_v61, %v9332_v57  ;;  %v5100_v2 = vpop.f32.mrb[7].mxu1 }
 0x384   : > { %v5350_v3 = vpack.c.bf16 %v5319_v18, %v5318_v7  ;;  %v5251_v35 = vmul.f32 %v6778_v46, %v9418_v38  ;;  %v6780_v33 = vadd.f32 %v5100_v2, %v9336_v24 }
 0x385   : > { %v5292_v15 = vadd.f32 %v9424_v55, %v5253_v56  ;;  %v5254_v6 = vmul.f32 %v6779_v44, %v9418_v38 }
 0x386   : > { %v5290_v50 = vadd.f32 %v9424_v55, %v5251_v35  ;;  %v5252_v63 = vmul.f32 %v6780_v33, %v9418_v38  ;;  %6741 = vmatprep.mubr.msk.bf16.mxu0 %vm399_vm1, %v5350_v3 }
 0x387   : > { %v5293_v30 = vadd.f32 %v9424_v55, %v5254_v6  ;;  %6742 = vmatmul.mubr.msk.bf16.vlgmr.msra.gmra.mrb[96].mxu0 %vm399_vm1, %v5351_v27  ;;  %v5324_v37 = vmax.f32 %v5292_v15, 0.0 }
 0x388   : > { %v5291_v57 = vadd.f32 %v9424_v55, %v5252_v63  ;;  %v6715_v20 = vpop.f32.mrb[8].mxu1  ;;  %v5322_v5 = vmax.f32 %v5290_v50, 0.0 }
 0x389   : > { %v5325_v25 = vmax.f32 %v5293_v30, 0.0  ;;  %v6781_v24 = vadd.f32 %v6715_v20, %v9342_v45  ;;  %v5113_v14 = vpop.f32.mrb[9].mxu1 }
 0x38a   : > { %v5323_v31 = vmax.f32 %v5291_v57, 0.0  ;;  %v6782_v17 = vadd.f32 %v5113_v14, %v9346_v43  ;;  %v6716_v12 = vpop.f32.mrb[10].mxu1 }
 0x38b   : > { %v5353_v16 = vpack.c.bf16 %v5325_v25, %v5324_v37  ;;  %v5257_v0 = vmul.f32 %v6781_v24, %v9418_v38  ;;  %v6783_v10 = vadd.f32 %v6716_v12, %v9348_v47  ;;  %v5116_v21 = vpop.f32.mrb[11].mxu1 }
 0x38c   : > { %v5352_v54 = vpack.c.bf16 %v5323_v31, %v5322_v5  ;;  %v5255_v39 = vmul.f32 %v6782_v17, %v9418_v38  ;;  %v6784_v13 = vadd.f32 %v5116_v21, %v9350_v22 }
 0x38d   : > { %v5296_v26 = vadd.f32 %v9424_v55, %v5257_v0  ;;  %v5258_v45 = vmul.f32 %v6783_v10, %v9418_v38 }
 0x38e   : > { %v5294_v4 = vadd.f32 %v9424_v55, %v5255_v39  ;;  %v5256_v43 = vmul.f32 %v6784_v13, %v9418_v38  ;;  %6745 = vmatprep.mubr.msk.bf16.mxu0 %vm399_vm1, %v5352_v54 }
 0x38f   : > { %v5297_v53 = vadd.f32 %v9424_v55, %v5258_v45  ;;  %6746 = vmatmul.mubr.msk.bf16.gmra.mrb[100].mxu0 %vm399_vm1, %v5353_v16  ;;  %v5328_v42 = vmax.f32 %v5296_v26, 0.0 }
 0x390   : > { %v5295_v47 = vadd.f32 %v9424_v55, %v5256_v43  ;;  %v6719_v41 = vpop.f32.mrb[12].mxu1  ;;  %v5326_v46 = vmax.f32 %v5294_v4, 0.0 }
 0x391   : > { %v5329_v7 = vmax.f32 %v5297_v53, 0.0  ;;  %v6785_v22 = vadd.f32 %v6719_v41, %v9356_v9  ;;  %v5129_v18 = vpop.f32.mrb[13].mxu1 }
 0x392   : > { %v5327_v61 = vmax.f32 %v5295_v47, 0.0  ;;  %v6786_v27 = vadd.f32 %v5129_v18, %v9358_v32  ;;  %v6720_v56 = vpop.f32.mrb[14].mxu1 }
 0x393   : > { %v5355_v44 = vpack.c.bf16 %v5329_v7, %v5328_v42  ;;  %v5261_v2 = vmul.f32 %v6785_v22, %v9418_v38  ;;  %v6787_v3 = vadd.f32 %v6720_v56, %v9360_v28  ;;  %v5132_v35 = vpop.f32.mrb[15].mxu1 }
 0x394   : > { %v5354_v33 = vpack.c.bf16 %v5327_v61, %v5326_v46  ;;  %v5259_v15 = vmul.f32 %v6786_v27, %v9418_v38  ;;  %v6788_v6 = vadd.f32 %v5132_v35, %v9362_v40 }
 0x395   : > { %v5300_v50 = vadd.f32 %v9424_v55, %v5261_v2  ;;  %v5262_v9 = vmul.f32 %v6787_v3, %v9418_v38 }
 0x396   : > { %v5298_v63 = vadd.f32 %v9424_v55, %v5259_v15  ;;  %v5260_v32 = vmul.f32 %v6788_v6, %v9418_v38  ;;  %6749 = vmatprep.mubr.msk.bf16.mxu0 %vm399_vm1, %v5354_v33 }
 0x397   : > { %v5301_v30 = vadd.f32 %v9424_v55, %v5262_v9  ;;  %6750 = vmatmul.mubr.msk.bf16.gmra.mrb[104].mxu0 %vm399_vm1, %v5355_v44  ;;  %v5332_v20 = vmax.f32 %v5300_v50, 0.0 }
 0x398   : > { %v5299_v28 = vadd.f32 %v9424_v55, %v5260_v32  ;;  %v6723_v57 = vpop.f32.mrb[16].mxu1  ;;  %v5330_v24 = vmax.f32 %v5298_v63, 0.0 }
 0x399   : > { %v5333_v37 = vmax.f32 %v5301_v30, 0.0  ;;  %v6789_v40 = vadd.f32 %v6723_v57, %v9369_v49  ;;  %v5145_v25 = vpop.f32.mrb[17].mxu1 }
 0x39a   : > { %v5331_v14 = vmax.f32 %v5299_v28, 0.0  ;;  %v6790_v5 = vadd.f32 %v5145_v25, %v9371_v19  ;;  %v6724_v31 = vpop.f32.mrb[18].mxu1 }
 0x39b   : > { %v5357_v17 = vpack.c.bf16 %v5333_v37, %v5332_v20  ;;  %v5265_v12 = vmul.f32 %v6789_v40, %v9418_v38  ;;  %v6791_v16 = vadd.f32 %v6724_v31, %v9373_v1  ;;  %v5148_v0 = vpop.f32.mrb[19].mxu1 }
 0x39c   : > { %v5356_v10 = vpack.c.bf16 %v5331_v14, %v5330_v24  ;;  %v5263_v21 = vmul.f32 %v6790_v5, %v9418_v38  ;;  %v6792_v54 = vadd.f32 %v5148_v0, %v9375_v52 }
 0x39d   : > { %v5304_v39 = vadd.f32 %v9424_v55, %v5265_v12  ;;  %v5266_v49 = vmul.f32 %v6791_v16, %v9418_v38 }
 0x39e   : > { %v5302_v13 = vadd.f32 %v9424_v55, %v5263_v21  ;;  %v5264_v19 = vmul.f32 %v6792_v54, %v9418_v38  ;;  %6753 = vmatprep.mubr.msk.bf16.mxu0 %vm399_vm1, %v5356_v10 }
 0x39f   : > { %v5305_v26 = vadd.f32 %v9424_v55, %v5266_v49  ;;  %6754 = vmatmul.mubr.msk.bf16.gmra.mrb[108].mxu0 %vm399_vm1, %v5357_v17  ;;  %v5336_v4 = vmax.f32 %v5304_v39, 0.0 }
 0x3a0   : > { %v5303_v1 = vadd.f32 %v9424_v55, %v5264_v19  ;;  %v6727_v45 = vpop.f32.mrb[20].mxu1  ;;  %v5334_v47 = vmax.f32 %v5302_v13, 0.0 }
 0x3a1   : > { %v5337_v43 = vmax.f32 %v5305_v26, 0.0  ;;  %v6793_v52 = vadd.f32 %v6727_v45, %v9383_v8  ;;  %v5161_v53 = vpop.f32.mrb[21].mxu1 }
 0x3a2   : > { %v5335_v41 = vmax.f32 %v5303_v1, 0.0  ;;  %v6794_v42 = vadd.f32 %v5161_v53, %v9385_v23  ;;  %v6728_v7 = vpop.f32.mrb[22].mxu1 }
 0x3a3   : > { %v5359_v22 = vpack.c.bf16 %v5337_v43, %v5336_v4  ;;  %v5269_v18 = vmul.f32 %v6793_v52, %v9418_v38  ;;  %v6795_v46 = vadd.f32 %v6728_v7, %v9387_v60  ;;  %v5164_v61 = vpop.f32.mrb[23].mxu1 }
 0x3a4   : > { %v5358_v27 = vpack.c.bf16 %v5335_v41, %v5334_v47  ;;  %v5267_v56 = vmul.f32 %v6794_v42, %v9418_v38  ;;  %v6796_v44 = vadd.f32 %v5164_v61, %v9390_v34 }
 0x3a5   : > { %v5308_v2 = vadd.f32 %v9424_v55, %v5269_v18  ;;  %v5270_v8 = vmul.f32 %v6795_v46, %v9418_v38 }
 0x3a6   : > { %v5306_v3 = vadd.f32 %v9424_v55, %v5267_v56  ;;  %v5268_v23 = vmul.f32 %v6796_v44, %v9418_v38  ;;  %6757 = vmatprep.mubr.msk.bf16.mxu0 %vm399_vm1, %v5358_v27 }
 0x3a7   : > { %v5309_v35 = vadd.f32 %v9424_v55, %v5270_v8  ;;  %6758 = vmatmul.mubr.msk.bf16.gmra.mrb[112].mxu0 %vm399_vm1, %v5359_v22  ;;  %v5340_v15 = vmax.f32 %v5308_v2, 0.0 }
 0x3a8   : > { %v5307_v60 = vadd.f32 %v9424_v55, %v5268_v23  ;;  %v6731_v33 = vpop.f32.mrb[24].mxu1  ;;  %v5338_v9 = vmax.f32 %v5306_v3, 0.0 }
 0x3a9   : > { %v5341_v6 = vmax.f32 %v5309_v35, 0.0  ;;  %v6797_v34 = vadd.f32 %v6731_v33, %v9397_v58  ;;  %v5177_v50 = vpop.f32.mrb[25].mxu1  ;;  %v10149_v35 = vld [vmem:[#allocation14_spill] sm:$0xff] }
 0x3aa   : > { %v5339_v63 = vmax.f32 %v5307_v60, 0.0  ;;  %v6798_v32 = vadd.f32 %v5177_v50, %v9399_v51  ;;  %v6732_v30 = vpop.f32.mrb[26].mxu1 }
 0x3ab   : > { %v5361_v28 = vpack.c.bf16 %v5341_v6, %v5340_v15  ;;  %v5273_v57 = vmul.f32 %v6797_v34, %v9418_v38  ;;  %v6799_v20 = vadd.f32 %v6732_v30, %v9401_v59  ;;  %v5180_v37 = vpop.f32.mrb[27].mxu1  ;;  %v10150_v15 = vld [vmem:[#allocation11_spill] sm:$0xff]  ;;  %v10152_v30 = vld [vmem:[#allocation13_spill] sm:$0xff] }
 0x3ac   : > { %v5360_v40 = vpack.c.bf16 %v5339_v63, %v5338_v9  ;;  %v5271_v25 = vmul.f32 %v6798_v32, %v9418_v38  ;;  %v6800_v24 = vadd.f32 %v5180_v37, %v9404_v36  ;;  %v10151_v9 = vld [vmem:[#allocation15_spill] sm:$0xff] }
 0x3ad   : > { %v5312_v14 = vadd.f32 %v9424_v55, %v5273_v57  ;;  %v5274_v58 = vmul.f32 %v6799_v20, %v9418_v38 }
 0x3ae   : > { %v5310_v5 = vadd.f32 %v9424_v55, %v5271_v25  ;;  %v5272_v51 = vmul.f32 %v6800_v24, %v9418_v38  ;;  %6761 = vmatprep.mubr.msk.bf16.mxu0 %vm399_vm1, %v5360_v40 }
 0x3af   : > { %v5313_v31 = vadd.f32 %v9424_v55, %v5274_v58  ;;  %6762 = vmatmul.mubr.msk.bf16.gmra.mrb[116].mxu0 %vm399_vm1, %v5361_v28  ;;  %v5344_v12 = vmax.f32 %v5312_v14, 0.0 }
 0x3b0   : > { %v5311_v59 = vadd.f32 %v9424_v55, %v5272_v51  ;;  %v6735_v17 = vpop.f32.mrb[28].mxu1  ;;  %v5342_v10 = vmax.f32 %v5310_v5, 0.0 }
 0x3b1   : > { %v5345_v16 = vmax.f32 %v5313_v31, 0.0  ;;  %v6801_v36 = vadd.f32 %v6735_v17, %v9407_v11  ;;  %v5193_v0 = vpop.f32.mrb[29].mxu1  ;;  %v10153_v17 = vld [vmem:[#allocation18_spill] sm:$0xff] }
 0x3b2   : > { %v5343_v21 = vmax.f32 %v5311_v59, 0.0  ;;  %v6802_v54 = vadd.f32 %v5193_v0, %v9409_v29  ;;  %v6736_v39 = vpop.f32.mrb[30].mxu1 }
 0x3b3   : > { %v5363_v49 = vpack.c.bf16 %v5345_v16, %v5344_v12  ;;  %v5277_v13 = vmul.f32 %v6801_v36, %v9418_v38  ;;  %v6803_v19 = vadd.f32 %v6736_v39, %v9411_v48  ;;  %v5196_v26 = vpop.f32.mrb[31].mxu1  ;;  %v10154_v36 = vld [vmem:[#allocation16_spill] sm:$0xff] }
 0x3b4   : > { %v5362_v1 = vpack.c.bf16 %v5343_v21, %v5342_v10  ;;  %v5275_v45 = vmul.f32 %v6802_v54, %v9418_v38  ;;  %v6804_v4 = vadd.f32 %v5196_v26, %v9413_v62  ;;  %v10155_v54 = vld [vmem:[#allocation19_spill] sm:$0xff] }
 0x3b5   : > { %v5316_v43 = vadd.f32 %v9424_v55, %v5277_v13  ;;  %v5278_v11 = vmul.f32 %v6803_v19, %v9418_v38  ;;  %v10156_v13 = vld [vmem:[#allocation17_spill] sm:$0xff] }
 0x3b6   : > { %v5314_v52 = vadd.f32 %v9424_v55, %v5275_v45  ;;  %v5276_v29 = vmul.f32 %v6804_v4, %v9418_v38  ;;  %6765 = vmatprep.mubr.msk.bf16.mxu0 %vm399_vm1, %v5362_v1  ;;  %v9543_v38 = vld [vmem:[%s9811_s8] ss:$0 sm:$0xff] }
 0x3b7   : > { %v5317_v53 = vadd.f32 %v9424_v55, %v5278_v11  ;;  %6766 = vmatmul.mubr.msk.bf16.gmra.mrb[120].mxu0 %vm399_vm1, %v5363_v49  ;;  %v5348_v47 = vmax.f32 %v5316_v43, 0.0 }
 0x3b8   : > { %v5315_v48 = vadd.f32 %v9424_v55, %v5276_v29  ;;  %v5346_v62 = vmax.f32 %v5314_v52, 0.0  ;;  %v9548_v55 = vld [vmem:[%s9812_s9] ss:$0 sm:$0xff] }
 0x3b9   : > { %v5349_v41 = vmax.f32 %v5317_v53, 0.0 }
 0x3ba   : > { %v5347_v42 = vmax.f32 %v5315_v48, 0.0 }
 0x3bb   : > { %v5365_v7 = vpack.c.bf16 %v5349_v41, %v5348_v47 }
 0x3bc   : > { %v5364_v22 = vpack.c.bf16 %v5347_v42, %v5346_v62  ;;  %v10157_v62 = vld [vmem:[#allocation22_spill] sm:$0xff] }
 0x3be   : > { %6769 = vmatprep.mubr.msk.bf16.mxu0 %vm399_vm1, %v5364_v22  ;;  %v10158_v22 = vld [vmem:[#allocation20_spill] sm:$0xff] }
 0x3bf   : > { %6770 = vmatmul.mubr.msk.bf16.gmra.mrb[124].mxu0 %vm399_vm1, %v5365_v7 }
 0x45a   : > { %v6743_v18 = vpop.f32.mrb[96].mxu0 }
 0x45b   : > { %v5600_v46 = vmul.f32 %v6743_v18, %v9543_v38  ;;  %v5464_v61 = vpop.f32.mrb[97].mxu0 }
 0x45c   : > { %v5598_v27 = vmul.f32 %v9543_v38, %v5464_v61  ;;  %v6744_v56 = vpop.f32.mrb[98].mxu0 }
 0x45d   : > { %v5639_v44 = vadd.f32 %v9548_v55, %v5600_v46  ;;  %v5601_v2 = vmul.f32 %v6744_v56, %v9543_v38  ;;  %v5467_v8 = vpop.f32.mrb[99].mxu0 }
 0x45e   : > { %v5637_v3 = vadd.f32 %v9548_v55, %v5598_v27  ;;  %v5599_v23 = vmul.f32 %v9543_v38, %v5467_v8  ;;  %v10159_v27 = vld [vmem:[#allocation23_spill] sm:$0xff] }
 0x45f   : > { %v5671_v60 = vadd.f32 %v5639_v44, %v10149_v35  ;;  %v5640_v33 = vadd.f32 %v9548_v55, %v5601_v2  ;;  %v10160_v2 = vld [vmem:[#allocation21_spill] sm:$0xff] }
 0x460   : > { %v5669_v6 = vadd.f32 %v5637_v3, %v10150_v15  ;;  %v5638_v34 = vadd.f32 %v9548_v55, %v5599_v23 }
 0x461   : > { %5703 = vst [vmem:[%s9561_s30 + $0x10] sm:$0xff] %v5671_v60  ;;  %v5735_v50 = vmax.f32 %v5671_v60, 0.0  ;;  %v5672_v63 = vadd.f32 %v5640_v33, %v10151_v9 }
 0x462   : > { %5701 = vst [vmem:[%s9561_s30] sm:$0xff] %v5669_v6  ;;  %v5733_v32 = vmax.f32 %v5669_v6, 0.0  ;;  %v5670_v28 = vadd.f32 %v5638_v34, %v10152_v30  ;;  %v6747_v57 = vpop.f32.mrb[100].mxu0  ;;  %v10161_v30 = vld [vmem:[#allocation26_spill] sm:$0xff] }
 0x463   : > { %5767 = vst [vmem:[%s9567_s12 + $0x10] sm:$0xff] %v5735_v50  ;;  %5704 = vst [vmem:[%s9561_s30 + $0x18] sm:$0xff] %v5672_v63  ;;  %v5736_v20 = vmax.f32 %v5672_v63, 0.0  ;;  %v5604_v37 = vmul.f32 %v6747_v57, %v9543_v38  ;;  %v5480_v40 = vpop.f32.mrb[101].mxu0 }
 0x464   : > { %5765 = vst [vmem:[%s9567_s12] sm:$0xff] %v5733_v32  ;;  %5702 = vst [vmem:[%s9561_s30 + $0x8] sm:$0xff] %v5670_v28  ;;  %v5734_v25 = vmax.f32 %v5670_v28, 0.0  ;;  %v5602_v24 = vmul.f32 %v9543_v38, %v5480_v40  ;;  %v6748_v14 = vpop.f32.mrb[102].mxu0 }
 0x465   : > { %5768 = vst [vmem:[%s9567_s12 + $0x18] sm:$0xff] %v5736_v20  ;;  %v5643_v58 = vadd.f32 %v9548_v55, %v5604_v37  ;;  %v5605_v5 = vmul.f32 %v6748_v14, %v9543_v38  ;;  %v5483_v51 = vpop.f32.mrb[103].mxu0  ;;  %v10162_v20 = vld [vmem:[#allocation24_spill] sm:$0xff] }
 0x466   : > { %5766 = vst [vmem:[%s9567_s12 + $0x8] sm:$0xff] %v5734_v25  ;;  %v5641_v31 = vadd.f32 %v9548_v55, %v5602_v24  ;;  %v5603_v59 = vmul.f32 %v9543_v38, %v5483_v51  ;;  %v10163_v24 = vld [vmem:[#allocation27_spill] sm:$0xff] }
 0x467   : > { %v5675_v12 = vadd.f32 %v5643_v58, %v10153_v17  ;;  %v5644_v16 = vadd.f32 %v9548_v55, %v5605_v5  ;;  %v10164_v5 = vld [vmem:[#allocation25_spill] sm:$0xff] }
 0x468   : > { %v5673_v0 = vadd.f32 %v5641_v31, %v10154_v36  ;;  %v5642_v10 = vadd.f32 %v9548_v55, %v5603_v59 }
 0x469   : > { %5707 = vst [vmem:[%s9561_s30 + $0x30] sm:$0xff] %v5675_v12  ;;  %v5739_v21 = vmax.f32 %v5675_v12, 0.0  ;;  %v5676_v39 = vadd.f32 %v5644_v16, %v10155_v54 }
 0x46a   : > { %5705 = vst [vmem:[%s9561_s30 + $0x20] sm:$0xff] %v5673_v0  ;;  %v5737_v49 = vmax.f32 %v5673_v0, 0.0  ;;  %v5674_v19 = vadd.f32 %v5642_v10, %v10156_v13  ;;  %v6751_v26 = vpop.f32.mrb[104].mxu0  ;;  %v10165_v13 = vld [vmem:[#allocation32_spill] sm:$0xff] }
 0x46b   : > { %5771 = vst [vmem:[%s9567_s12 + $0x30] sm:$0xff] %v5739_v21  ;;  %5708 = vst [vmem:[%s9561_s30 + $0x38] sm:$0xff] %v5676_v39  ;;  %v5740_v1 = vmax.f32 %v5676_v39, 0.0  ;;  %v5608_v45 = vmul.f32 %v6751_v26, %v9543_v38  ;;  %v5496_v4 = vpop.f32.mrb[105].mxu0 }
 0x46c   : > { %5769 = vst [vmem:[%s9567_s12 + $0x20] sm:$0xff] %v5737_v49  ;;  %5706 = vst [vmem:[%s9561_s30 + $0x28] sm:$0xff] %v5674_v19  ;;  %v5738_v43 = vmax.f32 %v5674_v19, 0.0  ;;  %v5606_v11 = vmul.f32 %v9543_v38, %v5496_v4  ;;  %v6752_v52 = vpop.f32.mrb[106].mxu0 }
 0x46d   : > { %5772 = vst [vmem:[%s9567_s12 + $0x38] sm:$0xff] %v5740_v1  ;;  %v5647_v29 = vadd.f32 %v9548_v55, %v5608_v45  ;;  %v5609_v53 = vmul.f32 %v6752_v52, %v9543_v38  ;;  %v5499_v48 = vpop.f32.mrb[107].mxu0  ;;  %v10166_v1 = vld [vmem:[#allocation29_spill] sm:$0xff] }
 0x46e   : > { %5770 = vst [vmem:[%s9567_s12 + $0x28] sm:$0xff] %v5738_v43  ;;  %v5645_v47 = vadd.f32 %v9548_v55, %v5606_v11  ;;  %v5607_v41 = vmul.f32 %v9543_v38, %v5499_v48  ;;  %v10167_v11 = vld [vmem:[#allocation33_spill] sm:$0xff] }
 0x46f   : > { %v5679_v42 = vadd.f32 %v5647_v29, %v10157_v62  ;;  %v5648_v7 = vadd.f32 %v9548_v55, %v5609_v53  ;;  %v10168_v53 = vld [vmem:[#allocation30_spill] sm:$0xff] }
 0x470   : > { %v5677_v18 = vadd.f32 %v5645_v47, %v10158_v22  ;;  %v5646_v46 = vadd.f32 %v9548_v55, %v5607_v41 }
 0x471   : > { %5711 = vst [vmem:[%s9561_s30 + $0x50] sm:$0xff] %v5679_v42  ;;  %v5743_v61 = vmax.f32 %v5679_v42, 0.0  ;;  %v5680_v56 = vadd.f32 %v5648_v7, %v10159_v27 }
 0x472   : > { %5709 = vst [vmem:[%s9561_s30 + $0x40] sm:$0xff] %v5677_v18  ;;  %v5741_v44 = vmax.f32 %v5677_v18, 0.0  ;;  %v5678_v8 = vadd.f32 %v5646_v46, %v10160_v2  ;;  %v6755_v3 = vpop.f32.mrb[108].mxu0  ;;  %v10169_v2 = vld [vmem:[#allocation39_spill] sm:$0xff] }
 0x473   : > { %5775 = vst [vmem:[%s9567_s12 + $0x50] sm:$0xff] %v5743_v61  ;;  %5712 = vst [vmem:[%s9561_s30 + $0x58] sm:$0xff] %v5680_v56  ;;  %v5744_v23 = vmax.f32 %v5680_v56, 0.0  ;;  %v5612_v35 = vmul.f32 %v6755_v3, %v9543_v38  ;;  %v5512_v60 = vpop.f32.mrb[109].mxu0 }
 0x474   : > { %5773 = vst [vmem:[%s9567_s12 + $0x40] sm:$0xff] %v5741_v44  ;;  %5710 = vst [vmem:[%s9561_s30 + $0x48] sm:$0xff] %v5678_v8  ;;  %v5742_v33 = vmax.f32 %v5678_v8, 0.0  ;;  %v5610_v15 = vmul.f32 %v9543_v38, %v5512_v60  ;;  %v6756_v6 = vpop.f32.mrb[110].mxu0 }
 0x475   : > { %5776 = vst [vmem:[%s9567_s12 + $0x58] sm:$0xff] %v5744_v23  ;;  %v5651_v34 = vadd.f32 %v9548_v55, %v5612_v35  ;;  %v5613_v50 = vmul.f32 %v6756_v6, %v9543_v38  ;;  %v5515_v9 = vpop.f32.mrb[111].mxu0  ;;  %v10170_v23 = vld [vmem:[#allocation35_spill] sm:$0xff] }
 0x476   : > { %5774 = vst [vmem:[%s9567_s12 + $0x48] sm:$0xff] %v5742_v33  ;;  %v5649_v63 = vadd.f32 %v9548_v55, %v5610_v15  ;;  %v5611_v32 = vmul.f32 %v9543_v38, %v5515_v9  ;;  %v10171_v15 = vld [vmem:[#allocation40_spill] sm:$0xff] }
 0x477   : > { %v5683_v28 = vadd.f32 %v5651_v34, %v10161_v30  ;;  %v5652_v57 = vadd.f32 %v9548_v55, %v5613_v50  ;;  %v10172_v50 = vld [vmem:[#allocation36_spill] sm:$0xff] }
 0x478   : > { %v5681_v37 = vadd.f32 %v5649_v63, %v10162_v20  ;;  %v5650_v40 = vadd.f32 %v9548_v55, %v5611_v32 }
 0x479   : > { %5715 = vst [vmem:[%s9561_s30 + $0x70] sm:$0xff] %v5683_v28  ;;  %v5747_v25 = vmax.f32 %v5683_v28, 0.0  ;;  %v5684_v14 = vadd.f32 %v5652_v57, %v10163_v24 }
 0x47a   : > { %5713 = vst [vmem:[%s9561_s30 + $0x60] sm:$0xff] %v5681_v37  ;;  %v5745_v58 = vmax.f32 %v5681_v37, 0.0  ;;  %v5682_v51 = vadd.f32 %v5650_v40, %v10164_v5  ;;  %v6759_v31 = vpop.f32.mrb[112].mxu0  ;;  %v10173_v5 = vld [vmem:[#allocation48_spill] sm:$0xff] }
 0x47b   : > { %5779 = vst [vmem:[%s9567_s12 + $0x70] sm:$0xff] %v5747_v25  ;;  %5716 = vst [vmem:[%s9561_s30 + $0x78] sm:$0xff] %v5684_v14  ;;  %v5748_v59 = vmax.f32 %v5684_v14, 0.0  ;;  %v5616_v17 = vmul.f32 %v6759_v31, %v9543_v38  ;;  %v5528_v12 = vpop.f32.mrb[113].mxu0 }
 0x47c   : > { %5777 = vst [vmem:[%s9567_s12 + $0x60] sm:$0xff] %v5745_v58  ;;  %5714 = vst [vmem:[%s9561_s30 + $0x68] sm:$0xff] %v5682_v51  ;;  %v5746_v16 = vmax.f32 %v5682_v51, 0.0  ;;  %v5614_v36 = vmul.f32 %v9543_v38, %v5528_v12  ;;  %v6760_v0 = vpop.f32.mrb[114].mxu0 }
 0x47d   : > { %5780 = vst [vmem:[%s9567_s12 + $0x78] sm:$0xff] %v5748_v59  ;;  %v5655_v10 = vadd.f32 %v9548_v55, %v5616_v17  ;;  %v5617_v21 = vmul.f32 %v6760_v0, %v9543_v38  ;;  %v5531_v54 = vpop.f32.mrb[115].mxu0  ;;  %v10174_v59 = vld [vmem:[#allocation44_spill] sm:$0xff] }
 0x47e   : > { %5778 = vst [vmem:[%s9567_s12 + $0x68] sm:$0xff] %v5746_v16  ;;  %v5653_v39 = vadd.f32 %v9548_v55, %v5614_v36  ;;  %v5615_v49 = vmul.f32 %v9543_v38, %v5531_v54  ;;  %v10175_v36 = vld [vmem:[#allocation49_spill] sm:$0xff] }
 0x47f   : > { %v5687_v19 = vadd.f32 %v5655_v10, %v10165_v13  ;;  %v5656_v26 = vadd.f32 %v9548_v55, %v5617_v21  ;;  %v10176_v21 = vld [vmem:[#allocation45_spill] sm:$0xff] }
 0x480   : > { %v5685_v45 = vadd.f32 %v5653_v39, %v10166_v1  ;;  %v5654_v4 = vadd.f32 %v9548_v55, %v5615_v49 }
 0x481   : > { %5719 = vst [vmem:[%s9561_s30 + $0x90] sm:$0xff] %v5687_v19  ;;  %v5751_v43 = vmax.f32 %v5687_v19, 0.0  ;;  %v5688_v52 = vadd.f32 %v5656_v26, %v10167_v11 }
 0x482   : > { %5717 = vst [vmem:[%s9561_s30 + $0x80] sm:$0xff] %v5685_v45  ;;  %v5749_v29 = vmax.f32 %v5685_v45, 0.0  ;;  %v5686_v48 = vadd.f32 %v5654_v4, %v10168_v53  ;;  %v6763_v47 = vpop.f32.mrb[116].mxu0  ;;  %v10177_v53 = vld [vmem:[#allocation55_spill] sm:$0xff] }
 0x483   : > { %5783 = vst [vmem:[%s9567_s12 + $0x90] sm:$0xff] %v5751_v43  ;;  %5720 = vst [vmem:[%s9561_s30 + $0x98] sm:$0xff] %v5688_v52  ;;  %v5752_v41 = vmax.f32 %v5688_v52, 0.0  ;;  %v5620_v62 = vmul.f32 %v6763_v47, %v9543_v38  ;;  %v5544_v42 = vpop.f32.mrb[117].mxu0 }
 0x484   : > { %5781 = vst [vmem:[%s9567_s12 + $0x80] sm:$0xff] %v5749_v29  ;;  %5718 = vst [vmem:[%s9561_s30 + $0x88] sm:$0xff] %v5686_v48  ;;  %v5750_v7 = vmax.f32 %v5686_v48, 0.0  ;;  %v5618_v22 = vmul.f32 %v9543_v38, %v5544_v42  ;;  %v6764_v18 = vpop.f32.mrb[118].mxu0 }
 0x485   : > { %5784 = vst [vmem:[%s9567_s12 + $0x98] sm:$0xff] %v5752_v41  ;;  %v5659_v46 = vadd.f32 %v9548_v55, %v5620_v62  ;;  %v5621_v61 = vmul.f32 %v6764_v18, %v9543_v38  ;;  %v5547_v27 = vpop.f32.mrb[119].mxu0  ;;  %v10178_v41 = vld [vmem:[#allocation52_spill] sm:$0xff] }
 0x486   : > { %5782 = vst [vmem:[%s9567_s12 + $0x88] sm:$0xff] %v5750_v7  ;;  %v5657_v56 = vadd.f32 %v9548_v55, %v5618_v22  ;;  %v5619_v44 = vmul.f32 %v9543_v38, %v5547_v27  ;;  %v10179_v22 = vld [vmem:[#allocation56_spill] sm:$0xff] }
 0x487   : > { %v5691_v8 = vadd.f32 %v5659_v46, %v10169_v2  ;;  %v5660_v3 = vadd.f32 %v9548_v55, %v5621_v61  ;;  %v10180_v46 = vld [vmem:[#allocation53_spill] sm:$0xff] }
 0x488   : > { %v5689_v35 = vadd.f32 %v5657_v56, %v10170_v23  ;;  %v5658_v60 = vadd.f32 %v9548_v55, %v5619_v44 }
 0x489   : > { %5723 = vst [vmem:[%s9561_s30 + $0xb0] sm:$0xff] %v5691_v8  ;;  %v5755_v33 = vmax.f32 %v5691_v8, 0.0  ;;  %v5692_v6 = vadd.f32 %v5660_v3, %v10171_v15 }
 0x48a   : > { %5721 = vst [vmem:[%s9561_s30 + $0xa0] sm:$0xff] %v5689_v35  ;;  %v5753_v34 = vmax.f32 %v5689_v35, 0.0  ;;  %v5690_v9 = vadd.f32 %v5658_v60, %v10172_v50  ;;  %v6767_v63 = vpop.f32.mrb[120].mxu0 }
 0x48b   : > { %5787 = vst [vmem:[%s9567_s12 + $0xb0] sm:$0xff] %v5755_v33  ;;  %5724 = vst [vmem:[%s9561_s30 + $0xb8] sm:$0xff] %v5692_v6  ;;  %v5756_v32 = vmax.f32 %v5692_v6, 0.0  ;;  %v5624_v30 = vmul.f32 %v6767_v63, %v9543_v38  ;;  %v5560_v28 = vpop.f32.mrb[121].mxu0 }
 0x48c   : > { %5785 = vst [vmem:[%s9567_s12 + $0xa0] sm:$0xff] %v5753_v34  ;;  %5722 = vst [vmem:[%s9561_s30 + $0xa8] sm:$0xff] %v5690_v9  ;;  %v5754_v57 = vmax.f32 %v5690_v9, 0.0  ;;  %v5622_v20 = vmul.f32 %v9543_v38, %v5560_v28  ;;  %v6768_v37 = vpop.f32.mrb[122].mxu0 }
 0x48d   : > { %5788 = vst [vmem:[%s9567_s12 + $0xb8] sm:$0xff] %v5756_v32  ;;  %v5663_v40 = vadd.f32 %v9548_v55, %v5624_v30  ;;  %v5625_v25 = vmul.f32 %v6768_v37, %v9543_v38  ;;  %v5563_v24 = vpop.f32.mrb[123].mxu0 }
 0x48e   : > { %5786 = vst [vmem:[%s9567_s12 + $0xa8] sm:$0xff] %v5754_v57  ;;  %v5661_v14 = vadd.f32 %v9548_v55, %v5622_v20  ;;  %v5623_v58 = vmul.f32 %v9543_v38, %v5563_v24 }
 0x48f   : > { %v5695_v51 = vadd.f32 %v5663_v40, %v10173_v5  ;;  %v5664_v31 = vadd.f32 %v9548_v55, %v5625_v25 }
 0x490   : > { %v5693_v17 = vadd.f32 %v5661_v14, %v10174_v59  ;;  %v5662_v12 = vadd.f32 %v9548_v55, %v5623_v58 }
 0x491   : > { %5727 = vst [vmem:[%s9561_s30 + $0xd0] sm:$0xff] %v5695_v51  ;;  %v5759_v16 = vmax.f32 %v5695_v51, 0.0  ;;  %v5696_v0 = vadd.f32 %v5664_v31, %v10175_v36 }
 0x492   : > { %5725 = vst [vmem:[%s9561_s30 + $0xc0] sm:$0xff] %v5693_v17  ;;  %v5757_v10 = vmax.f32 %v5693_v17, 0.0  ;;  %v5694_v54 = vadd.f32 %v5662_v12, %v10176_v21  ;;  %v6771_v39 = vpop.f32.mrb[124].mxu0 }
 0x493   : > { %5791 = vst [vmem:[%s9567_s12 + $0xd0] sm:$0xff] %v5759_v16  ;;  %5728 = vst [vmem:[%s9561_s30 + $0xd8] sm:$0xff] %v5696_v0  ;;  %v5760_v49 = vmax.f32 %v5696_v0, 0.0  ;;  %v5628_v13 = vmul.f32 %v6771_v39, %v9543_v38  ;;  %v5576_v19 = vpop.f32.mrb[125].mxu0 }
 0x494   : > { %5789 = vst [vmem:[%s9567_s12 + $0xc0] sm:$0xff] %v5757_v10  ;;  %5726 = vst [vmem:[%s9561_s30 + $0xc8] sm:$0xff] %v5694_v54  ;;  %v5758_v26 = vmax.f32 %v5694_v54, 0.0  ;;  %v5626_v1 = vmul.f32 %v9543_v38, %v5576_v19  ;;  %v6772_v45 = vpop.f32.mrb[126].mxu0 }
 0x495   : > { %5792 = vst [vmem:[%s9567_s12 + $0xd8] sm:$0xff] %v5760_v49  ;;  %v5667_v4 = vadd.f32 %v9548_v55, %v5628_v13  ;;  %v5629_v43 = vmul.f32 %v6772_v45, %v9543_v38  ;;  %v5579_v11 = vpop.f32.mrb[127].mxu0 }
 0x496   : > { %5790 = vst [vmem:[%s9567_s12 + $0xc8] sm:$0xff] %v5758_v26  ;;  %v5665_v52 = vadd.f32 %v9548_v55, %v5626_v1  ;;  %v5627_v29 = vmul.f32 %v9543_v38, %v5579_v11 }
 0x497   : > { %v5699_v48 = vadd.f32 %v5667_v4, %v10177_v53  ;;  %v5668_v47 = vadd.f32 %v9548_v55, %v5629_v43 }
 0x498   : > { %v5697_v62 = vadd.f32 %v5665_v52, %v10178_v41  ;;  %v5666_v42 = vadd.f32 %v9548_v55, %v5627_v29 }
 0x499   : > { %5731 = vst [vmem:[%s9561_s30 + $0xf0] sm:$0xff] %v5699_v48  ;;  %v5763_v7 = vmax.f32 %v5699_v48, 0.0  ;;  %v5700_v38 = vadd.f32 %v5668_v47, %v10179_v22 }
 0x49a   : > { %5729 = vst [vmem:[%s9561_s30 + $0xe0] sm:$0xff] %v5697_v62  ;;  %v5761_v18 = vmax.f32 %v5697_v62, 0.0  ;;  %v5698_v61 = vadd.f32 %v5666_v42, %v10180_v46 }
 0x49b   : > { %5795 = vst [vmem:[%s9567_s12 + $0xf0] sm:$0xff] %v5763_v7  ;;  %5732 = vst [vmem:[%s9561_s30 + $0xf8] sm:$0xff] %v5700_v38  ;;  %v5764_v55 = vmax.f32 %v5700_v38, 0.0 }
 0x49c   : > { %5793 = vst [vmem:[%s9567_s12 + $0xe0] sm:$0xff] %v5761_v18  ;;  %5730 = vst [vmem:[%s9561_s30 + $0xe8] sm:$0xff] %v5698_v61  ;;  %v5762_v27 = vmax.f32 %v5698_v61, 0.0 }
 0x49d   : > { %5796 = vst [vmem:[%s9567_s12 + $0xf8] sm:$0xff] %v5764_v55 }
 0x49e   : > { %7156 = shalt.err (!%p7153_p3)
}
 0x49f   : > { %s7157_s30 = scalar_lea.hbm %s9715_s16, 4096  ;;  %s7161_s0 = scalar_lea.hbm %s9814_s11, 8192 }
 0x4a0   : > { %p7158_p4 = scmp.ne.s32.totalorder %s9715_s16, %s7157_s30  ;;  %p7162_p9 = scmp.lt.u32.totalorder %s9715_s16, %s9814_s11 }
 0x4a1   : > { %p7163_p10 = scmp.lt.u32.totalorder %s7161_s0, %s7157_s30  ;;  %p7165_p12 = scmp.lt.u32.totalorder %s7157_s30, %s9715_s16 }
 0x4a2   : > { %p7159_p7 = pnand %p7158_p4, %p7343_p5 }
 0x4a3   : > { %p7164_p11 = por %p7163_p10, %p7162_p9 }
 0x4a4   : > { %p7160_p8 = pneg %p7159_p7 }
 0x4a5   : > { %p7166_p13 = por %p7165_p12, %p7164_p11 }
 0x4a7   : > { %p7167_p0 = pnand %p7166_p13, %p7160_p8 }
 0x4a9   : > { %7170 = shalt.err (!%p7167_p0)
}
 0x4aa   : > { %s7242_s2 = smov 128   ;;  %s7243_s24 = smov 8   ;;  %5794 = vst [vmem:[%s9567_s12 + $0xe8] sm:$0xff] %v5762_v27 }
 0x4ab   : > { %7030 = dma.vmem_to_hbm [thread:$0]  (%p7343_p5), %s9717_s14, 4096, %s9715_s16, %s5803_s21, %s7242_s2, %s7242_s2, %s7243_s24  }
 0x4ac   : > { %s5798_s30 = scalar_lea.sflag [#allocation4], %s9538_s22  ;;  %s7171_s13 = scalar_lea.vmem %s9728_s15, 4096 }
 0x4ad   : > { %p7172_p1 = scmp.ne.s32.totalorder %s9728_s15, %s7171_s13  ;;  %s7244_s25 = smov [#allocation3]  }
 0x4ae   : > { %s7175_s0 = sshll.u32 %s7244_s25, 4  ;;  %s7176_s0 = int_to_ptr.vmem [resolvable:$false] %s7175_s0 }
 0x4af   : > { %p7173_p2 = pnand %p7172_p1, %p7343_p5  ;;  %s7177_s26 = scalar_lea.vmem %s7176_s0, 8192 }
 0x4b0   : > { %p7178_p4 = scmp.lt.s32.totalorder %s9728_s15, %s7176_s0  ;;  %p7179_p7 = scmp.lt.s32.totalorder %s7177_s26, %s7171_s13 }
 0x4b1   : > { %p7174_p3 = pneg %p7173_p2 }
 0x4b2   : > { %p7180_p8 = por %p7179_p7, %p7178_p4 }
 0x4b4   : > { %p7181_p9 = pnand %p7180_p8, %p7174_p3 }
 0x4b6   : > { %7184 = shalt.err (!%p7181_p9)
}
 0x4b7   : > { %s7185_s12 = scalar_lea.hbm %s9726_s29, 4096  ;;  %s7189_s21 = scalar_lea.hbm %s9813_s10, 8192 }
 0x4b8   : > { %p7186_p10 = scmp.ne.s32.totalorder %s9726_s29, %s7185_s12  ;;  %p7190_p13 = scmp.lt.u32.totalorder %s9726_s29, %s9813_s10 }
 0x4b9   : > { %p7191_p0 = scmp.lt.u32.totalorder %s7189_s21, %s7185_s12  ;;  %p7193_p2 = scmp.lt.u32.totalorder %s7185_s12, %s9726_s29 }
 0x4ba   : > { %p7187_p11 = pnand %p7186_p10, %p7343_p5 }
 0x4bb   : > { %p7192_p1 = por %p7191_p0, %p7190_p13 }
 0x4bc   : > { %p7188_p12 = pneg %p7187_p11 }
 0x4bd   : > { %p7194_p3 = por %p7193_p2, %p7192_p1 }
 0x4bf   : > { %p7195_p4 = pnand %p7194_p3, %p7188_p12 }
 0x4c1   : > { %7198 = shalt.err (!%p7195_p4)
}
 0x4c2   : > { %7029 = dma.vmem_to_hbm [thread:$0]  (%p7343_p5), %s9728_s15, 4096, %s9726_s29, %s5798_s30, %s7242_s2, %s7242_s2, %s7243_s24  }
 0x4c3 PF: > { %p7040_p7 = scmp.ge.s32.totalorder %s7237_s20, 2  ;;  %s5847_s13 = sand.u32 1, %s7225_s17  }
 0x4c4   : > { %s5848_s0 = scalar_lea.sflag [#allocation4], %s5847_s13 }
 0x4c5   : > { %p7034_p8 = pnand %p7040_p7, %p7347_p6 }
 0x4c7   : > { %7216 = dma.done.wait (!%p7034_p8), %s5848_s0, 4096  }
 0x4c8   : > { %7218 = vsyncadd (!%p7034_p8), %s5848_s0, 4294963200  ;;  %s5857_s27 = scalar_lea.sflag [#allocation6], %s5847_s13 }
 0x4c9   : > { %7220 = dma.done.wait (!%p7034_p8), %s5857_s27, 4096  }
 0x4ca   : > { %7222 = vsyncadd (!%p7034_p8), %s5857_s27, 4294963200  ;;  %s10181_s22 = sld [smem:[#allocation9_spill]]  ;;  %p25_p5 = scmp.ge.s32.totalorder %s7330_s23, 4  }
 0x4cb   : > { %s10182_s17 = smov %s7229_s18  ;;  %s10183_s18 = smov %s7233_s19 }
 0x4cc   : > { %s10185_s20 = smov %s7330_s23  ;;  %27 = sbr.rel (!%p25_p5) target bundleno = 9 (0x9), region = 120 }
 0x4d0   : > { %s10184_s19 = smov %s10181_s22 }
 0x4d3   :  { %5862 = vsyncpa [#allocation4], 1 }
 0x4d4   :  { %5864 = vsyncpa [#allocation4 + $0x1], 1 }
 0x4d5   :  { %5865 = vsyncpa [#allocation6], 1 }
 0x4d6   :  { %5867 = vsyncpa [#allocation6 + $0x1], 1 }

</bundles_post_ra>
